<compile_context>
chip_gen: v7x
topology: tpu7x:2x2x1
jax: 0.10.0
libtpu: 0.0.40
codegen_flags: <defaults>
</compile_context>

<pallas_src>
import math

import jax
import jax.numpy as jnp
from jax.experimental import pallas as pl
from jax.experimental.pallas import tpu as pltpu

MIN_NORM = 1e-15
PROJ_EPS = 4e-3                                  # PoincareBall eps for float32
ARTANH_CLIP = 1e-6                               # f32-safe (1 - 1e-15 rounds to 1.0)
MAX_TAN_COEF = math.atanh(1.0 - PROJ_EPS)        # max tangent norm after expmap0->proj->logmap0
NEG_SLOPE = 0.01


# ----------------------------- shared / host math -----------------------------

def _rownorm(x):
    return jnp.maximum(jnp.sqrt(jnp.sum(x * x, axis=-1, keepdims=True)), MIN_NORM)


def expmap0_host(u, c):
    sqrt_c = jnp.sqrt(c)
    n = _rownorm(u)
    return jnp.tanh(sqrt_c * n) * u / (sqrt_c * n)


def proj_host(x, c):
    n = _rownorm(x)
    maxnorm = (1.0 - PROJ_EPS) / jnp.sqrt(c)
    return jnp.where(n > maxnorm, x / n * maxnorm, x)


# ------------------------------ in-kernel math ---------------------------------

def _rcp(x):
    return pl.reciprocal(x, approx=True)


def _artanh(x):
    x = jnp.clip(x, -1.0 + ARTANH_CLIP, 1.0 - ARTANH_CLIP)
    return 0.5 * (jnp.log1p(x) - jnp.log1p(-x))


def _proj(x, c):
    n = _rownorm(x)
    maxnorm = (1.0 - PROJ_EPS) / jnp.sqrt(c)
    scale = jnp.where(n > maxnorm, maxnorm * _rcp(n), 1.0)
    return x * scale


def _expmap0(u, c):
    sqrt_c = jnp.sqrt(c)
    n = _rownorm(u)
    return jnp.tanh(sqrt_c * n) * _rcp(sqrt_c * n) * u


def _logmap0(p, c):
    sqrt_c = jnp.sqrt(c)
    n = _rownorm(p)
    return _artanh(sqrt_c * n) * _rcp(sqrt_c * n) * p


def _mobius_add(x, y, c):
    x2 = jnp.sum(x * x, axis=-1, keepdims=True)
    y2 = jnp.sum(y * y, axis=-1, keepdims=True)
    xy = jnp.sum(x * y, axis=-1, keepdims=True)
    num = (1.0 + 2.0 * c * xy + c * y2) * x + (1.0 - c * x2) * y
    den = 1.0 + 2.0 * c * xy + c * c * x2 * y2
    return num * _rcp(jnp.maximum(den, MIN_NORM))


def _mobius_matvec_from(mx, x_norm, c):
    # mobius_matvec given mx = x @ W^T and ||x||; zero-row guard dropped (real weights).
    sqrt_c = jnp.sqrt(c)
    mx_norm = _rownorm(mx)
    t = jnp.tanh(mx_norm * _rcp(x_norm) * _artanh(sqrt_c * x_norm))
    return t * _rcp(mx_norm * sqrt_c) * mx


def _tangent_clamp(u, c):
    # Exact fusion of logmap0(proj(expmap0(u, c), c), c): clamp ||u|| at artanh(1-eps)/sqrt(c).
    sqrt_c = jnp.sqrt(c)
    max_tan = MAX_TAN_COEF / sqrt_c
    n = _rownorm(u)
    scale = jnp.where(n > max_tan, max_tan * _rcp(n), 1.0)
    return u * scale


def _leaky_relu(x):
    return jnp.where(x > 0, x, NEG_SLOPE * x)


# --------------------------------- kernels -------------------------------------

def _pre_kernel(c_ref, feat_ref, hlast_ref, wlin_ref, blin_ref,
                w1x_ref, w1h_ref, hb1_ref, y1_ref):
    """initHyperX(linear(feat)) + implicit [x | hiddens[-1]] concat + layer1 HypLinear."""
    c0 = c_ref[0]

    # x = initHyperX(linear(feat), c0)
    x0 = jnp.dot(feat_ref[...], wlin_ref[...],
                 preferred_element_type=jnp.float32) + blin_ref[...]
    x0 = _proj(_expmap0(x0, c0), c0)
    h_last = hlast_ref[...]

    # x = proj(concat([x0, h_last], axis=1), c0) without materializing the lane concat.
    cat_norm = jnp.maximum(
        jnp.sqrt(jnp.sum(x0 * x0, axis=-1, keepdims=True)
                 + jnp.sum(h_last * h_last, axis=-1, keepdims=True)), MIN_NORM)
    maxnorm = (1.0 - PROJ_EPS) / jnp.sqrt(c0)
    s = jnp.where(cat_norm > maxnorm, maxnorm * _rcp(cat_norm), 1.0)
    x_norm = jnp.maximum(s * cat_norm, MIN_NORM)

    # layer1 HypLinear: mobius_matvec(W1, proj(concat)) with split weights.
    mu = (jnp.dot(x0, w1x_ref[...], preferred_element_type=jnp.float32)
          + jnp.dot(h_last, w1h_ref[...], preferred_element_type=jnp.float32))
    res = _mobius_matvec_from(s * mu, x_norm, c0)
    res = _proj(res, c0)
    res = _proj(_mobius_add(res, hb1_ref[...], c0), c0)

    # layer1 HypAgg head: tangent features (the aggregation matmul is kernel 2).
    y1_ref[...] = _logmap0(res, c0)


def _agg1_kernel(c_ref, ahat_ref, y1_ref, w2_ref, hb2_ref, y2_ref, acc_ref):
    """support1 = A_hat @ y1 (k-accumulated); layer1 tail + layer2 HypLinear."""
    k = pl.program_id(1)

    @pl.when(k == 0)
    def _():
        acc_ref[...] = jnp.zeros_like(acc_ref)

    acc_ref[...] += jnp.dot(ahat_ref[...], y1_ref[...],
                            preferred_element_type=jnp.float32)

    @pl.when(k == pl.num_programs(1) - 1)
    def _():
        c0 = c_ref[0]
        c1 = c_ref[1]
        # layer1 HypAgg tail + HypAct: expmap0->proj->logmap0 at c0 fused into a clamp.
        xt = _leaky_relu(_tangent_clamp(acc_ref[...], c0))
        x1 = _proj(_expmap0(xt, c1), c1)   # layer1 output; forward's extra proj(x, c1) is a no-op
        # layer2 HypLinear
        mx = jnp.dot(x1, w2_ref[...], preferred_element_type=jnp.float32)
        res = _mobius_matvec_from(mx, _rownorm(x1), c1)
        res = _proj(res, c1)
        res = _proj(_mobius_add(res, hb2_ref[...], c1), c1)
        y2_ref[...] = _logmap0(res, c1)    # layer2 HypAgg head (tangent)


def _agg2_kernel(c_ref, ahat_ref, y2_ref, hidd_ref, q_ref, r_ref,
                 wi_ref, wh_ref, bi_ref, bh_ref, out_ref, acc_ref):
    """support2 = A_hat @ y2; layer2 tail + toTangentX + HTA attention + GRU + toHyperX."""
    k = pl.program_id(1)

    @pl.when(k == 0)
    def _():
        acc_ref[...] = jnp.zeros_like(acc_ref)

    acc_ref[...] += jnp.dot(ahat_ref[...], y2_ref[...],
                            preferred_element_type=jnp.float32)

    @pl.when(k == pl.num_programs(1) - 1)
    def _():
        c1 = c_ref[1]
        c2 = c_ref[2]
        # layer2 HypAgg tail + HypAct (c1), then HypAct expmap0(c2)->proj->toTangentX fused.
        xt = _leaky_relu(_tangent_clamp(acc_ref[...], c1))
        x = _tangent_clamp(xt, c2)                                   # (T, nout) tangent at c2

        # HTA attention over the window: one logmap0 over the whole block, one batched
        # Q matmul, one batched r matmul (instead of 2*window tiny matmuls).
        W, T, F = hidd_ref.shape
        h_tan = _logmap0(hidd_ref[...], c2)                          # (W, T, nout)
        qb = jnp.broadcast_to(q_ref[...], (W,) + q_ref.shape)        # (W, nout, nhid)
        rb = jnp.broadcast_to(r_ref[...], (W,) + r_ref.shape)        # (W, nhid, 1)
        e = jnp.tanh(jnp.einsum('wtf,wfh->wth', h_tan, qb,
                                preferred_element_type=jnp.float32))
        sc = jnp.einsum('wth,who->wto', e, rb,
                        preferred_element_type=jnp.float32)          # (W, T, 1)

        # softmax over the window axis (slab-wise combines; single approx reciprocal,
        # 1/window mean folded into the denominator).
        m = sc[0]
        for w in range(1, W):
            m = jnp.maximum(m, sc[w])
        ex = [jnp.exp(sc[w] - m) for w in range(W)]
        den = ex[0]
        for w in range(1, W):
            den = den + ex[w]
        inv = _rcp(den * float(W))
        h = (ex[0] * inv) * h_tan[0]
        for w in range(1, W):
            h = h + (ex[w] * inv) * h_tan[w]                         # (T, nout)

        # GRUCell with fused gate matmuls; gate columns ordered [r | z | n].
        nout = out_ref.shape[-1]
        gi = jnp.dot(x, wi_ref[...], preferred_element_type=jnp.float32) + bi_ref[...]
        gh = jnp.dot(h, wh_ref[...], preferred_element_type=jnp.float32) + bh_ref[...]
        r_g = jax.nn.sigmoid(gi[:, 0:nout] + gh[:, 0:nout])
        z_g = jax.nn.sigmoid(gi[:, nout:2 * nout] + gh[:, nout:2 * nout])
        n_g = jnp.tanh(gi[:, 2 * nout:] + r_g * gh[:, 2 * nout:])
        xg = (1.0 - z_g) * n_g + z_g * h

        # toHyperX(x, c2)
        out_ref[...] = _proj(_expmap0(xg, c2), c2)


# --------------------------------- wrapper --------------------------------------

def htgn_forward(c, feat, hiddens, a_hat,
                 w_lin, b_lin, w1, b1, w2, b2, Q, r,
                 w_ih, w_hh, b_ih, b_hh,
                 *, tile_n=128, tile_k=128):
    N, nfeat = feat.shape
    window, _, nout = hiddens.shape
    nhid2 = w1.shape[0]                 # 2 * nhid
    nhid = Q.shape[1]

    tile_n = min(tile_n, N)
    tile_k = min(tile_k, N)
    assert N % tile_n == 0 and N % tile_k == 0
    n_i = N // tile_n
    n_k = N // tile_k

    c = c.reshape(-1).astype(jnp.float32)
    c0, c1 = c[0], c[1]

    # Layout plumbing: transpose so every in-kernel matmul is x @ W, split the layer1
    # weight so the lane-axis concat is never materialized, fuse GRU gate weights.
    wlin_t = w_lin.T                                  # (nfeat, nout)
    blin_r = b_lin.reshape(1, nout)
    w1_t = w1.T                                       # (2*nout, 2*nhid)
    w1x_t = w1_t[:nout]                               # acts on the x half of the concat
    w1h_t = w1_t[nout:]                               # acts on the hiddens[-1] half
    w2_t = w2.T                                       # (2*nhid, nout)
    wi_t = w_ih.T                                     # (nout, 3*nout) gates [r|z|n]
    wh_t = w_hh.T
    bi_r = b_ih.reshape(1, 3 * nout)
    bh_r = b_hh.reshape(1, 3 * nout)

    # Hyperbolic biases of the two HGCN layers: pure parameter transforms, done host-side.
    hb1 = proj_host(expmap0_host(b1.reshape(1, nhid2), c0), c0)
    hb2 = proj_host(expmap0_host(b2.reshape(1, nout), c1), c1)

    h_last = hiddens[-1]

    smem = pl.BlockSpec(memory_space=pltpu.MemorySpace.SMEM)
    vmem_limit = 48 * 1024 * 1024      # above v5e/v6e defaults, below v7x's 64 MiB physical
    cparams_par = pltpu.CompilerParams(
        dimension_semantics=("parallel",), vmem_limit_bytes=vmem_limit)
    cparams_red = pltpu.CompilerParams(
        dimension_semantics=("parallel", "arbitrary"), vmem_limit_bytes=vmem_limit)

    def const_spec(shape, ngrid):
        zeros = tuple(0 for _ in shape)
        if ngrid == 1:
            return pl.BlockSpec(shape, lambda i, _z=zeros: _z)
        return pl.BlockSpec(shape, lambda i, k, _z=zeros: _z)

    # ---- kernel 1: per-node-tile dense compute up to layer1 tangent features ----
    y1 = pl.pallas_call(
        _pre_kernel,
        out_shape=jax.ShapeDtypeStruct((N, nhid2), jnp.float32),
        grid=(n_i,),
        in_specs=[
            smem,
            pl.BlockSpec((tile_n, nfeat), lambda i: (i, 0)),
            pl.BlockSpec((tile_n, nout), lambda i: (i, 0)),
            const_spec((nfeat, nout), 1),
            const_spec((1, nout), 1),
            const_spec((nout, nhid2), 1),
            const_spec((nout, nhid2), 1),
            const_spec((1, nhid2), 1),
        ],
        out_specs=pl.BlockSpec((tile_n, nhid2), lambda i: (i, 0)),
        compiler_params=cparams_par,
        cost_estimate=pl.CostEstimate(
            flops=2 * N * (nfeat + 2 * nout) * nhid2,
            transcendentals=12 * N * nhid2,
            bytes_accessed=4 * N * (nfeat + nout + nhid2)),
    )(c, feat, h_last, wlin_t, blin_r, w1x_t, w1h_t, hb1)

    # ---- kernel 2: aggregation 1 + layer1 tail + layer2 HypLinear ----
    y2 = pl.pallas_call(
        _agg1_kernel,
        out_shape=jax.ShapeDtypeStruct((N, nout), jnp.float32),
        grid=(n_i, n_k),
        in_specs=[
            smem,
            pl.BlockSpec((tile_n, tile_k), lambda i, k: (i, k)),
            pl.BlockSpec((tile_k, nhid2), lambda i, k: (k, 0)),
            const_spec((nhid2, nout), 2),
            const_spec((1, nout), 2),
        ],
        out_specs=pl.BlockSpec((tile_n, nout), lambda i, k: (i, 0)),
        scratch_shapes=[pltpu.VMEM((tile_n, nhid2), jnp.float32)],
        compiler_params=cparams_red,
        cost_estimate=pl.CostEstimate(
            flops=2 * N * N * nhid2 + 2 * N * nhid2 * nout,
            transcendentals=10 * N * (nhid2 + nout),
            bytes_accessed=4 * (N * N + N * nhid2 + N * nout)),
    )(c, a_hat, y1, w2_t, hb2)

    # ---- kernel 3: aggregation 2 + layer2 tail + HTA + GRU + toHyperX ----
    z = pl.pallas_call(
        _agg2_kernel,
        out_shape=jax.ShapeDtypeStruct((N, nout), jnp.float32),
        grid=(n_i, n_k),
        in_specs=[
            smem,
            pl.BlockSpec((tile_n, tile_k), lambda i, k: (i, k)),
            pl.BlockSpec((tile_k, nout), lambda i, k: (k, 0)),
            pl.BlockSpec((window, tile_n, nout), lambda i, k: (0, i, 0)),
            const_spec((nout, nhid), 2),
            const_spec((nhid, 1), 2),
            const_spec((nout, 3 * nout), 2),
            const_spec((nout, 3 * nout), 2),
            const_spec((1, 3 * nout), 2),
            const_spec((1, 3 * nout), 2),
        ],
        out_specs=pl.BlockSpec((tile_n, nout), lambda i, k: (i, 0)),
        scratch_shapes=[pltpu.VMEM((tile_n, nout), jnp.float32)],
        compiler_params=cparams_red,
        cost_estimate=pl.CostEstimate(
            flops=2 * N * N * nout + 2 * window * N * (nout * nhid + nhid)
                  + 4 * N * nout * nout,
            transcendentals=N * (12 * nout + 2 * window * nhid),
            bytes_accessed=4 * (N * N + (window + 3) * N * nout)),
    )(c, a_hat, y2, hiddens, Q, r, wi_t, wh_t, bi_r, bh_r)
    return z


# --------------------------------- glue ------------------------------------------

def glorot(key, shape):
    if len(shape) > 1:
        fan_in, fan_out = shape[-1], shape[-2]
    else:
        fan_in = fan_out = shape[-1]
    limit = jnp.sqrt(6.0 / (fan_in + fan_out))
    return jax.random.uniform(key, shape, jnp.float32, -limit, limit)


def build_gcn_adj(edge_index, n):
    """Dense D^-1/2 (A + I) D^-1/2 matching PyG gcn_norm (messages flow src->dst)."""
    src = jnp.concatenate([edge_index[0], jnp.arange(n)])
    dst = jnp.concatenate([edge_index[1], jnp.arange(n)])
    A = jnp.zeros((n, n), jnp.float32).at[dst, src].add(1.0)
    deg = jnp.sum(A, axis=1)
    dis = jnp.where(deg > 0, 1.0 / jnp.sqrt(jnp.maximum(deg, 1e-12)), 0.0)
    return dis[:, None] * A * dis[None, :]


if __name__ == "__main__":
    # Small config consistent with HTGN(__init__); big enough to exercise the node tiling.
    num_nodes, nfeat, nhid, nout, window = 256, 16, 16, 16, 4
    curvature = 1.0

    key = jax.random.PRNGKey(0)
    ks = jax.random.split(key, 16)

    # curvatures c = ones(3, 1) * curvature (used as scalars)
    c = jnp.ones((3,), jnp.float32) * curvature

    feat = glorot(ks[0], (num_nodes, nfeat))
    w_lin = glorot(ks[1], (nout, nfeat))                     # nn.Linear(nfeat, nout)
    b_lin = jax.random.uniform(ks[2], (nout,), jnp.float32, -0.1, 0.1)
    w1 = glorot(ks[3], (2 * nhid, 2 * nout))                 # HGCNConv layer1
    b1 = jnp.zeros((2 * nhid,), jnp.float32)
    w2 = glorot(ks[4], (nout, 2 * nhid))                     # HGCNConv layer2
    b2 = jnp.zeros((nout,), jnp.float32)
    Q = glorot(ks[5], (nout, nhid))
    r = glorot(ks[6], (nhid, 1))
    w_ih = glorot(ks[7], (3 * nout, nout))                   # GRUCell
    w_hh = glorot(ks[8], (3 * nout, nout))
    b_ih = jax.random.uniform(ks[9], (3 * nout,), jnp.float32, -0.1, 0.1)
    b_hh = jax.random.uniform(ks[10], (3 * nout,), jnp.float32, -0.1, 0.1)
    hidden_initial = glorot(ks[11], (num_nodes, nout))

    # init_hiddens(): window identical copies of initHyperX(hidden_initial, c=1.0)
    h0 = proj_host(expmap0_host(hidden_initial, 1.0), 1.0)
    hiddens = jnp.tile(h0[None, :, :], (window, 1, 1))       # (window, N, nout)

    # deterministic undirected ring graph, edge_index shape (2, 2N)
    src = jnp.arange(num_nodes, dtype=jnp.int32)
    dst = (src + 1) % num_nodes
    edge_index = jnp.stack([jnp.concatenate([src, dst]),
                            jnp.concatenate([dst, src])], axis=0)
    a_hat = build_gcn_adj(edge_index, num_nodes)

    out = htgn_forward(c, feat, hiddens, a_hat,
                       w_lin, b_lin, w1, b1, w2, b2, Q, r,
                       w_ih, w_hh, b_ih, b_hh)
    out = jax.block_until_ready(out)
    assert out.shape == (num_nodes, nout) and out.dtype == jnp.float32
    print("KERNEL_OK")
</pallas_src>

<mosaic_0001>
module attributes {stable_mosaic.version = 11 : i64} {
  func.func @_pre_kernel(%arg0: i32, %arg1: memref<3xf32, #tpu.memory_space<smem>>, %arg2: memref<128x16xf32, #tpu.memory_space<vmem>>, %arg3: memref<128x16xf32, #tpu.memory_space<vmem>>, %arg4: memref<16x16xf32, #tpu.memory_space<vmem>>, %arg5: memref<1x16xf32, #tpu.memory_space<vmem>>, %arg6: memref<16x32xf32, #tpu.memory_space<vmem>>, %arg7: memref<16x32xf32, #tpu.memory_space<vmem>>, %arg8: memref<1x32xf32, #tpu.memory_space<vmem>>, %arg9: memref<128x32xf32, #tpu.memory_space<vmem>>) attributes {dimension_semantics = [#tpu.dimension_semantics<parallel>], iteration_bounds = array<i64: 2>, scalar_prefetch = 0 : i64, scratch_operands = 0 : i64, tpu.core_type = #tpu.core_type<tc>, window_params = [{transform_indices = @transform_0, window_bounds = array<i64: 3>}, {transform_indices = @transform_1, window_bounds = array<i64: 128, 16>}, {transform_indices = @transform_2, window_bounds = array<i64: 128, 16>}, {pipeline_mode = #tpu.pipeline_mode<synchronous>, transform_indices = @transform_3, window_bounds = array<i64: 16, 16>}, {pipeline_mode = #tpu.pipeline_mode<synchronous>, transform_indices = @transform_4, window_bounds = array<i64: 1, 16>}, {pipeline_mode = #tpu.pipeline_mode<synchronous>, transform_indices = @transform_5, window_bounds = array<i64: 16, 32>}, {pipeline_mode = #tpu.pipeline_mode<synchronous>, transform_indices = @transform_6, window_bounds = array<i64: 16, 32>}, {pipeline_mode = #tpu.pipeline_mode<synchronous>, transform_indices = @transform_7, window_bounds = array<i64: 1, 32>}, {transform_indices = @transform_8, window_bounds = array<i64: 128, 32>}]} {
    %c0 = arith.constant 0 : index
    %0 = memref.load %arg1[%c0] : memref<3xf32, #tpu.memory_space<smem>>
    %c0_0 = arith.constant 0 : index
    %c0_1 = arith.constant 0 : index
    %1 = vector.load %arg2[%c0_0, %c0_1] : memref<128x16xf32, #tpu.memory_space<vmem>>, vector<128x16xf32>
    %c0_2 = arith.constant 0 : index
    %c0_3 = arith.constant 0 : index
    %2 = vector.load %arg4[%c0_2, %c0_3] : memref<16x16xf32, #tpu.memory_space<vmem>>, vector<16x16xf32>
    %cst = arith.constant dense<0.000000e+00> : vector<128x16xf32>
    %3 = tpu.matmul %1, %2, %cst {dimension_numbers = #tpu.dot_dimension_numbers<[1], [0], [0], [1], [0, 0, 1, 1], [], []>} : vector<128x16xf32>, vector<16x16xf32>, vector<128x16xf32> -> vector<128x16xf32>
    %c0_4 = arith.constant 0 : index
    %c0_5 = arith.constant 0 : index
    %4 = vector.load %arg5[%c0_4, %c0_5] : memref<1x16xf32, #tpu.memory_space<vmem>>, vector<1x16xf32>
    %5 = vector.broadcast %4 : vector<1x16xf32> to vector<128x16xf32>
    %6 = arith.addf %3, %5 : vector<128x16xf32>
    %7 = math.sqrt %0 : f32
    %8 = arith.mulf %6, %6 : vector<128x16xf32>
    %cst_6 = arith.constant dense<0.000000e+00> : vector<128xf32>
    %9 = vector.multi_reduction <add>, %8, %cst_6 [1] : vector<128x16xf32> to vector<128xf32>
    %10 = vector.shape_cast %9 : vector<128xf32> to vector<128x1xf32>
    %11 = math.sqrt %10 : vector<128x1xf32>
    %cst_7 = arith.constant 1.000000e-15 : f32
    %12 = vector.broadcast %cst_7 : f32 to vector<128x1xf32>
    %13 = arith.maximumf %11, %12 : vector<128x1xf32>
    %14 = vector.broadcast %7 : f32 to vector<128x1xf32>
    %15 = arith.mulf %14, %13 : vector<128x1xf32>
    %16 = math.tanh %15 : vector<128x1xf32>
    %17 = vector.broadcast %7 : f32 to vector<128x1xf32>
    %18 = arith.mulf %17, %13 : vector<128x1xf32>
    %19 = tpu.reciprocal %18 {approx = true} : vector<128x1xf32> -> vector<128x1xf32>
    %20 = arith.mulf %16, %19 : vector<128x1xf32>
    %21 = vector.broadcast %20 : vector<128x1xf32> to vector<128x16xf32>
    %22 = arith.mulf %21, %6 : vector<128x16xf32>
    %23 = arith.mulf %22, %22 : vector<128x16xf32>
    %cst_8 = arith.constant dense<0.000000e+00> : vector<128xf32>
    %24 = vector.multi_reduction <add>, %23, %cst_8 [1] : vector<128x16xf32> to vector<128xf32>
    %25 = vector.shape_cast %24 : vector<128xf32> to vector<128x1xf32>
    %26 = math.sqrt %25 : vector<128x1xf32>
    %cst_9 = arith.constant 1.000000e-15 : f32
    %27 = vector.broadcast %cst_9 : f32 to vector<128x1xf32>
    %28 = arith.maximumf %26, %27 : vector<128x1xf32>
    %29 = math.sqrt %0 : f32
    %cst_10 = arith.constant 0.995999991 : f32
    %30 = arith.divf %cst_10, %29 : f32
    %31 = vector.broadcast %30 : f32 to vector<128x1xf32>
    %32 = arith.cmpf ogt, %28, %31 : vector<128x1xf32>
    %33 = tpu.reciprocal %28 {approx = true} : vector<128x1xf32> -> vector<128x1xf32>
    %34 = vector.broadcast %30 : f32 to vector<128x1xf32>
    %35 = arith.mulf %34, %33 : vector<128x1xf32>
    %cst_11 = arith.constant 1.000000e+00 : f32
    %36 = vector.broadcast %cst_11 : f32 to vector<128x1xf32>
    %37 = arith.select %32, %35, %36 : vector<128x1xi1>, vector<128x1xf32>
    %38 = vector.broadcast %37 : vector<128x1xf32> to vector<128x16xf32>
    %39 = arith.mulf %22, %38 : vector<128x16xf32>
    %c0_12 = arith.constant 0 : index
    %c0_13 = arith.constant 0 : index
    %40 = vector.load %arg3[%c0_12, %c0_13] : memref<128x16xf32, #tpu.memory_space<vmem>>, vector<128x16xf32>
    %41 = arith.mulf %39, %39 : vector<128x16xf32>
    %cst_14 = arith.constant dense<0.000000e+00> : vector<128xf32>
    %42 = vector.multi_reduction <add>, %41, %cst_14 [1] : vector<128x16xf32> to vector<128xf32>
    %43 = vector.shape_cast %42 : vector<128xf32> to vector<128x1xf32>
    %44 = arith.mulf %40, %40 : vector<128x16xf32>
    %cst_15 = arith.constant dense<0.000000e+00> : vector<128xf32>
    %45 = vector.multi_reduction <add>, %44, %cst_15 [1] : vector<128x16xf32> to vector<128xf32>
    %46 = vector.shape_cast %45 : vector<128xf32> to vector<128x1xf32>
    %47 = arith.addf %43, %46 : vector<128x1xf32>
    %48 = math.sqrt %47 : vector<128x1xf32>
    %cst_16 = arith.constant 1.000000e-15 : f32
    %49 = vector.broadcast %cst_16 : f32 to vector<128x1xf32>
    %50 = arith.maximumf %48, %49 : vector<128x1xf32>
    %51 = math.sqrt %0 : f32
    %cst_17 = arith.constant 0.995999991 : f32
    %52 = arith.divf %cst_17, %51 : f32
    %53 = vector.broadcast %52 : f32 to vector<128x1xf32>
    %54 = arith.cmpf ogt, %50, %53 : vector<128x1xf32>
    %55 = tpu.reciprocal %50 {approx = true} : vector<128x1xf32> -> vector<128x1xf32>
    %56 = vector.broadcast %52 : f32 to vector<128x1xf32>
    %57 = arith.mulf %56, %55 : vector<128x1xf32>
    %cst_18 = arith.constant 1.000000e+00 : f32
    %58 = vector.broadcast %cst_18 : f32 to vector<128x1xf32>
    %59 = arith.select %54, %57, %58 : vector<128x1xi1>, vector<128x1xf32>
    %60 = arith.mulf %59, %50 : vector<128x1xf32>
    %cst_19 = arith.constant 1.000000e-15 : f32
    %61 = vector.broadcast %cst_19 : f32 to vector<128x1xf32>
    %62 = arith.maximumf %60, %61 : vector<128x1xf32>
    %c0_20 = arith.constant 0 : index
    %c0_21 = arith.constant 0 : index
    %63 = vector.load %arg6[%c0_20, %c0_21] : memref<16x32xf32, #tpu.memory_space<vmem>>, vector<16x32xf32>
    %cst_22 = arith.constant dense<0.000000e+00> : vector<128x32xf32>
    %64 = tpu.matmul %39, %63, %cst_22 {dimension_numbers = #tpu.dot_dimension_numbers<[1], [0], [0], [1], [0, 0, 1, 1], [], []>} : vector<128x16xf32>, vector<16x32xf32>, vector<128x32xf32> -> vector<128x32xf32>
    %c0_23 = arith.constant 0 : index
    %c0_24 = arith.constant 0 : index
    %65 = vector.load %arg7[%c0_23, %c0_24] : memref<16x32xf32, #tpu.memory_space<vmem>>, vector<16x32xf32>
    %cst_25 = arith.constant dense<0.000000e+00> : vector<128x32xf32>
    %66 = tpu.matmul %40, %65, %cst_25 {dimension_numbers = #tpu.dot_dimension_numbers<[1], [0], [0], [1], [0, 0, 1, 1], [], []>} : vector<128x16xf32>, vector<16x32xf32>, vector<128x32xf32> -> vector<128x32xf32>
    %67 = arith.addf %64, %66 : vector<128x32xf32>
    %68 = vector.broadcast %59 : vector<128x1xf32> to vector<128x32xf32>
    %69 = arith.mulf %68, %67 : vector<128x32xf32>
    %70 = math.sqrt %0 : f32
    %71 = arith.mulf %69, %69 : vector<128x32xf32>
    %cst_26 = arith.constant dense<0.000000e+00> : vector<128xf32>
    %72 = vector.multi_reduction <add>, %71, %cst_26 [1] : vector<128x32xf32> to vector<128xf32>
    %73 = vector.shape_cast %72 : vector<128xf32> to vector<128x1xf32>
    %74 = math.sqrt %73 : vector<128x1xf32>
    %cst_27 = arith.constant 1.000000e-15 : f32
    %75 = vector.broadcast %cst_27 : f32 to vector<128x1xf32>
    %76 = arith.maximumf %74, %75 : vector<128x1xf32>
    %77 = tpu.reciprocal %62 {approx = true} : vector<128x1xf32> -> vector<128x1xf32>
    %78 = arith.mulf %76, %77 : vector<128x1xf32>
    %79 = vector.broadcast %70 : f32 to vector<128x1xf32>
    %80 = arith.mulf %79, %62 : vector<128x1xf32>
    %cst_28 = arith.constant -0.999998986 : f32
    %cst_29 = arith.constant 0.999998986 : f32
    %81 = vector.broadcast %cst_28 : f32 to vector<128x1xf32>
    %82 = arith.maximumf %81, %80 : vector<128x1xf32>
    %83 = vector.broadcast %cst_29 : f32 to vector<128x1xf32>
    %84 = arith.minimumf %83, %82 : vector<128x1xf32>
    %85 = math.log1p %84 : vector<128x1xf32>
    %cst_30 = arith.constant 0.000000e+00 : f32
    %86 = vector.broadcast %cst_30 : f32 to vector<128x1xf32>
    %87 = arith.subf %86, %84 : vector<128x1xf32>
    %88 = math.log1p %87 : vector<128x1xf32>
    %89 = arith.subf %85, %88 : vector<128x1xf32>
    %cst_31 = arith.constant 5.000000e-01 : f32
    %90 = vector.broadcast %cst_31 : f32 to vector<128x1xf32>
    %91 = arith.mulf %90, %89 : vector<128x1xf32>
    %92 = arith.mulf %78, %91 : vector<128x1xf32>
    %93 = math.tanh %92 : vector<128x1xf32>
    %94 = vector.broadcast %70 : f32 to vector<128x1xf32>
    %95 = arith.mulf %76, %94 : vector<128x1xf32>
    %96 = tpu.reciprocal %95 {approx = true} : vector<128x1xf32> -> vector<128x1xf32>
    %97 = arith.mulf %93, %96 : vector<128x1xf32>
    %98 = vector.broadcast %97 : vector<128x1xf32> to vector<128x32xf32>
    %99 = arith.mulf %98, %69 : vector<128x32xf32>
    %100 = arith.mulf %99, %99 : vector<128x32xf32>
    %cst_32 = arith.constant dense<0.000000e+00> : vector<128xf32>
    %101 = vector.multi_reduction <add>, %100, %cst_32 [1] : vector<128x32xf32> to vector<128xf32>
    %102 = vector.shape_cast %101 : vector<128xf32> to vector<128x1xf32>
    %103 = math.sqrt %102 : vector<128x1xf32>
    %cst_33 = arith.constant 1.000000e-15 : f32
    %104 = vector.broadcast %cst_33 : f32 to vector<128x1xf32>
    %105 = arith.maximumf %103, %104 : vector<128x1xf32>
    %106 = math.sqrt %0 : f32
    %cst_34 = arith.constant 0.995999991 : f32
    %107 = arith.divf %cst_34, %106 : f32
    %108 = vector.broadcast %107 : f32 to vector<128x1xf32>
    %109 = arith.cmpf ogt, %105, %108 : vector<128x1xf32>
    %110 = tpu.reciprocal %105 {approx = true} : vector<128x1xf32> -> vector<128x1xf32>
    %111 = vector.broadcast %107 : f32 to vector<128x1xf32>
    %112 = arith.mulf %111, %110 : vector<128x1xf32>
    %cst_35 = arith.constant 1.000000e+00 : f32
    %113 = vector.broadcast %cst_35 : f32 to vector<128x1xf32>
    %114 = arith.select %109, %112, %113 : vector<128x1xi1>, vector<128x1xf32>
    %115 = vector.broadcast %114 : vector<128x1xf32> to vector<128x32xf32>
    %116 = arith.mulf %99, %115 : vector<128x32xf32>
    %c0_36 = arith.constant 0 : index
    %c0_37 = arith.constant 0 : index
    %117 = vector.load %arg8[%c0_36, %c0_37] : memref<1x32xf32, #tpu.memory_space<vmem>>, vector<1x32xf32>
    %118 = arith.mulf %116, %116 : vector<128x32xf32>
    %cst_38 = arith.constant dense<0.000000e+00> : vector<128xf32>
    %119 = vector.multi_reduction <add>, %118, %cst_38 [1] : vector<128x32xf32> to vector<128xf32>
    %120 = vector.shape_cast %119 : vector<128xf32> to vector<128x1xf32>
    %121 = arith.mulf %117, %117 : vector<1x32xf32>
    %cst_39 = arith.constant dense<0.000000e+00> : vector<1xf32>
    %122 = vector.multi_reduction <add>, %121, %cst_39 [1] : vector<1x32xf32> to vector<1xf32>
    %123 = vector.shape_cast %122 : vector<1xf32> to vector<1x1xf32>
    %124 = vector.broadcast %117 : vector<1x32xf32> to vector<128x32xf32>
    %125 = arith.mulf %116, %124 : vector<128x32xf32>
    %cst_40 = arith.constant dense<0.000000e+00> : vector<128xf32>
    %126 = vector.multi_reduction <add>, %125, %cst_40 [1] : vector<128x32xf32> to vector<128xf32>
    %127 = vector.shape_cast %126 : vector<128xf32> to vector<128x1xf32>
    %cst_41 = arith.constant 2.000000e+00 : f32
    %128 = arith.mulf %cst_41, %0 : f32
    %129 = vector.broadcast %128 : f32 to vector<128x1xf32>
    %130 = arith.mulf %129, %127 : vector<128x1xf32>
    %cst_42 = arith.constant 1.000000e+00 : f32
    %131 = vector.broadcast %cst_42 : f32 to vector<128x1xf32>
    %132 = arith.addf %131, %130 : vector<128x1xf32>
    %133 = vector.broadcast %0 : f32 to vector<1x1xf32>
    %134 = arith.mulf %133, %123 : vector<1x1xf32>
    %135 = vector.broadcast %134 : vector<1x1xf32> to vector<128x1xf32>
    %136 = arith.addf %132, %135 : vector<128x1xf32>
    %137 = vector.broadcast %136 : vector<128x1xf32> to vector<128x32xf32>
    %138 = arith.mulf %137, %116 : vector<128x32xf32>
    %139 = vector.broadcast %0 : f32 to vector<128x1xf32>
    %140 = arith.mulf %139, %120 : vector<128x1xf32>
    %cst_43 = arith.constant 1.000000e+00 : f32
    %141 = vector.broadcast %cst_43 : f32 to vector<128x1xf32>
    %142 = arith.subf %141, %140 : vector<128x1xf32>
    %143 = vector.broadcast %142 : vector<128x1xf32> to vector<128x32xf32>
    %144 = vector.broadcast %117 : vector<1x32xf32> to vector<128x32xf32>
    %145 = arith.mulf %143, %144 : vector<128x32xf32>
    %146 = arith.addf %138, %145 : vector<128x32xf32>
    %cst_44 = arith.constant 2.000000e+00 : f32
    %147 = arith.mulf %cst_44, %0 : f32
    %148 = vector.broadcast %147 : f32 to vector<128x1xf32>
    %149 = arith.mulf %148, %127 : vector<128x1xf32>
    %cst_45 = arith.constant 1.000000e+00 : f32
    %150 = vector.broadcast %cst_45 : f32 to vector<128x1xf32>
    %151 = arith.addf %150, %149 : vector<128x1xf32>
    %152 = arith.mulf %0, %0 : f32
    %153 = vector.broadcast %152 : f32 to vector<128x1xf32>
    %154 = arith.mulf %153, %120 : vector<128x1xf32>
    %155 = vector.broadcast %123 : vector<1x1xf32> to vector<128x1xf32>
    %156 = arith.mulf %154, %155 : vector<128x1xf32>
    %157 = arith.addf %151, %156 : vector<128x1xf32>
    %cst_46 = arith.constant 1.000000e-15 : f32
    %158 = vector.broadcast %cst_46 : f32 to vector<128x1xf32>
    %159 = arith.maximumf %157, %158 : vector<128x1xf32>
    %160 = tpu.reciprocal %159 {approx = true} : vector<128x1xf32> -> vector<128x1xf32>
    %161 = vector.broadcast %160 : vector<128x1xf32> to vector<128x32xf32>
    %162 = arith.mulf %146, %161 : vector<128x32xf32>
    %163 = arith.mulf %162, %162 : vector<128x32xf32>
    %cst_47 = arith.constant dense<0.000000e+00> : vector<128xf32>
    %164 = vector.multi_reduction <add>, %163, %cst_47 [1] : vector<128x32xf32> to vector<128xf32>
    %165 = vector.shape_cast %164 : vector<128xf32> to vector<128x1xf32>
    %166 = math.sqrt %165 : vector<128x1xf32>
    %cst_48 = arith.constant 1.000000e-15 : f32
    %167 = vector.broadcast %cst_48 : f32 to vector<128x1xf32>
    %168 = arith.maximumf %166, %167 : vector<128x1xf32>
    %169 = math.sqrt %0 : f32
    %cst_49 = arith.constant 0.995999991 : f32
    %170 = arith.divf %cst_49, %169 : f32
    %171 = vector.broadcast %170 : f32 to vector<128x1xf32>
    %172 = arith.cmpf ogt, %168, %171 : vector<128x1xf32>
    %173 = tpu.reciprocal %168 {approx = true} : vector<128x1xf32> -> vector<128x1xf32>
    %174 = vector.broadcast %170 : f32 to vector<128x1xf32>
    %175 = arith.mulf %174, %173 : vector<128x1xf32>
    %cst_50 = arith.constant 1.000000e+00 : f32
    %176 = vector.broadcast %cst_50 : f32 to vector<128x1xf32>
    %177 = arith.select %172, %175, %176 : vector<128x1xi1>, vector<128x1xf32>
    %178 = vector.broadcast %177 : vector<128x1xf32> to vector<128x32xf32>
    %179 = arith.mulf %162, %178 : vector<128x32xf32>
    %180 = math.sqrt %0 : f32
    %181 = arith.mulf %179, %179 : vector<128x32xf32>
    %cst_51 = arith.constant dense<0.000000e+00> : vector<128xf32>
    %182 = vector.multi_reduction <add>, %181, %cst_51 [1] : vector<128x32xf32> to vector<128xf32>
    %183 = vector.shape_cast %182 : vector<128xf32> to vector<128x1xf32>
    %184 = math.sqrt %183 : vector<128x1xf32>
    %cst_52 = arith.constant 1.000000e-15 : f32
    %185 = vector.broadcast %cst_52 : f32 to vector<128x1xf32>
    %186 = arith.maximumf %184, %185 : vector<128x1xf32>
    %187 = vector.broadcast %180 : f32 to vector<128x1xf32>
    %188 = arith.mulf %187, %186 : vector<128x1xf32>
    %cst_53 = arith.constant -0.999998986 : f32
    %cst_54 = arith.constant 0.999998986 : f32
    %189 = vector.broadcast %cst_53 : f32 to vector<128x1xf32>
    %190 = arith.maximumf %189, %188 : vector<128x1xf32>
    %191 = vector.broadcast %cst_54 : f32 to vector<128x1xf32>
    %192 = arith.minimumf %191, %190 : vector<128x1xf32>
    %193 = math.log1p %192 : vector<128x1xf32>
    %cst_55 = arith.constant 0.000000e+00 : f32
    %194 = vector.broadcast %cst_55 : f32 to vector<128x1xf32>
    %195 = arith.subf %194, %192 : vector<128x1xf32>
    %196 = math.log1p %195 : vector<128x1xf32>
    %197 = arith.subf %193, %196 : vector<128x1xf32>
    %cst_56 = arith.constant 5.000000e-01 : f32
    %198 = vector.broadcast %cst_56 : f32 to vector<128x1xf32>
    %199 = arith.mulf %198, %197 : vector<128x1xf32>
    %200 = vector.broadcast %180 : f32 to vector<128x1xf32>
    %201 = arith.mulf %200, %186 : vector<128x1xf32>
    %202 = tpu.reciprocal %201 {approx = true} : vector<128x1xf32> -> vector<128x1xf32>
    %203 = arith.mulf %199, %202 : vector<128x1xf32>
    %204 = vector.broadcast %203 : vector<128x1xf32> to vector<128x32xf32>
    %205 = arith.mulf %204, %179 : vector<128x32xf32>
    %c0_57 = arith.constant 0 : index
    %c0_58 = arith.constant 0 : index
    %206 = vector.load %arg9[%c0_57, %c0_58] : memref<128x32xf32, #tpu.memory_space<vmem>>, vector<128x32xf32>
    tpu.vector_store %arg9[%c0_57, %c0_58], %205 {strides = array<i32>} : memref<128x32xf32, #tpu.memory_space<vmem>>, vector<128x32xf32>,
    return
  }
  func.func @transform_0(%arg0: i32) -> i32 {
    %c0_i32 = arith.constant 0 : i32
    %c0_i32_0 = arith.constant 0 : i32
    return %c0_i32 : i32
  }
  func.func @transform_1(%arg0: i32) -> (i32, i32) {
    %c0_i32 = arith.constant 0 : i32
    %c0_i32_0 = arith.constant 0 : i32
    return %arg0, %c0_i32 : i32, i32
  }
  func.func @transform_2(%arg0: i32) -> (i32, i32) {
    %c0_i32 = arith.constant 0 : i32
    %c0_i32_0 = arith.constant 0 : i32
    return %arg0, %c0_i32 : i32, i32
  }
  func.func @transform_3(%arg0: i32) -> (i32, i32) {
    %c0_i32 = arith.constant 0 : i32
    %c0_i32_0 = arith.constant 0 : i32
    %c0_i32_1 = arith.constant 0 : i32
    return %c0_i32, %c0_i32_0 : i32, i32
  }
  func.func @transform_4(%arg0: i32) -> (i32, i32) {
    %c0_i32 = arith.constant 0 : i32
    %c0_i32_0 = arith.constant 0 : i32
    %c0_i32_1 = arith.constant 0 : i32
    return %c0_i32, %c0_i32_0 : i32, i32
  }
  func.func @transform_5(%arg0: i32) -> (i32, i32) {
    %c0_i32 = arith.constant 0 : i32
    %c0_i32_0 = arith.constant 0 : i32
    %c0_i32_1 = arith.constant 0 : i32
    return %c0_i32, %c0_i32_0 : i32, i32
  }
  func.func @transform_6(%arg0: i32) -> (i32, i32) {
    %c0_i32 = arith.constant 0 : i32
    %c0_i32_0 = arith.constant 0 : i32
    %c0_i32_1 = arith.constant 0 : i32
    return %c0_i32, %c0_i32_0 : i32, i32
  }
  func.func @transform_7(%arg0: i32) -> (i32, i32) {
    %c0_i32 = arith.constant 0 : i32
    %c0_i32_0 = arith.constant 0 : i32
    %c0_i32_1 = arith.constant 0 : i32
    return %c0_i32, %c0_i32_0 : i32, i32
  }
  func.func @transform_8(%arg0: i32) -> (i32, i32) {
    %c0_i32 = arith.constant 0 : i32
    %c0_i32_0 = arith.constant 0 : i32
    return %arg0, %c0_i32 : i32, i32
  }
}

</mosaic_0001>

<bundles_post_ra>
// kernel: tpu_custom_call.1
= control target key start
LH: loop header
LB: loop body
LE: loop exit
PB: predicated region body
PF: predicated region fallthrough
CT: control target
= control target key end

     0   :  { %13 = vsyncpa [#allocation3], 0  ;;  %s5329_s27 = smov 0   ;;  %s8977_s0 = inlined_call_operand.vmem [shape: f32[3], index: 0, kind: input, shape index: {}]   ;;  %s8978_s1 = inlined_call_operand.vmem [shape: f32[256,16], index: 1, kind: input, shape index: {}]   ;;  %s8979_s2 = inlined_call_operand.vmem [shape: f32[256,16], index: 2, kind: input, shape index: {}]   ;;  %s8980_s3 = inlined_call_operand.vmem [shape: f32[16,16], index: 3, kind: input, shape index: {}]   ;;  %s8981_s4 = inlined_call_operand.vmem [shape: f32[1,16], index: 4, kind: input, shape index: {}]   ;;  %s8982_s5 = inlined_call_operand.vmem [shape: f32[16,32], index: 5, kind: input, shape index: {}]   ;;  %s8983_s6 = inlined_call_operand.vmem [shape: f32[16,32], index: 6, kind: input, shape index: {}]   ;;  %s8984_s7 = inlined_call_operand.vmem [shape: f32[1,32], index: 7, kind: input, shape index: {}]   ;;  %s8985_s8 = inlined_call_operand.vmem [shape: f32[256,32], index: 8, kind: output, shape index: {}]  }
   0x1 LB: > { %s4261_s28 = sadd.s32 4294967295, %s5281_s27   ;;  %p4263_p0 = scmp.ge.s32.totalorder %s5281_s27, 1  ;;  %s5281_s27 = sphi %s5329_s27, %s19_s27  }
   0x2   : > { %p228_p1 = scmp.lt.s32.totalorder %s5281_s27, 3  ;;  %s241_s9 = sshll.u32 %s8977_s0, 4  ;;  %s242_s9 = int_to_ptr.vmem [resolvable:$true] %s241_s9 }
   0x3   : > { %p5344_p3 = scmp.eq.s32.totalorder %s4261_s28, 0  ;;  %s5256_s12 = scalar_lea.vmem %s242_s9, 16 }
   0x4   : > { %p5340_p2 = pnand %p4263_p0, %p228_p1  ;;  %p5257_p6 = scmp.ne.s32.totalorder %s242_s9, %s5256_s12 }
   0x5   : > { %p5264_p10 = scmp.lt.s32.totalorder %s242_s9, %s242_s9  ;;  %p5265_p11 = scmp.lt.s32.totalorder %s5256_s12, %s5256_s12 }
   0x6   : > { %p4533_p4 = pneg %p5340_p2 }
   0x7   : > { %p5266_p12 = por %p5265_p11, %p5264_p10 }
   0x8   : > { %p4534_p5 = pnand %p5344_p3, %p4533_p4 }
   0xa   : > { %p5258_p7 = pneg %p4534_p5 }
   0xc   : > { %p5259_p8 = pnand %p5258_p7, %p5257_p6 }
   0xe   : > { %p5260_p9 = pneg %p5259_p8 }
  0x10   : > { %p5267_p13 = pnand %p5266_p12, %p5260_p9 }
  0x12   : > { %5270 = shalt.err (!%p5267_p13)
}
  0x13   : > { %s5283_s13 = smov [#allocation2]   ;;  %287 = sbr.rel (%p5340_p2) target bundleno = 1875 (0x753), region = 52 }
  0x14   : > { %4536 = dma.vmem_to_smem (!%p4534_p5), %s242_s9, 16, %s5283_s13, [#allocation3]  }
  0x1a   : > { %5276 = dma.done.wait (%p5344_p3), [#allocation3], 16  }
  0x1b   : > { %5278 = vsyncadd (%p5344_p3), [#allocation3], 4294967280 }
  0x1c   : > { %293 = sfence }
  0x1d   : > { %v362_v0 = vld [vmem:[%s8980_s3] sm:$0xff]  ;;  %v363_v1 = vld [vmem:[%s8980_s3 + $0x8] sm:$0xff]  ;;  %s4268_s18 = sshll.u32 %s4261_s28, 4  ;;  %vm371_vm0 = vcmask 130048   ;;  %s5404_s23 = sld [smem:[#allocation2]] }
  0x1e   : > { %v4495_v2 = vpack.c.bf16 %v363_v1, %v362_v0  ;;  %p328_p0 = scmp.lt.s32.totalorder %s4268_s18, 31  ;;  %v5418_v25 = vld [vmem:[%s8981_s4] ss:$0 sm:$0xff] }
  0x20   : > { %4496 = vmatprep.subr.bf16.mxu0 %v4495_v2  ;;  %s9350_s18 = smov (!%p328_p0, %s4268_s18), 31 }
  0x21   : > { %4498 = vmatpush3.bf16.msra.mxu0 %v4495_v2  ;;  %s5364_s19 = sshll.u32 %s9350_s18, 3 }
  0x22   : > { %s5370_s22 = scalar_lea.vmem %s8978_s1, %s5364_s19  ;;  %s5772_s30 = scalar_lea.vmem %s8979_s2, %s5364_s19 }
  0x23   : > { %v346_v3 = vld [vmem:[%s5370_s22] sm:$0xff]  ;;  %v347_v4 = vld [vmem:[%s5370_s22 + $0x8] sm:$0xff]  ;;  %v348_v5 = vld [vmem:[%s5370_s22 + $0x10] sm:$0xff]  ;;  %v5407_v19 = vstv %s5404_s23  ;;  %s3031_s24 = smul.f32 2.0, %s5404_s23 }
  0x24   : > { %4415 = vmatprep.mubr.msk.f32.mxu0 %vm371_vm0, %v346_v3  ;;  %v349_v6 = vld [vmem:[%s5370_s22 + $0x18] sm:$0xff]  ;;  %v350_v7 = vld [vmem:[%s5370_s22 + $0x20] sm:$0xff]  ;;  %v351_v8 = vld [vmem:[%s5370_s22 + $0x28] sm:$0xff]  ;;  %9040 = vst [vmem:[#allocation5_spill] sm:$0xff] %v5407_v19  ;;  %4548 = vrsqrt.f32 %v5407_v19  ;;  %vm568_vm1 = vcmp.eq.f32.partialorder %v5407_v19, inf  ;;  %v571_v21 = vand.u32 2147483648, %v5407_v19 }
  0x25   : > { %4416 = vmatmul.mubr.msk.f32.vlgmr.msra.gmra.mrb[0].mxu0 %vm371_vm0, %v347_v4  ;;  %v352_v9 = vld [vmem:[%s5370_s22 + $0x30] sm:$0xff]  ;;  %v353_v10 = vld [vmem:[%s5370_s22 + $0x38] sm:$0xff]  ;;  %v354_v11 = vld [vmem:[%s5370_s22 + $0x40] sm:$0xff]  ;;  %vm570_vm2 = vcmp.eq.f32.partialorder %v5407_v19, 0.0 }
  0x26   : > { %4418 = vmatprep.mubr.msk.f32.mxu0 %vm371_vm0, %v348_v5  ;;  %v355_v12 = vld [vmem:[%s5370_s22 + $0x48] sm:$0xff]  ;;  %v356_v13 = vld [vmem:[%s5370_s22 + $0x50] sm:$0xff]  ;;  %v357_v14 = vld [vmem:[%s5370_s22 + $0x58] sm:$0xff] }
  0x27   : > { %v358_v15 = vld [vmem:[%s5370_s22 + $0x60] sm:$0xff]  ;;  %v359_v16 = vld [vmem:[%s5370_s22 + $0x68] sm:$0xff]  ;;  %v360_v17 = vld [vmem:[%s5370_s22 + $0x70] sm:$0xff] }
  0x28   : > { %v361_v18 = vld [vmem:[%s5370_s22 + $0x78] sm:$0xff]  ;;  %s3167_s22 = smul.f32 %s5404_s23, %s5404_s23 }
  0x29   : > { %4419 = vmatmul.mubr.msk.f32.gmra.mrb[2].mxu0 %vm371_vm0, %v349_v6 }
  0x2a   : > { %4421 = vmatprep.mubr.msk.f32.mxu0 %vm371_vm0, %v350_v7 }
  0x2d   : > { %4422 = vmatmul.mubr.msk.f32.gmra.mrb[4].mxu0 %vm371_vm0, %v351_v8 }
  0x2e   : > { %4424 = vmatprep.mubr.msk.f32.mxu0 %vm371_vm0, %v352_v9  ;;  %v4549_v20 = vpop.eup %4548 }
  0x2f   : > { %v567_v22 = vmul.f32 %v4549_v20, %v5407_v19 }
  0x31   : > { %4425 = vmatmul.mubr.msk.f32.gmra.mrb[6].mxu0 %vm371_vm0, %v353_v10  ;;  %v569_v23 = vsel %vm568_vm1, %v5407_v19, %v567_v22 }
  0x32   : > { %4427 = vmatprep.mubr.msk.f32.mxu0 %vm371_vm0, %v354_v11  ;;  %v572_v24 = vsel %vm570_vm2, %v571_v21, %v569_v23 }
  0x33   : > { %4525 = vpush %v572_v24 }
  0x35   : > { %4428 = vmatmul.mubr.msk.f32.gmra.mrb[8].mxu0 %vm371_vm0, %v355_v12 }
  0x36   : > { %4430 = vmatprep.mubr.msk.f32.mxu0 %vm371_vm0, %v356_v13 }
  0x39   : > { %4431 = vmatmul.mubr.msk.f32.gmra.mrb[10].mxu0 %vm371_vm0, %v357_v14 }
  0x3a   : > { %4433 = vmatprep.mubr.msk.f32.mxu0 %vm371_vm0, %v358_v15 }
  0x3d   : > { %4434 = vmatmul.mubr.msk.f32.gmra.mrb[12].mxu0 %vm371_vm0, %v359_v16 }
  0x3e   : > { %4436 = vmatprep.mubr.msk.f32.mxu0 %vm371_vm0, %v360_v17 }
  0x41   : > { %4437 = vmatmul.mubr.msk.f32.gmra.mrb[14].mxu0 %vm371_vm0, %v361_v18 }
  0x64   : > { %s4526_s26 = spop %4525 }
  0xf8   : > { %v4417_v26 = vpop.f32.mrb[0].mxu0 }
  0xf9   : > { %v486_v27 = vpop.f32.mrb[1].mxu0  ;;  %v5421_v28 = vadd.f32 %v4417_v26, %v5418_v25 }
  0xfa   : > { %v5424_v29 = vadd.f32 %v5418_v25, %v486_v27 }
  0xfb   : > { %v575_v36 = vmul.f32 %v5421_v28, %v5421_v28 }
  0xfc   : > { %v4420_v30 = vpop.f32.mrb[2].mxu0  ;;  %v574_v31 = vmul.f32 %v5424_v29, %v5424_v29 }
  0xfd   : > { %v5429_v32 = vadd.f32 %v4420_v30, %v5418_v25  ;;  %v496_v33 = vpop.f32.mrb[3].mxu0  ;;  %v593_v44 = vsel %vm371_vm0, %v575_v36, 0.0 }
  0xfe   : > { %v5432_v34 = vadd.f32 %v5418_v25, %v496_v33  ;;  %v590_v35 = vsel %vm371_vm0, %v574_v31, 0.0 }
  0xff   : > { %591 = vadd.xlane.f32.xlu0 %v590_v35  ;;  %v577_v39 = vmul.f32 %v5429_v32, %v5429_v32 }
 0x100   : > { %v4423_v37 = vpop.f32.mrb[4].mxu0  ;;  %v576_v38 = vmul.f32 %v5432_v34, %v5432_v34 }
 0x101   : > { %v5442_v40 = vadd.f32 %v4423_v37, %v5418_v25  ;;  %v506_v41 = vpop.f32.mrb[5].mxu0  ;;  %v599_v46 = vsel %vm371_vm0, %v577_v39, 0.0 }
 0x102   : > { %v5445_v42 = vadd.f32 %v5418_v25, %v506_v41  ;;  %v596_v43 = vsel %vm371_vm0, %v576_v38, 0.0 }
 0x103   : > { %597 = vadd.xlane.f32.xlu1 %v596_v43  ;;  %594 = vadd.xlane.f32.xlu0 %v593_v44  ;;  %v579_v48 = vmul.f32 %v5442_v40, %v5442_v40 }
 0x104   : > { %v4426_v45 = vpop.f32.mrb[6].mxu0  ;;  %v578_v47 = vmul.f32 %v5445_v42, %v5445_v42 }
 0x105   : > { %v5455_v49 = vadd.f32 %v4426_v45, %v5418_v25  ;;  %v516_v50 = vpop.f32.mrb[7].mxu0  ;;  %v605_v54 = vsel %vm371_vm0, %v579_v48, 0.0 }
 0x106   : > { %v5458_v51 = vadd.f32 %v5418_v25, %v516_v50  ;;  %v602_v52 = vsel %vm371_vm0, %v578_v47, 0.0 }
 0x107   : > { %600 = vadd.xlane.f32.xlu1 %v599_v46  ;;  %603 = vadd.xlane.f32.xlu0 %v602_v52  ;;  %v581_v56 = vmul.f32 %v5455_v49, %v5455_v49 }
 0x108   : > { %v4429_v53 = vpop.f32.mrb[8].mxu0  ;;  %v580_v55 = vmul.f32 %v5458_v51, %v5458_v51 }
 0x109   : > { %v5467_v57 = vadd.f32 %v4429_v53, %v5418_v25  ;;  %v526_v58 = vpop.f32.mrb[9].mxu0  ;;  %v611_v62 = vsel %vm371_vm0, %v581_v56, 0.0 }
 0x10a   : > { %v5470_v59 = vadd.f32 %v5418_v25, %v526_v58  ;;  %v608_v60 = vsel %vm371_vm0, %v580_v55, 0.0 }
 0x10b   : > { %606 = vadd.xlane.f32.xlu1 %v605_v54  ;;  %609 = vadd.xlane.f32.xlu0 %v608_v60  ;;  %v583_v0 = vmul.f32 %v5467_v57, %v5467_v57 }
 0x10c   : > { %v4432_v61 = vpop.f32.mrb[10].mxu0  ;;  %v582_v63 = vmul.f32 %v5470_v59, %v5470_v59 }
 0x10d   : > { %v5479_v1 = vadd.f32 %v4432_v61, %v5418_v25  ;;  %v536_v2 = vpop.f32.mrb[11].mxu0  ;;  %v617_v6 = vsel %vm371_vm0, %v583_v0, 0.0 }
 0x10e   : > { %v5482_v3 = vadd.f32 %v5418_v25, %v536_v2  ;;  %v614_v4 = vsel %vm371_vm0, %v582_v63, 0.0 }
 0x10f   : > { %612 = vadd.xlane.f32.xlu1 %v611_v62  ;;  %615 = vadd.xlane.f32.xlu0 %v614_v4  ;;  %v585_v8 = vmul.f32 %v5479_v1, %v5479_v1 }
 0x110   : > { %v4435_v5 = vpop.f32.mrb[12].mxu0  ;;  %v584_v7 = vmul.f32 %v5482_v3, %v5482_v3 }
 0x111   : > { %v5491_v9 = vadd.f32 %v4435_v5, %v5418_v25  ;;  %v546_v10 = vpop.f32.mrb[13].mxu0  ;;  %v623_v14 = vsel %vm371_vm0, %v585_v8, 0.0 }
 0x112   : > { %v5494_v11 = vadd.f32 %v5418_v25, %v546_v10  ;;  %v620_v12 = vsel %vm371_vm0, %v584_v7, 0.0 }
 0x113   : > { %618 = vadd.xlane.f32.xlu1 %v617_v6  ;;  %621 = vadd.xlane.f32.xlu0 %v620_v12  ;;  %v587_v16 = vmul.f32 %v5491_v9, %v5491_v9 }
 0x114   : > { %v4438_v13 = vpop.f32.mrb[14].mxu0  ;;  %v586_v15 = vmul.f32 %v5494_v11, %v5494_v11 }
 0x115   : > { %v5503_v17 = vadd.f32 %v4438_v13, %v5418_v25  ;;  %v556_v18 = vpop.f32.mrb[15].mxu0  ;;  %v629_v22 = vsel %vm371_vm0, %v587_v16, 0.0 }
 0x116   : > { %v5506_v20 = vadd.f32 %v5418_v25, %v556_v18  ;;  %v626_v21 = vsel %vm371_vm0, %v586_v15, 0.0  ;;  %v5516_v25 = vstv %s4526_s26  ;;  %s8564_s26 = scalar_lea.vmem %s8985_s8, %s5364_s19 }
 0x117   : > { %624 = vadd.xlane.f32.xlu1 %v623_v14  ;;  %627 = vadd.xlane.f32.xlu0 %v626_v21  ;;  %v589_v24 = vmul.f32 %v5503_v17, %v5503_v17  ;;  %4550 = vrcp.f32 %v5516_v25 }
 0x118   : > { %v588_v23 = vmul.f32 %v5506_v20, %v5506_v20 }
 0x119   : > { %v635_v27 = vsel %vm371_vm0, %v589_v24, 0.0 }
 0x11a   : > { %v632_v26 = vsel %vm371_vm0, %v588_v23, 0.0 }
 0x11b   : > { %630 = vadd.xlane.f32.xlu1 %v629_v22  ;;  %633 = vadd.xlane.f32.xlu0 %v632_v26 }
 0x11f   : > { %636 = vadd.xlane.f32.xlu1 %v635_v27 }
 0x121   : > { %v4551_v30 = vpop.eup %4550 }
 0x122   : > { %4527 = vpush %v4551_v30 }
 0x153   : > { %s4528_s17 = spop %4527 }
 0x154   : > { %s1042_s18 = smul.f32 0.996, %s4528_s17 }
 0x18c   : > { %v592_v31 = vpop.xlane.xlu0 %591 }
 0x18d   : > { %4552 = vrsqrt.f32 %v592_v31  ;;  %vm640_vm3 = vcmp.eq.f32.partialorder %v592_v31, inf  ;;  %vm642_vm4 = vcmp.eq.f32.partialorder %v592_v31, 0.0  ;;  %v643_v48 = vand.u32 2147483648, %v592_v31 }
 0x190   : > { %v598_v33 = vpop.xlane.xlu1 %597  ;;  %v595_v35 = vpop.xlane.xlu0 %594 }
 0x191   : > { %4554 = vrsqrt.f32 %v598_v33  ;;  %vm654_vm5 = vcmp.eq.f32.partialorder %v598_v33, inf  ;;  %vm656_vm6 = vcmp.eq.f32.partialorder %v598_v33, 0.0  ;;  %v657_v56 = vand.u32 2147483648, %v598_v33 }
 0x192   : > { %4556 = vrsqrt.f32 %v595_v35  ;;  %vm647_vm7 = vcmp.eq.f32.partialorder %v595_v35, inf  ;;  %vm649_vm8 = vcmp.eq.f32.partialorder %v595_v35, 0.0  ;;  %v650_v61 = vand.u32 2147483648, %v595_v35 }
 0x194   : > { %v5519_v36 = vpop.xlane.xlu1 %600  ;;  %v5521_v37 = vpop.xlane.xlu0 %603 }
 0x195   : > { %4558 = vrsqrt.f32 %v5519_v36  ;;  %vm661_vm9 = vcmp.eq.f32.partialorder %v5519_v36, inf  ;;  %vm663_vm10 = vcmp.eq.f32.partialorder %v5519_v36, 0.0  ;;  %v664_v62 = vand.u32 2147483648, %v5519_v36 }
 0x196   : > { %4560 = vrsqrt.f32 %v5521_v37  ;;  %vm668_vm11 = vcmp.eq.f32.partialorder %v5521_v37, inf  ;;  %vm670_vm12 = vcmp.eq.f32.partialorder %v5521_v37, 0.0  ;;  %v671_v8 = vand.u32 2147483648, %v5521_v37 }
 0x197   : > { %v4553_v38 = vpop.eup %4552 }
 0x198   : > { %v5525_v39 = vpop.xlane.xlu1 %606  ;;  %v5527_v41 = vpop.xlane.xlu0 %609  ;;  %v639_v44 = vmul.f32 %v4553_v38, %v592_v31 }
 0x199   : > { %4562 = vrsqrt.f32 %v5525_v39  ;;  %vm675_vm13 = vcmp.eq.f32.partialorder %v5525_v39, inf  ;;  %v678_v10 = vand.u32 2147483648, %v5525_v39  ;;  %vm682_vm14 = vcmp.eq.f32.partialorder %v5527_v41, inf }
 0x19a   : > { %4564 = vrsqrt.f32 %v5527_v41  ;;  %v641_v52 = vsel %vm640_vm3, %v592_v31, %v639_v44  ;;  %vm677_vm15 = vcmp.eq.f32.partialorder %v5525_v39, 0.0  ;;  %vm684_vm1 = vcmp.eq.f32.partialorder %v5527_v41, 0.0 }
 0x19b   : > { %v4555_v43 = vpop.eup %4554  ;;  %v644_v63 = vsel %vm642_vm4, %v643_v48, %v641_v52  ;;  %v685_v15 = vand.u32 2147483648, %v5527_v41 }
 0x19c   : > { %v4557_v45 = vpop.eup %4556  ;;  %v5531_v46 = vpop.xlane.xlu1 %612  ;;  %v653_v53 = vmul.f32 %v4555_v43, %v598_v33  ;;  %v750_v14 = vmax.f32 %v644_v63, 1e-15 }
 0x19d   : > { %v5533_v47 = vpop.xlane.xlu0 %615  ;;  %4566 = vrsqrt.f32 %v5531_v46  ;;  %v646_v54 = vmul.f32 %v4557_v45, %v595_v35  ;;  %vm689_vm2 = vcmp.eq.f32.partialorder %v5531_v46, inf  ;;  %v692_v30 = vand.u32 2147483648, %v5531_v46 }
 0x19e   : > { %4568 = vrsqrt.f32 %v5533_v47  ;;  %v655_v4 = vsel %vm654_vm5, %v598_v33, %v653_v53  ;;  %vm696_vm3 = vcmp.eq.f32.partialorder %v5533_v47, inf  ;;  %vm698_vm4 = vcmp.eq.f32.partialorder %v5533_v47, 0.0 }
 0x19f   : > { %v4559_v50 = vpop.eup %4558  ;;  %v648_v5 = vsel %vm647_vm7, %v595_v35, %v646_v54  ;;  %v658_v16 = vsel %vm656_vm6, %v657_v56, %v655_v4  ;;  %v699_v31 = vand.u32 2147483648, %v5533_v47  ;;  %vm691_vm5 = vcmp.eq.f32.partialorder %v5531_v46, 0.0 }
 0x1a0   : > { %v4561_v55 = vpop.eup %4560  ;;  %v5537_v58 = vpop.xlane.xlu1 %618  ;;  %v660_v0 = vmul.f32 %v4559_v50, %v5519_v36  ;;  %v651_v18 = vsel %vm649_vm8, %v650_v61, %v648_v5  ;;  %v752_v35 = vmax.f32 %v658_v16, 1e-15  ;;  %v767_v44 = vmul.f32 %v5516_v25, %v750_v14 }
 0x1a1   : > { %v5539_v60 = vpop.xlane.xlu0 %621  ;;  %4570 = vrsqrt.f32 %v5537_v58  ;;  %v667_v6 = vmul.f32 %v4561_v55, %v5521_v37  ;;  %v751_v38 = vmax.f32 %v651_v18, 1e-15  ;;  %vm703_vm6 = vcmp.eq.f32.partialorder %v5537_v58, inf }
 0x1a2   : > { %4572 = vrsqrt.f32 %v5539_v60  ;;  %v662_v21 = vsel %vm661_vm9, %v5519_v36, %v660_v0  ;;  %vm705_vm7 = vcmp.eq.f32.partialorder %v5537_v58, 0.0  ;;  %v706_v55 = vand.u32 2147483648, %v5537_v58 }
 0x1a3   : > { %v4563_v2 = vpop.eup %4562  ;;  %v669_v23 = vsel %vm668_vm11, %v5521_v37, %v667_v6  ;;  %v665_v43 = vsel %vm663_vm10, %v664_v62, %v662_v21  ;;  %vm710_vm8 = vcmp.eq.f32.partialorder %v5539_v60, inf  ;;  %v713_v61 = vand.u32 2147483648, %v5539_v60 }
 0x1a4   : > { %v4565_v7 = vpop.eup %4564  ;;  %v5555_v12 = vpop.xlane.xlu1 %624  ;;  %v674_v24 = vmul.f32 %v4563_v2, %v5525_v39  ;;  %v672_v45 = vsel %vm670_vm12, %v671_v8, %v669_v23  ;;  %v753_v54 = vmax.f32 %v665_v43, 1e-15  ;;  %vm712_vm10 = vcmp.eq.f32.partialorder %v5539_v60, 0.0 }
 0x1a5   : > { %v5557_v13 = vpop.xlane.xlu0 %627  ;;  %4574 = vrsqrt.f32 %v5555_v12  ;;  %v681_v26 = vmul.f32 %v4565_v7, %v5527_v41  ;;  %v754_v56 = vmax.f32 %v672_v45, 1e-15  ;;  %vm717_vm9 = vcmp.eq.f32.partialorder %v5555_v12, inf }
 0x1a6   : > { %4576 = vrsqrt.f32 %v5557_v13  ;;  %v676_v36 = vsel %vm675_vm13, %v5525_v39, %v674_v24  ;;  %v769_v39 = vmul.f32 %v5516_v25, %v752_v35  ;;  %vm719_vm11 = vcmp.eq.f32.partialorder %v5555_v12, 0.0 }
 0x1a7   : > { %v4567_v22 = vpop.eup %4566  ;;  %v683_v52 = vsel %vm682_vm14, %v5527_v41, %v681_v26  ;;  %v679_v63 = vsel %vm677_vm15, %v678_v10, %v676_v36  ;;  %v720_v41 = vand.u32 2147483648, %v5555_v12  ;;  %v768_v8 = vmul.f32 %v5516_v25, %v751_v38 }
 0x1a8   : > { %v4569_v27 = vpop.eup %4568  ;;  %v5579_v33 = vpop.xlane.xlu1 %630  ;;  %v688_v48 = vmul.f32 %v4567_v22, %v5531_v46  ;;  %v686_v0 = vsel %vm684_vm1, %v685_v15, %v683_v52  ;;  %v755_v10 = vmax.f32 %v679_v63, 1e-15  ;;  %v770_v15 = vmul.f32 %v5516_v25, %v753_v54 }
 0x1a9   : > { %v5590_v50 = vpop.xlane.xlu0 %633  ;;  %v695_v53 = vmul.f32 %v4569_v27, %v5533_v47  ;;  %4578 = vrsqrt.f32 %v5579_v33  ;;  %v756_v14 = vmax.f32 %v686_v0, 1e-15  ;;  %v771_v24 = vmul.f32 %v5516_v25, %v754_v56 }
 0x1aa   : > { %4580 = vrsqrt.f32 %v5590_v50  ;;  %v690_v2 = vsel %vm689_vm2, %v5531_v46, %v688_v48  ;;  %vm724_vm12 = vcmp.eq.f32.partialorder %v5557_v13, inf  ;;  %vm726_vm13 = vcmp.eq.f32.partialorder %v5557_v13, 0.0 }
 0x1ab   : > { %v4571_v37 = vpop.eup %4570  ;;  %4582 = vtanh.f32 %v767_v44  ;;  %v697_v5 = vsel %vm696_vm3, %v5533_v47, %v695_v53  ;;  %v693_v16 = vsel %vm691_vm5, %v692_v30, %v690_v2  ;;  %v727_v46 = vand.u32 2147483648, %v5557_v13 }
 0x1ac   : > { %v5606_v62 = vpop.xlane.xlu1 %636  ;;  %v4573_v4 = vpop.eup %4572  ;;  %v702_v6 = vmul.f32 %v4571_v37, %v5537_v58  ;;  %4584 = vrcp.f32 %v767_v44  ;;  %v700_v18 = vsel %vm698_vm4, %v699_v31, %v697_v5  ;;  %v757_v47 = vmax.f32 %v693_v16, 1e-15 }
 0x1ad   : > { %4586 = vrsqrt.f32 %v5606_v62  ;;  %v709_v21 = vmul.f32 %v4573_v4, %v5539_v60  ;;  %vm731_vm14 = vcmp.eq.f32.partialorder %v5579_v33, inf  ;;  %v772_v27 = vmul.f32 %v5516_v25, %v755_v10 }
 0x1ae   : > { %4588 = vtanh.f32 %v769_v39  ;;  %v704_v22 = vsel %vm703_vm6, %v5537_v58, %v702_v6  ;;  %v758_v31 = vmax.f32 %v700_v18, 1e-15  ;;  %vm733_vm15 = vcmp.eq.f32.partialorder %v5579_v33, 0.0 }
 0x1af   : > { %v4575_v7 = vpop.eup %4574  ;;  %4590 = vrcp.f32 %v769_v39  ;;  %v707_v35 = vsel %vm705_vm7, %v706_v55, %v704_v22  ;;  %v711_v38 = vsel %vm710_vm8, %v5539_v60, %v709_v21  ;;  %v773_v48 = vmul.f32 %v5516_v25, %v756_v14 }
 0x1b0   : > { %v716_v23 = vmul.f32 %v4575_v7, %v5555_v12  ;;  %4592 = vtanh.f32 %v768_v8  ;;  %v4577_v26 = vpop.eup %4576  ;;  %v734_v58 = vand.u32 2147483648, %v5579_v33  ;;  %vm738_vm1 = vcmp.eq.f32.partialorder %v5590_v50, inf }
 0x1b1   : > { %4594 = vrcp.f32 %v768_v8  ;;  %v723_v45 = vmul.f32 %v4577_v26, %v5557_v13  ;;  %v741_v52 = vand.u32 2147483648, %v5590_v50  ;;  %v759_v37 = vmax.f32 %v707_v35, 1e-15 }
 0x1b2   : > { %4596 = vtanh.f32 %v770_v15  ;;  %v718_v44 = vsel %vm717_vm9, %v5555_v12, %v716_v23  ;;  %v714_v54 = vsel %vm712_vm10, %v713_v61, %v711_v38  ;;  %vm740_vm2 = vcmp.eq.f32.partialorder %v5590_v50, 0.0 }
 0x1b3   : > { %v4579_v30 = vpop.eup %4578  ;;  %4598 = vrcp.f32 %v770_v15  ;;  %v774_v55 = vmul.f32 %v5516_v25, %v757_v47  ;;  %v721_v63 = vsel %vm719_vm11, %v720_v41, %v718_v44  ;;  %vm745_vm3 = vcmp.eq.f32.partialorder %v5606_v62, inf }
 0x1b4   : > { %v4581_v43 = vpop.eup %4580  ;;  %4600 = vtanh.f32 %v771_v24  ;;  %v725_v4 = vsel %vm724_vm12, %v5557_v13, %v723_v45  ;;  %v730_v60 = vmul.f32 %v4579_v30, %v5579_v33  ;;  %vm747_vm4 = vcmp.eq.f32.partialorder %v5606_v62, 0.0 }
 0x1b5   : > { %v4583_v36 = vpop.eup %4582  ;;  %4602 = vrcp.f32 %v771_v24  ;;  %v775_v61 = vmul.f32 %v5516_v25, %v758_v31  ;;  %v760_v6 = vmax.f32 %v714_v54, 1e-15  ;;  %v737_v12 = vmul.f32 %v4581_v43, %v5590_v50 }
 0x1b6   : > { %v4585_v53 = vpop.eup %4584  ;;  %4604 = vtanh.f32 %v772_v27  ;;  %v761_v41 = vmax.f32 %v721_v63, 1e-15  ;;  %v776_v10 = vmul.f32 %v5516_v25, %v759_v37  ;;  %v728_v15 = vsel %vm726_vm13, %v727_v46, %v725_v4 }
 0x1b7   : > { %v4587_v56 = vpop.eup %4586  ;;  %v815_v0 = vmul.f32 %v4585_v53, %v4583_v36  ;;  %4606 = vrcp.f32 %v772_v27  ;;  %v739_v13 = vsel %vm738_vm1, %v5590_v50, %v737_v12  ;;  %v777_v46 = vmul.f32 %v5516_v25, %v760_v6 }
 0x1b8   : > { %v4589_v2 = vpop.eup %4588  ;;  %4608 = vtanh.f32 %v773_v48  ;;  %v744_v16 = vmul.f32 %v4587_v56, %v5606_v62  ;;  %v748_v43 = vand.u32 2147483648, %v5606_v62  ;;  %v778_v37 = vmul.f32 %v5516_v25, %v761_v41 }
 0x1b9   : > { %v4591_v5 = vpop.eup %4590  ;;  %v5670_v39 = vmul.f32 %v815_v0, %v5424_v29  ;;  %4610 = vrcp.f32 %v773_v48  ;;  %v732_v29 = vsel %vm731_vm14, %v5579_v33, %v730_v60  ;;  %v762_v33 = vmax.f32 %v728_v15, 1e-15 }
 0x1ba   : > { %v4593_v7 = vpop.eup %4592  ;;  %v817_v8 = vmul.f32 %v4591_v5, %v4589_v2  ;;  %4612 = vtanh.f32 %v774_v55  ;;  %v735_v35 = vsel %vm733_vm15, %v734_v58, %v732_v29  ;;  %v746_v38 = vsel %vm745_vm3, %v5606_v62, %v744_v16 }
 0x1bb   : > { %v4595_v14 = vpop.eup %4594  ;;  %v847_v18 = vmul.f32 %v5670_v39, %v5670_v39  ;;  %4614 = vrcp.f32 %v774_v55  ;;  %v742_v58 = vsel %vm740_vm2, %v741_v52, %v739_v13  ;;  %v763_v2 = vmax.f32 %v735_v35, 1e-15 }
 0x1bc   : > { %v4597_v21 = vpop.eup %4596  ;;  %v5682_v22 = vmul.f32 %v817_v8, %v5432_v34  ;;  %v816_v23 = vmul.f32 %v4595_v14, %v4593_v7  ;;  %4616 = vtanh.f32 %v775_v61  ;;  %v749_v50 = vsel %vm747_vm4, %v748_v43, %v746_v38 }
 0x1bd   : > { %v4599_v24 = vpop.eup %4598  ;;  %v863_v26 = vsel %vm371_vm0, %v847_v18, 0.0  ;;  %4618 = vrcp.f32 %v775_v61  ;;  %v764_v6 = vmax.f32 %v742_v58, 1e-15  ;;  %v779_v12 = vmul.f32 %v5516_v25, %v762_v33 }
 0x1be   : > { %v4601_v47 = vpop.eup %4600  ;;  %864 = vadd.xlane.f32.xlu0 %v863_v26  ;;  %v849_v27 = vmul.f32 %v5682_v22, %v5682_v22  ;;  %v5692_v34 = vmul.f32 %v816_v23, %v5421_v28  ;;  %v818_v30 = vmul.f32 %v4599_v24, %v4597_v21  ;;  %4620 = vtanh.f32 %v776_v10 }
 0x1bf   : > { %v4603_v31 = vpop.eup %4602  ;;  %4622 = vrcp.f32 %v776_v10  ;;  %v765_v15 = vmax.f32 %v749_v50, 1e-15  ;;  %v781_v24 = vmul.f32 %v5516_v25, %v764_v6 }
 0x1c0   : > { %v4605_v44 = vpop.eup %4604  ;;  %v869_v45 = vsel %vm371_vm0, %v849_v27, 0.0  ;;  %v848_v28 = vmul.f32 %v5692_v34, %v5692_v34  ;;  %v5704_v48 = vmul.f32 %v818_v30, %v5429_v32  ;;  %v819_v36 = vmul.f32 %v4603_v31, %v4601_v47 }
 0x1c1   : > { %v4607_v53 = vpop.eup %4606  ;;  %4624 = vtanh.f32 %v777_v46 }
 0x1c2   : > { %v4609_v54 = vpop.eup %4608  ;;  %870 = vadd.xlane.f32.xlu0 %v869_v45  ;;  %v866_v55 = vsel %vm371_vm0, %v848_v28, 0.0  ;;  %v850_v56 = vmul.f32 %v5704_v48, %v5704_v48  ;;  %v5715_v32 = vmul.f32 %v819_v36, %v5445_v42  ;;  %v820_v63 = vmul.f32 %v4607_v53, %v4605_v44 }
 0x1c3   : > { %v4611_v0 = vpop.eup %4610  ;;  %867 = vadd.xlane.f32.xlu1 %v866_v55  ;;  %4626 = vrcp.f32 %v777_v46 }
 0x1c4   : > { %v4613_v52 = vpop.eup %4612  ;;  %v872_v4 = vsel %vm371_vm0, %v850_v56, 0.0  ;;  %v851_v60 = vmul.f32 %v5715_v32, %v5715_v32  ;;  %v5723_v61 = vmul.f32 %v820_v63, %v5442_v40  ;;  %v821_v5 = vmul.f32 %v4611_v0, %v4609_v54 }
 0x1c5   : > { %v4615_v42 = vpop.eup %4614  ;;  %4628 = vtanh.f32 %v778_v37  ;;  %v780_v40 = vmul.f32 %v5516_v25, %v763_v2  ;;  %v1124_v2 = vld [vmem:[%s5772_s30] sm:$0xff] }
 0x1c6   : > { %v4617_v7 = vpop.eup %4616  ;;  %v875_v62 = vsel %vm371_vm0, %v851_v60, 0.0  ;;  %v852_v41 = vmul.f32 %v5723_v61, %v5723_v61  ;;  %v5730_v8 = vmul.f32 %v821_v5, %v5458_v51  ;;  %v822_v10 = vmul.f32 %v4615_v42, %v4613_v52  ;;  %4443 = vmatprep.mubr.msk.f32.mxu0 %vm371_vm0, %v1124_v2 }
 0x1c7   : > { %v4619_v14 = vpop.eup %4618  ;;  %873 = vadd.xlane.f32.xlu1 %v872_v4  ;;  %876 = vadd.xlane.f32.xlu0 %v875_v62  ;;  %4630 = vrcp.f32 %v778_v37 }
 0x1c8   : > { %v4621_v16 = vpop.eup %4620  ;;  %v878_v18 = vsel %vm371_vm0, %v852_v41, 0.0  ;;  %v853_v21 = vmul.f32 %v5730_v8, %v5730_v8  ;;  %v5737_v29 = vmul.f32 %v822_v10, %v5455_v49  ;;  %v823_v23 = vmul.f32 %v4619_v14, %v4617_v7  ;;  %v1125_v14 = vld [vmem:[%s5772_s30 + $0x8] sm:$0xff] }
 0x1c9   : > { %v4623_v51 = vpop.eup %4622  ;;  %4632 = vtanh.f32 %v779_v12  ;;  %v782_v49 = vmul.f32 %v5516_v25, %v765_v15 }
 0x1ca   : > { %v881_v13 = vsel %vm371_vm0, %v853_v21, 0.0  ;;  %v854_v26 = vmul.f32 %v5737_v29, %v5737_v29  ;;  %v5744_v46 = vmul.f32 %v823_v23, %v5470_v59  ;;  %v824_v47 = vmul.f32 %v4623_v51, %v4621_v16  ;;  %v1510_v23 = vld [vmem:[%s8983_s6] sm:$0xff]  ;;  %v1511_v51 = vld [vmem:[%s8983_s6 + $0x8] sm:$0xff] }
 0x1cb   : > { %v4625_v27 = vpop.eup %4624  ;;  %879 = vadd.xlane.f32.xlu1 %v878_v18  ;;  %882 = vadd.xlane.f32.xlu0 %v881_v13  ;;  %4634 = vrcp.f32 %v779_v12  ;;  %v1204_v16 = vmul.f32 %v1124_v2, %v1124_v2  ;;  %v1126_v18 = vld [vmem:[%s5772_s30 + $0x10] sm:$0xff]  ;;  %v1127_v13 = vld [vmem:[%s5772_s30 + $0x18] sm:$0xff] }
 0x1cc   : > { %v884_v30 = vsel %vm371_vm0, %v854_v26, 0.0  ;;  %v855_v31 = vmul.f32 %v5744_v46, %v5744_v46  ;;  %v5751_v35 = vmul.f32 %v824_v47, %v5467_v57  ;;  %4636 = vtanh.f32 %v780_v40 }
 0x1cd   : > { %v4627_v38 = vpop.eup %4626  ;;  %4638 = vrcp.f32 %v780_v40  ;;  %v1220_v47 = vsel %vm371_vm0, %v1204_v16, 0.0 }
 0x1ce   : > { %v887_v59 = vsel %vm371_vm0, %v855_v31, 0.0  ;;  %v856_v43 = vmul.f32 %v5751_v35, %v5751_v35  ;;  %v825_v44 = vmul.f32 %v4627_v38, %v4625_v27  ;;  %4640 = vtanh.f32 %v781_v24  ;;  %v1132_v38 = vld [vmem:[%s5772_s30 + $0x40] sm:$0xff] }
 0x1cf   : > { %v4629_v45 = vpop.eup %4628  ;;  %885 = vadd.xlane.f32.xlu1 %v884_v30  ;;  %888 = vadd.xlane.f32.xlu0 %v887_v59  ;;  %4642 = vrcp.f32 %v781_v24  ;;  %v1205_v24 = vmul.f32 %v1125_v14, %v1125_v14  ;;  %v1206_v27 = vmul.f32 %v1126_v18, %v1126_v18  ;;  %v1207_v31 = vmul.f32 %v1127_v13, %v1127_v13  ;;  %v1129_v59 = vld [vmem:[%s5772_s30 + $0x28] sm:$0xff] }
 0x1d0   : > { %v890_v28 = vsel %vm371_vm0, %v856_v43, 0.0  ;;  %v5758_v57 = vmul.f32 %v825_v44, %v5482_v3  ;;  %4644 = vtanh.f32 %v782_v49  ;;  %4455 = vmatprep.mubr.msk.f32.mxu1 %vm371_vm0, %v1132_v38  ;;  %v1212_v2 = vmul.f32 %v1132_v38, %v1132_v38 }
 0x1d1   : > { %v4631_v36 = vpop.eup %4630  ;;  %4646 = vrcp.f32 %v782_v49  ;;  %v1128_v49 = vld [vmem:[%s5772_s30 + $0x20] sm:$0xff]  ;;  %v1223_v30 = vsel %vm371_vm0, %v1205_v24, 0.0  ;;  %v1226_v43 = vsel %vm371_vm0, %v1206_v27, 0.0 }
 0x1d2   : > { %v857_v53 = vmul.f32 %v5758_v57, %v5758_v57  ;;  %v826_v33 = vmul.f32 %v4631_v36, %v4629_v45  ;;  %v1208_v44 = vmul.f32 %v1128_v49, %v1128_v49  ;;  %v1133_v45 = vld [vmem:[%s5772_s30 + $0x48] sm:$0xff]  ;;  %v1229_v36 = vsel %vm371_vm0, %v1207_v31, 0.0 }
 0x1d3   : > { %v4633_v58 = vpop.eup %4632  ;;  %891 = vadd.xlane.f32.xlu1 %v890_v28  ;;  %v1130_v28 = vld [vmem:[%s5772_s30 + $0x30] sm:$0xff] }
 0x1d4   : > { %v893_v37 = vsel %vm371_vm0, %v857_v53, 0.0  ;;  %v5764_v54 = vmul.f32 %v826_v33, %v5479_v1  ;;  %v1209_v53 = vmul.f32 %v1129_v59, %v1129_v59  ;;  %v1134_v33 = vld [vmem:[%s5772_s30 + $0x50] sm:$0xff] }
 0x1d5   : > { %v4635_v55 = vpop.eup %4634  ;;  %894 = vadd.xlane.f32.xlu0 %v893_v37  ;;  %v1232_v37 = vsel %vm371_vm0, %v1208_v44, 0.0  ;;  %v5872_v44 = vstv %s1042_s18 }
 0x1d6   : > { %v4637_v56 = vpop.eup %4636  ;;  %v858_v3 = vmul.f32 %v5764_v54, %v5764_v54  ;;  %v827_v63 = vmul.f32 %v4635_v55, %v4633_v58  ;;  %v1131_v58 = vld [vmem:[%s5772_s30 + $0x38] sm:$0xff]  ;;  %v1210_v55 = vmul.f32 %v1130_v28, %v1130_v28  ;;  %9041 = vst [vmem:[#allocation6_spill] sm:$0xff] %v5872_v44 }
 0x1d7   : > { %v4639_v0 = vpop.eup %4638 }
 0x1d8   : > { %v4641_v50 = vpop.eup %4640  ;;  %v896_v52 = vsel %vm371_vm0, %v858_v3, 0.0  ;;  %v5777_v1 = vmul.f32 %v827_v63, %v5494_v11  ;;  %v828_v4 = vmul.f32 %v4639_v0, %v4637_v56  ;;  %v1135_v56 = vld [vmem:[%s5772_s30 + $0x58] sm:$0xff]  ;;  %v1235_v3 = vsel %vm371_vm0, %v1209_v53, 0.0  ;;  %v1136_v0 = vld [vmem:[%s5772_s30 + $0x60] sm:$0xff] }
 0x1d9   : > { %v4643_v60 = vpop.eup %4642  ;;  %897 = vadd.xlane.f32.xlu1 %v896_v52  ;;  %v1211_v63 = vmul.f32 %v1131_v58, %v1131_v58  ;;  %v1509_v52 = vld [vmem:[%s8982_s5 + $0x8] sm:$0xff]  ;;  %v1216_v16 = vmul.f32 %v1136_v0, %v1136_v0 }
 0x1da   : > { %v4645_v5 = vpop.eup %4644  ;;  %v859_v42 = vmul.f32 %v5777_v1, %v5777_v1  ;;  %v5783_v6 = vmul.f32 %v828_v4, %v5491_v9  ;;  %v829_v12 = vmul.f32 %v4643_v60, %v4641_v50  ;;  %v1508_v50 = vld [vmem:[%s8982_s5] sm:$0xff]  ;;  %v1238_v4 = vsel %vm371_vm0, %v1210_v55, 0.0  ;;  %v1137_v60 = vld [vmem:[%s5772_s30 + $0x68] sm:$0xff] }
 0x1db   : > { %v4647_v7 = vpop.eup %4646 }
 0x1dc   : > { %v899_v62 = vsel %vm371_vm0, %v859_v42, 0.0  ;;  %v860_v11 = vmul.f32 %v5783_v6, %v5783_v6  ;;  %v5789_v41 = vmul.f32 %v829_v12, %v5506_v20  ;;  %v830_v10 = vmul.f32 %v4647_v7, %v4645_v5  ;;  %v5847_v7 = vld [vmem:[%s5772_s30 + $0x70] sm:$0xff] }
 0x1dd   : > { %900 = vadd.xlane.f32.xlu0 %v899_v62  ;;  %v4503_v5 = vpack.c.bf16 %v1509_v52, %v1508_v50  ;;  %v1241_v42 = vsel %vm371_vm0, %v1211_v63, 0.0  ;;  %v1213_v12 = vmul.f32 %v1133_v45, %v1133_v45  ;;  %v1244_v62 = vsel %vm371_vm0, %v1212_v2, 0.0 }
 0x1de   : > { %v902_v15 = vsel %vm371_vm0, %v860_v11, 0.0  ;;  %v861_v9 = vmul.f32 %v5789_v41, %v5789_v41  ;;  %v5796_v40 = vmul.f32 %v830_v10, %v5503_v17  ;;  %v4499_v17 = vpack.c.bf16 %v1511_v51, %v1510_v23  ;;  %v5853_v10 = vld [vmem:[%s5772_s30 + $0x78] sm:$0xff] }
 0x1df   : > { %903 = vadd.xlane.f32.xlu1 %v902_v15  ;;  %v1214_v11 = vmul.f32 %v1134_v33, %v1134_v33  ;;  %v1215_v15 = vmul.f32 %v1135_v56, %v1135_v56 }
 0x1e0   : > { %v905_v21 = vsel %vm371_vm0, %v861_v9, 0.0  ;;  %v862_v20 = vmul.f32 %v5796_v40, %v5796_v40  ;;  %4500 = vmatprep.subr.bf16.mxu0 %v4499_v17  ;;  %4507 = vmatprep.subr.bf16.mxu1 %v4499_v17 }
 0x1e1   : > { %906 = vadd.xlane.f32.xlu0 %v905_v21  ;;  %4502 = vmatpush3.bf16.msra.mxu0 %v4499_v17  ;;  %v1250_v9 = vsel %vm371_vm0, %v1214_v11, 0.0  ;;  %v1217_v21 = vmul.f32 %v1137_v60, %v1137_v60 }
 0x1e2   : > { %v908_v26 = vsel %vm371_vm0, %v862_v20, 0.0  ;;  %4508 = vmatpush3.bf16.msra.mxu1 %v4499_v17  ;;  %v1256_v20 = vsel %vm371_vm0, %v1216_v16, 0.0 }
 0x1e3   : > { %909 = vadd.xlane.f32.xlu1 %v908_v26  ;;  %4504 = vmatprep.subr.bf16.mxu1 %v4503_v5  ;;  %v1259_v23 = vsel %vm371_vm0, %v1217_v21, 0.0 }
 0x1e4   : > { %4444 = vmatmul.mubr.msk.f32.vlgmr.msra.gmra.mrb[16].mxu0 %vm371_vm0, %v1125_v14  ;;  %v1247_v14 = vsel %vm371_vm0, %v1213_v12, 0.0 }
 0x1e5   : > { %1221 = vadd.xlane.f32.xlu0 %v1220_v47  ;;  %4456 = vmatmul.mubr.msk.f32.vlgmr.msra.gmra.mrb[0].mxu1 %vm371_vm0, %v1133_v45 }
 0x1e6   : > { %4446 = vmatprep.mubr.msk.f32.mxu0 %vm371_vm0, %v1126_v18  ;;  %4458 = vmatprep.mubr.msk.f32.mxu1 %vm371_vm0, %v1134_v33  ;;  %v1253_v18 = vsel %vm371_vm0, %v1215_v15, 0.0 }
 0x1e7   : > { %1224 = vadd.xlane.f32.xlu1 %v1223_v30  ;;  %4506 = vmatpush3.bf16.msra.mxu1 %v4503_v5 }
 0x1e8   : > { %4447 = vmatmul.mubr.msk.f32.gmra.mrb[18].mxu0 %vm371_vm0, %v1127_v13 }
 0x1e9   : > { %1227 = vadd.xlane.f32.xlu0 %v1226_v43  ;;  %4459 = vmatmul.mubr.msk.f32.gmra.mrb[2].mxu1 %vm371_vm0, %v1135_v56 }
 0x1ea   : > { %4449 = vmatprep.mubr.msk.f32.mxu0 %vm371_vm0, %v1128_v49  ;;  %4461 = vmatprep.mubr.msk.f32.mxu1 %vm371_vm0, %v1136_v0 }
 0x1eb   : > { %1230 = vadd.xlane.f32.xlu1 %v1229_v36 }
 0x1ec   : > { %4450 = vmatmul.mubr.msk.f32.gmra.mrb[20].mxu0 %vm371_vm0, %v1129_v59 }
 0x1ed   : > { %1233 = vadd.xlane.f32.xlu0 %v1232_v37  ;;  %4462 = vmatmul.mubr.msk.f32.gmra.mrb[4].mxu1 %vm371_vm0, %v1137_v60 }
 0x1ee   : > { %4452 = vmatprep.mubr.msk.f32.mxu0 %vm371_vm0, %v1130_v28  ;;  %4464 = vmatprep.mubr.msk.f32.mxu1 %vm371_vm0, %v5847_v7 }
 0x1ef   : > { %1236 = vadd.xlane.f32.xlu1 %v1235_v3 }
 0x1f0   : > { %4453 = vmatmul.mubr.msk.f32.gmra.mrb[22].mxu0 %vm371_vm0, %v1131_v58 }
 0x1f1   : > { %1239 = vadd.xlane.f32.xlu0 %v1238_v4  ;;  %4465 = vmatmul.mubr.msk.f32.gmra.mrb[6].mxu1 %vm371_vm0, %v5853_v10 }
 0x1f3   : > { %1242 = vadd.xlane.f32.xlu1 %v1241_v42 }
 0x1f5   : > { %1245 = vadd.xlane.f32.xlu0 %v1244_v62 }
 0x1f7   : > { %1248 = vadd.xlane.f32.xlu1 %v1247_v14 }
 0x1f9   : > { %1251 = vadd.xlane.f32.xlu0 %v1250_v9 }
 0x1fb   : > { %1254 = vadd.xlane.f32.xlu1 %v1253_v18 }
 0x1fd   : > { %1257 = vadd.xlane.f32.xlu0 %v1256_v20 }
 0x1ff   : > { %1260 = vadd.xlane.f32.xlu1 %v1259_v23 }
 0x24b   : > { %v865_v51 = vpop.xlane.xlu0 %864 }
 0x24c   : > { %4648 = vrsqrt.f32 %v865_v51  ;;  %vm913_vm5 = vcmp.eq.f32.partialorder %v865_v51, inf  ;;  %v916_v31 = vand.u32 2147483648, %v865_v51  ;;  %vm915_vm6 = vcmp.eq.f32.partialorder %v865_v51, 0.0 }
 0x24f   : > { %v871_v24 = vpop.xlane.xlu0 %870 }
 0x250   : > { %v868_v17 = vpop.xlane.xlu1 %867  ;;  %4650 = vrsqrt.f32 %v871_v24  ;;  %vm927_vm7 = vcmp.eq.f32.partialorder %v871_v24, inf  ;;  %v930_v53 = vand.u32 2147483648, %v871_v24  ;;  %vm929_vm8 = vcmp.eq.f32.partialorder %v871_v24, 0.0 }
 0x251   : > { %4652 = vrsqrt.f32 %v868_v17  ;;  %vm920_vm9 = vcmp.eq.f32.partialorder %v868_v17, inf  ;;  %vm922_vm10 = vcmp.eq.f32.partialorder %v868_v17, 0.0  ;;  %v923_v55 = vand.u32 2147483648, %v868_v17 }
 0x254   : > { %v874_v13 = vpop.xlane.xlu1 %873  ;;  %v5863_v26 = vpop.xlane.xlu0 %876 }
 0x255   : > { %4654 = vrsqrt.f32 %v874_v13  ;;  %vm934_vm11 = vcmp.eq.f32.partialorder %v874_v13, inf  ;;  %v937_v3 = vand.u32 2147483648, %v874_v13  ;;  %vm941_vm12 = vcmp.eq.f32.partialorder %v5863_v26, inf }
 0x256   : > { %v4649_v47 = vpop.eup %4648  ;;  %4656 = vrsqrt.f32 %v5863_v26  ;;  %v944_v60 = vand.u32 2147483648, %v5863_v26  ;;  %vm936_vm13 = vcmp.eq.f32.partialorder %v874_v13, 0.0  ;;  %vm943_vm14 = vcmp.eq.f32.partialorder %v5863_v26, 0.0 }
 0x257   : > { %v912_v27 = vmul.f32 %v4649_v47, %v865_v51 }
 0x258   : > { %v5866_v49 = vpop.xlane.xlu1 %879  ;;  %v5868_v30 = vpop.xlane.xlu0 %882 }
 0x259   : > { %4658 = vrsqrt.f32 %v5866_v49  ;;  %v914_v59 = vsel %vm913_vm5, %v865_v51, %v912_v27  ;;  %vm948_vm15 = vcmp.eq.f32.partialorder %v5866_v49, inf  ;;  %v951_v9 = vand.u32 2147483648, %v5866_v49 }
 0x25a   : > { %v4651_v38 = vpop.eup %4650  ;;  %4660 = vrsqrt.f32 %v5868_v30  ;;  %v917_v28 = vsel %vm915_vm6, %v916_v31, %v914_v59  ;;  %vm955_vm1 = vcmp.eq.f32.partialorder %v5868_v30, inf  ;;  %v958_v20 = vand.u32 2147483648, %v5868_v30 }
 0x25b   : > { %v4653_v43 = vpop.eup %4652  ;;  %v926_v45 = vmul.f32 %v4651_v38, %v871_v24  ;;  %v1023_v37 = vmax.f32 %v917_v28, 1e-15  ;;  %vm950_vm2 = vcmp.eq.f32.partialorder %v5866_v49, 0.0  ;;  %vm957_vm3 = vcmp.eq.f32.partialorder %v5868_v30, 0.0 }
 0x25c   : > { %v919_v36 = vmul.f32 %v4653_v43, %v868_v17  ;;  %v5874_v33 = vpop.xlane.xlu1 %885  ;;  %v5876_v58 = vpop.xlane.xlu0 %888 }
 0x25d   : > { %4662 = vrsqrt.f32 %v5874_v33  ;;  %v928_v2 = vsel %vm927_vm7, %v871_v24, %v926_v45  ;;  %vm962_vm4 = vcmp.eq.f32.partialorder %v5874_v33, inf  ;;  %v965_v31 = vand.u32 2147483648, %v5874_v33 }
 0x25e   : > { %v921_v56 = vsel %vm920_vm9, %v868_v17, %v919_v36  ;;  %4664 = vrsqrt.f32 %v5876_v58  ;;  %v931_v42 = vsel %vm929_vm8, %v930_v53, %v928_v2  ;;  %vm969_vm5 = vcmp.eq.f32.partialorder %v5876_v58, inf }
 0x25f   : > { %v4655_v63 = vpop.eup %4654  ;;  %v924_v0 = vsel %vm922_vm10, %v923_v55, %v921_v56  ;;  %4666 = vrcp.f32 %v1023_v37  ;;  %v1025_v11 = vmax.f32 %v931_v42, 1e-15  ;;  %v972_v38 = vand.u32 2147483648, %v5876_v58 }
 0x260   : > { %v4657_v50 = vpop.eup %4656  ;;  %v1024_v52 = vmax.f32 %v924_v0, 1e-15  ;;  %v933_v4 = vmul.f32 %v4655_v63, %v874_v13  ;;  %v5883_v5 = vpop.xlane.xlu1 %891  ;;  %vm5917_vm6 = vcmp.gt.f32.partialorder %v1023_v37, %v5872_v44  ;;  %vm964_vm7 = vcmp.eq.f32.partialorder %v5874_v33, 0.0 }
 0x261   : > { %v940_v12 = vmul.f32 %v4657_v50, %v5863_v26  ;;  %4668 = vrsqrt.f32 %v5883_v5  ;;  %v979_v55 = vand.u32 2147483648, %v5883_v5  ;;  %vm971_vm8 = vcmp.eq.f32.partialorder %v5876_v58, 0.0 }
 0x262   : > { %4670 = vrcp.f32 %v1024_v52  ;;  %v5890_v62 = vpop.xlane.xlu0 %894  ;;  %v935_v14 = vsel %vm934_vm11, %v874_v13, %v933_v4  ;;  %vm5936_vm9 = vcmp.gt.f32.partialorder %v1024_v52, %v5872_v44  ;;  %vm5941_vm10 = vcmp.gt.f32.partialorder %v1025_v11, %v5872_v44 }
 0x263   : > { %v4659_v15 = vpop.eup %4658  ;;  %4672 = vrsqrt.f32 %v5890_v62  ;;  %v938_v16 = vsel %vm936_vm13, %v937_v3, %v935_v14  ;;  %v942_v24 = vsel %vm941_vm12, %v5863_v26, %v940_v12  ;;  %v986_v0 = vand.u32 2147483648, %v5890_v62 }
 0x264   : > { %v4661_v18 = vpop.eup %4660  ;;  %v947_v21 = vmul.f32 %v4659_v15, %v5866_v49  ;;  %4674 = vrcp.f32 %v1025_v11  ;;  %v1026_v23 = vmax.f32 %v938_v16, 1e-15  ;;  %v945_v13 = vsel %vm943_vm14, %v944_v60, %v942_v24 }
 0x265   : > { %v954_v51 = vmul.f32 %v4661_v18, %v5868_v30  ;;  %v1027_v59 = vmax.f32 %v945_v13, 1e-15  ;;  %vm976_vm11 = vcmp.eq.f32.partialorder %v5883_v5, inf  ;;  %vm983_vm14 = vcmp.eq.f32.partialorder %v5890_v62, inf }
 0x266   : > { %v5905_v17 = vpop.xlane.xlu1 %897  ;;  %4676 = vrcp.f32 %v1026_v23  ;;  %v949_v47 = vsel %vm948_vm15, %v5866_v49, %v947_v21  ;;  %vm5954_vm12 = vcmp.gt.f32.partialorder %v1026_v23, %v5872_v44  ;;  %vm978_vm15 = vcmp.eq.f32.partialorder %v5883_v5, 0.0 }
 0x267   : > { %v4663_v27 = vpop.eup %4662  ;;  %4678 = vrsqrt.f32 %v5905_v17  ;;  %v952_v26 = vsel %vm950_vm2, %v951_v9, %v949_v47  ;;  %v956_v49 = vsel %vm955_vm1, %v5868_v30, %v954_v51  ;;  %v993_v16 = vand.u32 2147483648, %v5905_v17 }
 0x268   : > { %v4665_v43 = vpop.eup %4664  ;;  %v961_v36 = vmul.f32 %v4663_v27, %v5874_v33  ;;  %4680 = vrcp.f32 %v1027_v59  ;;  %v1028_v53 = vmax.f32 %v952_v26, 1e-15  ;;  %v959_v3 = vsel %vm957_vm3, %v958_v20, %v956_v49 }
 0x269   : > { %v4667_v28 = vpop.eup %4666  ;;  %v968_v30 = vmul.f32 %v4665_v43, %v5876_v58  ;;  %v1029_v52 = vmax.f32 %v959_v3, 1e-15  ;;  %vm5966_vm13 = vcmp.gt.f32.partialorder %v1027_v59, %v5872_v44  ;;  %vm985_vm2 = vcmp.eq.f32.partialorder %v5890_v62, 0.0 }
 0x26a   : > { %v5927_v56 = vpop.xlane.xlu0 %900  ;;  %v1076_v37 = vmul.f32 %v4667_v28, %v5872_v44  ;;  %v963_v15 = vsel %vm962_vm4, %v5874_v33, %v961_v36  ;;  %vm5982_vm1 = vcmp.gt.f32.partialorder %v1028_v53, %v5872_v44  ;;  %vm990_vm3 = vcmp.eq.f32.partialorder %v5905_v17, inf }
 0x26b   : > { %v4669_v63 = vpop.eup %4668  ;;  %4682 = vrsqrt.f32 %v5927_v56  ;;  %v1000_v23 = vand.u32 2147483648, %v5927_v56  ;;  %v5988_v43 = vsel %vm964_vm7, %v965_v31, %v963_v15  ;;  %v970_v45 = vsel %vm969_vm5, %v5876_v58, %v968_v30 }
 0x26c   : > { %v4671_v4 = vpop.eup %4670  ;;  %v5947_v60 = vpop.xlane.xlu1 %903  ;;  %v1092_v42 = vsel %vm5917_vm6, %v1076_v37, 1.0  ;;  %4684 = vrcp.f32 %v1028_v53  ;;  %vm6004_vm4 = vcmp.gt.f32.partialorder %v1029_v52, %v5872_v44  ;;  %vm992_vm5 = vcmp.eq.f32.partialorder %v5905_v17, 0.0 }
 0x26d   : > { %v4673_v12 = vpop.eup %4672  ;;  %4686 = vrsqrt.f32 %v5947_v60  ;;  %v1108_v11 = vmul.f32 %v1092_v42, %v5670_v39  ;;  %v1077_v21 = vmul.f32 %v4671_v4, %v5872_v44  ;;  %v975_v39 = vmul.f32 %v4669_v63, %v5883_v5 }
 0x26e   : > { %v4675_v9 = vpop.eup %4674  ;;  %v5962_v18 = vpop.xlane.xlu0 %906  ;;  %4688 = vrcp.f32 %v1029_v52  ;;  %v982_v26 = vmul.f32 %v4673_v12, %v5890_v62  ;;  %v1007_v49 = vand.u32 2147483648, %v5947_v60  ;;  %v1030_v4 = vmax.f32 %v5988_v43, 1e-15 }
 0x26f   : > { %4690 = vrsqrt.f32 %v5962_v18  ;;  %4471 = vmatprep.mubr.msk.f32.mxu1 %vm371_vm0, %v1108_v11  ;;  %v1140_v51 = vmul.f32 %v1108_v11, %v1108_v11  ;;  %v1093_v47 = vsel %vm5936_vm9, %v1077_v21, 1.0  ;;  %v1078_v27 = vmul.f32 %v4675_v9, %v5872_v44 }
 0x270   : > { %v4677_v24 = vpop.eup %4676  ;;  %v5976_v13 = vpop.xlane.xlu1 %909  ;;  %v1109_v33 = vmul.f32 %v1093_v47, %v5692_v34  ;;  %v1014_v63 = vand.u32 2147483648, %v5962_v18  ;;  %v6015_v34 = vsel %vm971_vm8, %v972_v38, %v970_v45  ;;  %vm997_vm6 = vcmp.eq.f32.partialorder %v5927_v56, inf }
 0x271   : > { %4692 = vrsqrt.f32 %v5976_v13  ;;  %v1156_v28 = vsel %vm371_vm0, %v1140_v51, 0.0  ;;  %v4679_v36 = vpop.eup %4678  ;;  %v1094_v31 = vsel %vm5941_vm10, %v1078_v27, 1.0  ;;  %v1079_v53 = vmul.f32 %v4677_v24, %v5872_v44 }
 0x272   : > { %1157 = vadd.xlane.f32.xlu0 %v1156_v28  ;;  %v4681_v3 = vpop.eup %4680  ;;  %v1110_v2 = vmul.f32 %v1094_v31, %v5682_v22  ;;  %4472 = vmatmul.mubr.msk.f32.vlgmr.msra.gmra.mrb[8].mxu1 %vm371_vm0, %v1109_v33  ;;  %v1141_v50 = vmul.f32 %v1109_v33, %v1109_v33  ;;  %v1031_v52 = vmax.f32 %v6015_v34, 1e-15  ;;  %4694 = vrcp.f32 %v1030_v4 }
 0x273   : > { %v1095_v30 = vsel %vm5954_vm12, %v1079_v53, 1.0  ;;  %v1080_v42 = vmul.f32 %v4681_v3, %v5872_v44  ;;  %v977_v12 = vsel %vm976_vm11, %v5883_v5, %v975_v39  ;;  %v989_v14 = vmul.f32 %v4679_v36, %v5905_v17 }
 0x274   : > { %4474 = vmatprep.mubr.msk.f32.mxu1 %vm371_vm0, %v1110_v2  ;;  %v1142_v58 = vmul.f32 %v1110_v2, %v1110_v2  ;;  %v1111_v38 = vmul.f32 %v1095_v30, %v5704_v48  ;;  %vm1004_vm7 = vcmp.eq.f32.partialorder %v5947_v60, inf  ;;  %vm1011_vm8 = vcmp.eq.f32.partialorder %v5962_v18, inf }
 0x275   : > { %v4683_v22 = vpop.eup %4682  ;;  %v1159_v9 = vsel %vm371_vm0, %v1141_v50, 0.0  ;;  %v1096_v48 = vsel %vm5966_vm13, %v1080_v42, 1.0  ;;  %4696 = vrcp.f32 %v1031_v52  ;;  %v6049_v20 = vsel %vm978_vm15, %v979_v55, %v977_v12 }
 0x276   : > { %v4685_v11 = vpop.eup %4684  ;;  %v996_v15 = vmul.f32 %v4683_v22, %v5927_v56  ;;  %1160 = vadd.xlane.f32.xlu1 %v1159_v9  ;;  %v1162_v51 = vsel %vm371_vm0, %v1142_v58, 0.0  ;;  %v1112_v39 = vmul.f32 %v1096_v48, %v5715_v32  ;;  %v1143_v24 = vmul.f32 %v1111_v38, %v1111_v38  ;;  %4475 = vmatmul.mubr.msk.f32.gmra.mrb[10].mxu1 %vm371_vm0, %v1111_v38 }
 0x277   : > { %v4687_v21 = vpop.eup %4686  ;;  %v1081_v47 = vmul.f32 %v4685_v11, %v5872_v44  ;;  %1163 = vadd.xlane.f32.xlu0 %v1162_v51  ;;  %v984_v32 = vsel %vm983_vm14, %v5890_v62, %v982_v26  ;;  %v1032_v55 = vmax.f32 %v6049_v20, 1e-15  ;;  %vm1018_vm9 = vcmp.eq.f32.partialorder %v5976_v13, inf }
 0x278   : > { %v4689_v27 = vpop.eup %4688  ;;  %v1003_v45 = vmul.f32 %v4687_v21, %v5947_v60  ;;  %4477 = vmatprep.mubr.msk.f32.mxu1 %vm371_vm0, %v1112_v39  ;;  %v1165_v36 = vsel %vm371_vm0, %v1143_v24, 0.0  ;;  %v1144_v33 = vmul.f32 %v1112_v39, %v1112_v39  ;;  %v6066_v26 = vsel %vm985_vm2, %v986_v0, %v984_v32 }
 0x279   : > { %v4691_v28 = vpop.eup %4690  ;;  %v1097_v31 = vsel %vm5982_vm1, %v1081_v47, 1.0  ;;  %v1082_v53 = vmul.f32 %v4689_v27, %v5872_v44  ;;  %v1033_v30 = vmax.f32 %v6066_v26, 1e-15  ;;  %4698 = vrcp.f32 %v1032_v55 }
 0x27a   : > { %v1010_v3 = vmul.f32 %v4691_v28, %v5962_v18  ;;  %v1113_v5 = vmul.f32 %v1097_v31, %v5723_v61  ;;  %1166 = vadd.xlane.f32.xlu1 %v1165_v36  ;;  %v1168_v50 = vsel %vm371_vm0, %v1144_v33, 0.0  ;;  %v991_v61 = vsel %vm990_vm3, %v5905_v17, %v989_v14 }
 0x27b   : > { %v4693_v2 = vpop.eup %4692  ;;  %v1098_v59 = vsel %vm6004_vm4, %v1082_v53, 1.0  ;;  %1169 = vadd.xlane.f32.xlu0 %v1168_v50  ;;  %v1021_v42 = vand.u32 2147483648, %v5976_v13  ;;  %4700 = vrcp.f32 %v1033_v30  ;;  %v994_v22 = vsel %vm992_vm5, %v993_v16, %v991_v61 }
 0x27c   : > { %4478 = vmatmul.mubr.msk.f32.gmra.mrb[12].mxu1 %vm371_vm0, %v1113_v5  ;;  %v1114_v62 = vmul.f32 %v1098_v59, %v5730_v8  ;;  %v1145_v0 = vmul.f32 %v1113_v5, %v1113_v5  ;;  %v1017_v37 = vmul.f32 %v4693_v2, %v5976_v13  ;;  %v1034_v8 = vmax.f32 %v994_v22, 1e-15  ;;  %v4695_v11 = vpop.eup %4694 }
 0x27d   : > { %v998_v12 = vsel %vm997_vm6, %v5927_v56, %v996_v15  ;;  %vm6094_vm10 = vcmp.gt.f32.partialorder %v1030_v4, %v5872_v44  ;;  %vm999_vm11 = vcmp.eq.f32.partialorder %v5927_v56, 0.0  ;;  %v1005_v17 = vsel %vm1004_vm7, %v5947_v60, %v1003_v45 }
 0x27e   : > { %4480 = vmatprep.mubr.msk.f32.mxu1 %vm371_vm0, %v1114_v62  ;;  %v1171_v58 = vsel %vm371_vm0, %v1145_v0, 0.0  ;;  %v1146_v38 = vmul.f32 %v1114_v62, %v1114_v62  ;;  %v1012_v16 = vsel %vm1011_vm8, %v5962_v18, %v1010_v3  ;;  %v1083_v9 = vmul.f32 %v4695_v11, %v5872_v44 }
 0x27f   : > { %1172 = vadd.xlane.f32.xlu1 %v1171_v58  ;;  %4702 = vrcp.f32 %v1034_v8  ;;  %vm1006_vm12 = vcmp.eq.f32.partialorder %v5947_v60, 0.0  ;;  %v1001_v43 = vsel %vm999_vm11, %v1000_v23, %v998_v12  ;;  %vm1013_vm13 = vcmp.eq.f32.partialorder %v5962_v18, 0.0  ;;  %v4697_v21 = vpop.eup %4696 }
 0x280   : > { %v1174_v15 = vsel %vm371_vm0, %v1146_v38, 0.0  ;;  %v1008_v4 = vsel %vm1006_vm12, %v1007_v49, %v1005_v17  ;;  %v1019_v48 = vsel %vm1018_vm9, %v5976_v13, %v1017_v37  ;;  %v1099_v51 = vsel %vm6094_vm10, %v1083_v9, 1.0 }
 0x281   : > { %1175 = vadd.xlane.f32.xlu0 %v1174_v15  ;;  %v1035_v39 = vmax.f32 %v1001_v43, 1e-15  ;;  %v1036_v24 = vmax.f32 %v1008_v4, 1e-15  ;;  %v1015_v47 = vsel %vm1013_vm13, %v1014_v63, %v1012_v16  ;;  %v1115_v56 = vmul.f32 %v1099_v51, %v5737_v29 }
 0x282   : > { %v1084_v60 = vmul.f32 %v4697_v21, %v5872_v44  ;;  %v1037_v23 = vmax.f32 %v1015_v47, 1e-15  ;;  %vm1020_vm14 = vcmp.eq.f32.partialorder %v5976_v13, 0.0  ;;  %vm1052_vm15 = vcmp.gt.f32.partialorder %v1031_v52, %v5872_v44 }
 0x283   : > { %4704 = vrcp.f32 %v1035_v39  ;;  %v1022_v49 = vsel %vm1020_vm14, %v1021_v42, %v1019_v48  ;;  %4481 = vmatmul.mubr.msk.f32.gmra.mrb[14].mxu1 %vm371_vm0, %v1115_v56  ;;  %v1147_v45 = vmul.f32 %v1115_v56, %v1115_v56  ;;  %v4699_v18 = vpop.eup %4698  ;;  %vm1053_vm1 = vcmp.gt.f32.partialorder %v1032_v55, %v5872_v44 }
 0x284   : > { %v1100_v27 = vsel %vm1052_vm15, %v1084_v60, 1.0  ;;  %4706 = vrcp.f32 %v1036_v24  ;;  %v1038_v29 = vmax.f32 %v1022_v49, 1e-15  ;;  %v1085_v13 = vmul.f32 %v4699_v18, %v5872_v44  ;;  %v1222_v49 = vpop.xlane.xlu0 %1221 }
 0x285   : > { %v1116_v63 = vmul.f32 %v1100_v27, %v5744_v46  ;;  %4708 = vrcp.f32 %v1037_v23  ;;  %v4701_v32 = vpop.eup %4700  ;;  %v1177_v28 = vsel %vm371_vm0, %v1147_v45, 0.0  ;;  %vm1054_vm2 = vcmp.gt.f32.partialorder %v1033_v30, %v5872_v44  ;;  %v1225_v27 = vpop.xlane.xlu1 %1224 }
 0x286   : > { %1178 = vadd.xlane.f32.xlu1 %v1177_v28  ;;  %v1086_v52 = vmul.f32 %v4701_v32, %v5872_v44  ;;  %4710 = vrcp.f32 %v1038_v29  ;;  %v1101_v36 = vsel %vm1053_vm1, %v1085_v13, 1.0  ;;  %vm1055_vm3 = vcmp.gt.f32.partialorder %v1034_v8, %v5872_v44 }
 0x287   : > { %4483 = vmatprep.mubr.msk.f32.mxu1 %vm371_vm0, %v1116_v63  ;;  %v1148_v34 = vmul.f32 %v1116_v63, %v1116_v63  ;;  %v1117_v31 = vmul.f32 %v1101_v36, %v5751_v35  ;;  %vm1056_vm4 = vcmp.gt.f32.partialorder %v1035_v39, %v5872_v44  ;;  %vm1057_vm5 = vcmp.gt.f32.partialorder %v1036_v24, %v5872_v44 }
 0x288   : > { %v1102_v53 = vsel %vm1054_vm2, %v1086_v52, 1.0  ;;  %vm1058_vm6 = vcmp.gt.f32.partialorder %v1037_v23, %v5872_v44  ;;  %vm1059_vm7 = vcmp.gt.f32.partialorder %v1038_v29, %v5872_v44  ;;  %v1218_v48 = vmul.f32 %v5847_v7, %v5847_v7  ;;  %v1228_v45 = vpop.xlane.xlu0 %1227 }
 0x289   : > { %v4703_v46 = vpop.eup %4702  ;;  %v1180_v33 = vsel %vm371_vm0, %v1148_v34, 0.0  ;;  %v1118_v3 = vmul.f32 %v1102_v53, %v5758_v57  ;;  %4484 = vmatmul.mubr.msk.f32.gmra.mrb[0].mxu1 %vm371_vm0, %v1117_v31  ;;  %v1149_v20 = vmul.f32 %v1117_v31, %v1117_v31  ;;  %v1219_v21 = vmul.f32 %v5853_v10, %v5853_v10  ;;  %v1231_v63 = vpop.xlane.xlu1 %1230 }
 0x28a   : > { %1181 = vadd.xlane.f32.xlu0 %v1180_v33  ;;  %v1087_v5 = vmul.f32 %v4703_v46, %v5872_v44 }
 0x28b   : > { %4486 = vmatprep.mubr.msk.f32.mxu1 %vm371_vm0, %v1118_v3  ;;  %v1150_v55 = vmul.f32 %v1118_v3, %v1118_v3  ;;  %v1183_v50 = vsel %vm371_vm0, %v1149_v20, 0.0  ;;  %v1265_v39 = vsel %vm371_vm0, %v1219_v21, 0.0 }
 0x28c   : > { %v1103_v26 = vsel %vm1055_vm3, %v1087_v5, 1.0  ;;  %1184 = vadd.xlane.f32.xlu1 %v1183_v50  ;;  %v1234_v29 = vpop.xlane.xlu0 %1233 }
 0x28d   : > { %v4705_v2 = vpop.eup %4704  ;;  %v1119_v35 = vmul.f32 %v1103_v26, %v5764_v54  ;;  %v1186_v57 = vsel %vm371_vm0, %v1150_v55, 0.0  ;;  %v1237_v32 = vpop.xlane.xlu1 %1236 }
 0x28e   : > { %v4707_v59 = vpop.eup %4706  ;;  %v1088_v30 = vmul.f32 %v4705_v2, %v5872_v44  ;;  %1187 = vadd.xlane.f32.xlu0 %v1186_v57 }
 0x28f   : > { %v4709_v61 = vpop.eup %4708  ;;  %4487 = vmatmul.mubr.msk.f32.gmra.mrb[2].mxu1 %vm371_vm0, %v1119_v35  ;;  %v1151_v62 = vmul.f32 %v1119_v35, %v1119_v35  ;;  %v1089_v0 = vmul.f32 %v4707_v59, %v5872_v44 }
 0x290   : > { %v1104_v37 = vsel %vm1056_vm4, %v1088_v30, 1.0  ;;  %v1090_v54 = vmul.f32 %v4709_v61, %v5872_v44  ;;  %v4711_v42 = vpop.eup %4710  ;;  %v1240_v28 = vpop.xlane.xlu0 %1239 }
 0x291   : > { %v1120_v22 = vmul.f32 %v1104_v37, %v5777_v1  ;;  %v1189_v58 = vsel %vm371_vm0, %v1151_v62, 0.0  ;;  %v1105_v38 = vsel %vm1057_vm5, %v1089_v0, 1.0  ;;  %v1091_v11 = vmul.f32 %v4711_v42, %v5872_v44  ;;  %v6190_v13 = vpop.xlane.xlu1 %1242 }
 0x292   : > { %1190 = vadd.xlane.f32.xlu1 %v1189_v58  ;;  %v1121_v8 = vmul.f32 %v1105_v38, %v5783_v6  ;;  %v1106_v12 = vsel %vm1058_vm6, %v1090_v54, 1.0 }
 0x293   : > { %4489 = vmatprep.mubr.msk.f32.mxu1 %vm371_vm0, %v1120_v22  ;;  %v1152_v14 = vmul.f32 %v1120_v22, %v1120_v22  ;;  %v1122_v17 = vmul.f32 %v1106_v12, %v5789_v41  ;;  %v1107_v16 = vsel %vm1059_vm7, %v1091_v11, 1.0 }
 0x294   : > { %4490 = vmatmul.mubr.msk.f32.gmra.mrb[4].mxu1 %vm371_vm0, %v1121_v8  ;;  %v1153_v1 = vmul.f32 %v1121_v8, %v1121_v8  ;;  %v1123_v6 = vmul.f32 %v1107_v16, %v5796_v40  ;;  %v1262_v40 = vsel %vm371_vm0, %v1218_v48, 0.0  ;;  %v6192_v34 = vpop.xlane.xlu0 %1245 }
 0x295   : > { %v1192_v15 = vsel %vm371_vm0, %v1152_v14, 0.0  ;;  %4492 = vmatprep.mubr.msk.f32.mxu1 %vm371_vm0, %v1122_v17  ;;  %v1154_v9 = vmul.f32 %v1122_v17, %v1122_v17  ;;  %v6194_v52 = vpop.xlane.xlu1 %1248 }
 0x296   : > { %1193 = vadd.xlane.f32.xlu0 %v1192_v15  ;;  %v1195_v43 = vsel %vm371_vm0, %v1153_v1, 0.0  ;;  %v1155_v41 = vmul.f32 %v1123_v6, %v1123_v6 }
 0x297   : > { %1196 = vadd.xlane.f32.xlu1 %v1195_v43  ;;  %v1198_v4 = vsel %vm371_vm0, %v1154_v9, 0.0 }
 0x298   : > { %4493 = vmatmul.mubr.msk.f32.gmra.mrb[6].mxu1 %vm371_vm0, %v1123_v6  ;;  %v1201_v51 = vsel %vm371_vm0, %v1155_v41, 0.0  ;;  %v6196_v36 = vpop.xlane.xlu0 %1251 }
 0x299   : > { %v6198_v46 = vpop.xlane.xlu1 %1254 }
 0x29a   : > { %1199 = vadd.xlane.f32.xlu0 %v1198_v4 }
 0x29b   : > { %1202 = vadd.xlane.f32.xlu1 %v1201_v51 }
 0x29c   : > { %v6200_v33 = vpop.xlane.xlu0 %1257 }
 0x29d   : > { %v6202_v31 = vpop.xlane.xlu1 %1260 }
 0x29e   : > { %1263 = vadd.xlane.f32.xlu0 %v1262_v40 }
 0x29f   : > { %1266 = vadd.xlane.f32.xlu1 %v1265_v39 }
 0x2b7   : > { %v6174_v24 = vpop.f32.mrb[16].mxu0 }
 0x2b8   : > { %v6176_v47 = vpop.f32.mrb[17].mxu0 }
 0x2bb   : > { %v6178_v7 = vpop.f32.mrb[18].mxu0 }
 0x2bc   : > { %v6180_v56 = vpop.f32.mrb[19].mxu0 }
 0x2bf   : > { %v6182_v60 = vpop.f32.mrb[20].mxu0 }
 0x2c0   : > { %v6184_v10 = vpop.f32.mrb[21].mxu0 }
 0x2c3   : > { %v6186_v23 = vpop.f32.mrb[22].mxu0 }
 0x2c4   : > { %v6188_v18 = vpop.f32.mrb[23].mxu0 }
 0x2ff   : > { %v1158_v53 = vpop.xlane.xlu0 %1157 }
 0x300   : > { %v1268_v3 = vadd.f32 %v1222_v49, %v1158_v53 }
 0x302   : > { %4712 = vrsqrt.f32 %v1268_v3  ;;  %vm1286_vm0 = vcmp.eq.f32.partialorder %v1268_v3, inf  ;;  %v1289_v37 = vand.u32 2147483648, %v1268_v3  ;;  %vm1288_vm8 = vcmp.eq.f32.partialorder %v1268_v3, 0.0 }
 0x303   : > { %v1161_v5 = vpop.xlane.xlu1 %1160 }
 0x304   : > { %v1269_v20 = vadd.f32 %v1225_v27, %v1161_v5  ;;  %v1164_v55 = vpop.xlane.xlu0 %1163 }
 0x305   : > { %v1270_v26 = vadd.f32 %v1228_v45, %v1164_v55 }
 0x306   : > { %4714 = vrsqrt.f32 %v1269_v20  ;;  %vm1293_vm9 = vcmp.eq.f32.partialorder %v1269_v20, inf  ;;  %v1296_v11 = vand.u32 2147483648, %v1269_v20  ;;  %vm1295_vm10 = vcmp.eq.f32.partialorder %v1269_v20, 0.0 }
 0x307   : > { %4716 = vrsqrt.f32 %v1270_v26  ;;  %v1167_v2 = vpop.xlane.xlu1 %1166  ;;  %vm1300_vm11 = vcmp.eq.f32.partialorder %v1270_v26, inf  ;;  %v1303_v1 = vand.u32 2147483648, %v1270_v26  ;;  %vm1302_vm12 = vcmp.eq.f32.partialorder %v1270_v26, 0.0 }
 0x308   : > { %v1271_v50 = vadd.f32 %v1231_v63, %v1167_v2  ;;  %v1170_v35 = vpop.xlane.xlu0 %1169 }
 0x309   : > { %v6204_v30 = vadd.f32 %v1234_v29, %v1170_v35 }
 0x30a   : > { %4718 = vrsqrt.f32 %v1271_v50  ;;  %vm1307_vm13 = vcmp.eq.f32.partialorder %v1271_v50, inf  ;;  %v1310_v41 = vand.u32 2147483648, %v1271_v50  ;;  %vm1309_vm14 = vcmp.eq.f32.partialorder %v1271_v50, 0.0 }
 0x30b   : > { %vm1314_vm3 = vcmp.eq.f32.partialorder %v6204_v30, inf  ;;  %vm1316_vm5 = vcmp.eq.f32.partialorder %v6204_v30, 0.0 }
 0x30c   : > { %v4713_v59 = vpop.eup %4712  ;;  %v1173_v57 = vpop.xlane.xlu1 %1172 }
 0x30d   : > { %v1273_v61 = vadd.f32 %v1237_v32, %v1173_v57  ;;  %v1285_v62 = vmul.f32 %v4713_v59, %v1268_v3  ;;  %v1317_v59 = vand.u32 2147483648, %v6204_v30 }
 0x30e   : > { %v1176_v0 = vpop.xlane.xlu0 %1175 }
 0x30f   : > { %4720 = vrsqrt.f32 %v1273_v61  ;;  %v6206_v54 = vadd.f32 %v1240_v28, %v1176_v0  ;;  %v1287_v42 = vsel %vm1286_vm0, %v1268_v3, %v1285_v62  ;;  %vm1321_vm15 = vcmp.eq.f32.partialorder %v1273_v61, inf }
 0x310   : > { %v1290_v22 = vsel %vm1288_vm8, %v1289_v37, %v1287_v42  ;;  %v4715_v58 = vpop.eup %4714  ;;  %4722 = vrsqrt.f32 %v6204_v30  ;;  %v1324_v63 = vand.u32 2147483648, %v1273_v61  ;;  %vm1323_vm1 = vcmp.eq.f32.partialorder %v1273_v61, 0.0 }
 0x311   : > { %v1396_v38 = vmax.f32 %v1290_v22, 1e-15  ;;  %v4717_v8 = vpop.eup %4716  ;;  %4724 = vrsqrt.f32 %v6206_v54  ;;  %v1292_v12 = vmul.f32 %v4715_v58, %v1269_v20  ;;  %vm1328_vm4 = vcmp.eq.f32.partialorder %v6206_v54, inf }
 0x312   : > { %v1299_v14 = vmul.f32 %v4717_v8, %v1270_v26  ;;  %v1331_v0 = vand.u32 2147483648, %v6206_v54  ;;  %vm1330_vm7 = vcmp.eq.f32.partialorder %v6206_v54, 0.0 }
 0x313   : > { %4726 = vrcp.f32 %v1396_v38  ;;  %v1294_v17 = vsel %vm1293_vm9, %v1269_v20, %v1292_v12  ;;  %v1179_v40 = vpop.xlane.xlu1 %1178  ;;  %vm1412_vm2 = vcmp.gt.f32.partialorder %v1396_v38, %v5872_v44 }
 0x314   : > { %v4719_v16 = vpop.eup %4718  ;;  %v1297_v15 = vsel %vm1295_vm10, %v1296_v11, %v1294_v17  ;;  %v1301_v9 = vsel %vm1300_vm11, %v1270_v26, %v1299_v14  ;;  %v6211_v32 = vadd.f32 %v6190_v13, %v1179_v40 }
 0x315   : > { %v1397_v6 = vmax.f32 %v1297_v15, 1e-15  ;;  %v1306_v43 = vmul.f32 %v4719_v16, %v1271_v50  ;;  %v1304_v4 = vsel %vm1302_vm12, %v1303_v1, %v1301_v9 }
 0x316   : > { %v1398_v48 = vmax.f32 %v1304_v4, 1e-15  ;;  %vm1335_vm10 = vcmp.eq.f32.partialorder %v6211_v32, inf  ;;  %v1338_v40 = vand.u32 2147483648, %v6211_v32  ;;  %vm1337_vm11 = vcmp.eq.f32.partialorder %v6211_v32, 0.0 }
 0x317   : > { %v1308_v21 = vsel %vm1307_vm13, %v1271_v50, %v1306_v43  ;;  %4728 = vrcp.f32 %v1397_v6  ;;  %vm1413_vm6 = vcmp.gt.f32.partialorder %v1397_v6, %v5872_v44  ;;  %v1182_v43 = vpop.xlane.xlu0 %1181 }
 0x318   : > { %v1311_v39 = vsel %vm1309_vm14, %v1310_v41, %v1308_v21  ;;  %4730 = vrcp.f32 %v1398_v48  ;;  %vm1414_vm0 = vcmp.gt.f32.partialorder %v1398_v48, %v5872_v44  ;;  %v1276_v21 = vadd.f32 %v6192_v34, %v1182_v43 }
 0x319   : > { %v4721_v51 = vpop.eup %4720  ;;  %v1399_v49 = vmax.f32 %v1311_v39, 1e-15  ;;  %v1185_v8 = vpop.xlane.xlu1 %1184 }
 0x31a   : > { %v1320_v27 = vmul.f32 %v4721_v51, %v1273_v61  ;;  %v4723_v45 = vpop.eup %4722 }
 0x31b   : > { %v4725_v29 = vpop.eup %4724  ;;  %4732 = vrcp.f32 %v1399_v49  ;;  %v1313_v55 = vmul.f32 %v4723_v45, %v6204_v30  ;;  %vm1415_vm8 = vcmp.gt.f32.partialorder %v1399_v49, %v5872_v44 }
 0x31c   : > { %v1322_v28 = vsel %vm1321_vm15, %v1273_v61, %v1320_v27  ;;  %v1327_v26 = vmul.f32 %v4725_v29, %v6206_v54  ;;  %4734 = vrsqrt.f32 %v6211_v32 }
 0x31d   : > { %v4727_v53 = vpop.eup %4726  ;;  %v1325_v3 = vsel %vm1323_vm1, %v1324_v63, %v1322_v28  ;;  %v1315_v50 = vsel %vm1314_vm3, %v6204_v30, %v1313_v55  ;;  %vm1342_vm1 = vcmp.eq.f32.partialorder %v1276_v21, inf }
 0x31e   : > { %v1444_v5 = vmul.f32 %v4727_v53, %v5872_v44  ;;  %v1401_v20 = vmax.f32 %v1325_v3, 1e-15  ;;  %v1329_v57 = vsel %vm1328_vm4, %v6206_v54, %v1327_v26  ;;  %v1318_v42 = vsel %vm1316_vm5, %v1317_v59, %v1315_v50 }
 0x31f   : > { %v1400_v14 = vmax.f32 %v1318_v42, 1e-15  ;;  %v1277_v54 = vadd.f32 %v6194_v52, %v1185_v8  ;;  %v1191_v45 = vpop.xlane.xlu1 %1190  ;;  %v1345_v42 = vand.u32 2147483648, %v1276_v21  ;;  %vm1930_vm4 = vcmask 261120  }
 0x320   : > { %v6218_v2 = vsel %vm1412_vm2, %v1444_v5, 1.0  ;;  %4736 = vrcp.f32 %v1401_v20  ;;  %vm1417_vm9 = vcmp.gt.f32.partialorder %v1401_v20, %v5872_v44  ;;  %v6270_v53 = vadd.f32 %v6198_v46, %v1191_v45 }
 0x321   : > { %v6221_v13 = vmul.f32 %v6218_v2, %v1396_v38  ;;  %v4729_v35 = vpop.eup %4728  ;;  %v1332_v38 = vsel %vm1330_vm7, %v1331_v0, %v1329_v57  ;;  %4738 = vrcp.f32 %v1400_v14  ;;  %vm1416_vm12 = vcmp.gt.f32.partialorder %v1400_v14, %v5872_v44 }
 0x322   : > { %v4731_v61 = vpop.eup %4730  ;;  %v1445_v62 = vmul.f32 %v4729_v35, %v5872_v44  ;;  %v1402_v17 = vmax.f32 %v1332_v38, 1e-15  ;;  %vm1349_vm13 = vcmp.eq.f32.partialorder %v1277_v54, inf  ;;  %v1352_v55 = vand.u32 2147483648, %v1277_v54 }
 0x323   : > { %v1446_v37 = vmul.f32 %v4731_v61, %v5872_v44  ;;  %vm1351_vm15 = vcmp.eq.f32.partialorder %v1277_v54, 0.0  ;;  %v1188_v61 = vpop.xlane.xlu0 %1187  ;;  %vm1344_vm2 = vcmp.eq.f32.partialorder %v1276_v21, 0.0  ;;  %vm1363_vm5 = vcmp.eq.f32.partialorder %v6270_v53, inf }
 0x324   : > { %v6234_v58 = vsel %vm1413_vm6, %v1445_v62, 1.0  ;;  %4740 = vrcp.f32 %v1402_v17  ;;  %vm1418_vm14 = vcmp.gt.f32.partialorder %v1402_v17, %v5872_v44  ;;  %vm1365_vm6 = vcmp.eq.f32.partialorder %v6270_v53, 0.0 }
 0x325   : > { %v4733_v22 = vpop.eup %4732  ;;  %v6237_v12 = vmul.f32 %v6234_v58, %v1397_v6  ;;  %v6241_v30 = vsel %vm1414_vm0, %v1446_v37, 1.0  ;;  %4742 = vrsqrt.f32 %v1277_v54  ;;  %v6288_v37 = vadd.f32 %v6196_v36, %v1188_v61  ;;  %v1197_v36 = vpop.xlane.xlu1 %1196 }
 0x326   : > { %v1447_v11 = vmul.f32 %v4733_v22, %v5872_v44  ;;  %v4735_v1 = vpop.eup %4734  ;;  %v6248_v15 = vmul.f32 %v6241_v30, %v1398_v48  ;;  %4744 = vrsqrt.f32 %v1276_v21 }
 0x327   : > { %v1334_v41 = vmul.f32 %v4735_v1, %v6211_v32  ;;  %vm1356_vm0 = vcmp.eq.f32.partialorder %v6288_v37, inf }
 0x328   : > { %v6245_v16 = vsel %vm1415_vm8, %v1447_v11, 1.0  ;;  %vm1358_vm8 = vcmp.eq.f32.partialorder %v6288_v37, 0.0 }
 0x329   : > { %v6251_v6 = vmul.f32 %v6245_v16, %v1399_v49  ;;  %v1336_v48 = vsel %vm1335_vm10, %v6211_v32, %v1334_v41 }
 0x32a   : > { %v4737_v9 = vpop.eup %4736  ;;  %v1339_v39 = vsel %vm1337_vm11, %v1338_v40, %v1336_v48  ;;  %v6312_v40 = vadd.f32 %v6202_v31, %v1197_v36 }
 0x32b   : > { %v1449_v4 = vmul.f32 %v4737_v9, %v5872_v44  ;;  %v4739_v49 = vpop.eup %4738  ;;  %v1403_v63 = vmax.f32 %v1339_v39, 1e-15 }
 0x32c   : > { %v1448_v29 = vmul.f32 %v4739_v49, %v5872_v44  ;;  %vm1377_vm10 = vcmp.eq.f32.partialorder %v6312_v40, inf  ;;  %vm1379_vm11 = vcmp.eq.f32.partialorder %v6312_v40, 0.0 }
 0x32d   : > { %v6257_v52 = vsel %vm1417_vm9, %v1449_v4, 1.0  ;;  %4746 = vrcp.f32 %v1403_v63  ;;  %vm1419_vm3 = vcmp.gt.f32.partialorder %v1403_v63, %v5872_v44 }
 0x32e   : > { %v6262_v51 = vmul.f32 %v6257_v52, %v1401_v20  ;;  %v4741_v27 = vpop.eup %4740  ;;  %v6272_v3 = vsel %vm1416_vm12, %v1448_v29, 1.0  ;;  %4748 = vrsqrt.f32 %v6270_v53 }
 0x32f   : > { %v4743_v34 = vpop.eup %4742  ;;  %v1450_v28 = vmul.f32 %v4741_v27, %v5872_v44  ;;  %v6276_v5 = vmul.f32 %v6272_v3, %v1400_v14 }
 0x330   : > { %v1348_v32 = vmul.f32 %v4743_v34, %v1277_v54  ;;  %v4745_v35 = vpop.eup %4744 }
 0x331   : > { %v6278_v20 = vsel %vm1418_vm14, %v1450_v28, 1.0  ;;  %v1341_v57 = vmul.f32 %v4745_v35, %v1276_v21 }
 0x332   : > { %v6281_v26 = vmul.f32 %v6278_v20, %v1402_v17  ;;  %v1350_v50 = vsel %vm1349_vm13, %v1277_v54, %v1348_v32 }
 0x333   : > { %v1353_v46 = vsel %vm1351_vm15, %v1352_v55, %v1350_v50  ;;  %v1343_v62 = vsel %vm1342_vm1, %v1276_v21, %v1341_v57  ;;  %v1203_v50 = vpop.xlane.xlu1 %1202 }
 0x334   : > { %v6284_v59 = vmax.f32 %v1353_v46, 1e-15  ;;  %v1346_v14 = vsel %vm1344_vm2, %v1345_v42, %v1343_v62  ;;  %v1366_v46 = vand.u32 2147483648, %v6270_v53 }
 0x335   : > { %v6306_v41 = vmax.f32 %v1346_v14, 1e-15 }
 0x336   : > { %4750 = vrcp.f32 %v6284_v59  ;;  %vm1421_vm7 = vcmp.gt.f32.partialorder %v6284_v59, %v5872_v44 }
 0x337   : > { %v4747_v0 = vpop.eup %4746  ;;  %4752 = vrsqrt.f32 %v6288_v37  ;;  %vm1420_vm9 = vcmp.gt.f32.partialorder %v6306_v41, %v5872_v44 }
 0x338   : > { %v1451_v38 = vmul.f32 %v4747_v0, %v5872_v44  ;;  %v4749_v54 = vpop.eup %4748  ;;  %4754 = vrcp.f32 %v6306_v41 }
 0x339   : > { %4756 = vrsqrt.f32 %v6312_v40 }
 0x33a   : > { %v6294_v1 = vsel %vm1419_vm3, %v1451_v38, 1.0 }
 0x33b   : > { %v6301_v43 = vmul.f32 %v6294_v1, %v1403_v63 }
 0x345   : > { %v4473_v22 = vpop.f32.mrb[8].mxu1 }
 0x346   : > { %v1825_v8 = vadd.f32 %v4473_v22, %v6174_v24  ;;  %v1819_v11 = vpop.f32.mrb[9].mxu1 }
 0x347   : > { %v1820_v17 = vadd.f32 %v1819_v11, %v6176_v47 }
 0x348   : > { %v6298_v9 = vmul.f32 %v1825_v8, %v6234_v58  ;;  %v1267_v8 = vpop.xlane.xlu1 %1266 }
 0x349   : > { %v6304_v24 = vmul.f32 %v1820_v17, %v6218_v2  ;;  %v4476_v4 = vpop.f32.mrb[10].mxu1  ;;  %v1362_v2 = vmul.f32 %v4749_v54, %v6270_v53 }
 0x34a   : > { %9058 = vst [vmem:[#allocation7_spill] sm:$0xff] %v6298_v9  ;;  %v1835_v47 = vadd.f32 %v4476_v4, %v6178_v7  ;;  %v1829_v21 = vpop.f32.mrb[11].mxu1  ;;  %v1915_v48 = vmul.f32 %v6298_v9, %v6298_v9  ;;  %v4751_v7 = vpop.eup %4750 }
 0x34b   : > { %9059 = vst [vmem:[#allocation8_spill] sm:$0xff] %v6304_v24  ;;  %v1830_v58 = vadd.f32 %v1829_v21, %v6180_v56  ;;  %v1914_v39 = vmul.f32 %v6304_v24, %v6304_v24  ;;  %v1194_v56 = vpop.xlane.xlu0 %1193  ;;  %v1453_v28 = vmul.f32 %v4751_v7, %v5872_v44  ;;  %v1364_v55 = vsel %vm1363_vm5, %v6270_v53, %v1362_v2 }
 0x34c   : > { %v6319_v49 = vmul.f32 %v1835_v47, %v6245_v16  ;;  %v1934_v27 = vsel %vm1930_vm4, %v1915_v48, 0.0  ;;  %v6344_v57 = vadd.f32 %v6200_v33, %v1194_v56  ;;  %v1367_v42 = vsel %vm1365_vm6, %v1366_v46, %v1364_v55 }
 0x34d   : > { %v6323_v34 = vmul.f32 %v1830_v58, %v6241_v30  ;;  %1935 = vadd.xlane.f32.xlu1 %v1934_v27  ;;  %v1931_v31 = vsel %vm1930_vm4, %v1914_v39, 0.0  ;;  %v1469_v0 = vsel %vm1421_vm7, %v1453_v28, 1.0  ;;  %v6361_v22 = vmax.f32 %v1367_v42, 1e-15 }
 0x34e   : > { %9060 = vst [vmem:[#allocation9_spill] sm:$0xff] %v6319_v49  ;;  %1932 = vadd.xlane.f32.xlu0 %v1931_v31  ;;  %v1917_v16 = vmul.f32 %v6319_v49, %v6319_v49  ;;  %v6356_v33 = vmul.f32 %v1469_v0, %v6284_v59  ;;  %4758 = vrsqrt.f32 %v6344_v57  ;;  %v1359_v47 = vand.u32 2147483648, %v6288_v37 }
 0x34f   : > { %9061 = vst [vmem:[#allocation10_spill] sm:$0xff] %v6323_v34  ;;  %v4479_v45 = vpop.f32.mrb[12].mxu1  ;;  %v1916_v32 = vmul.f32 %v6323_v34, %v6323_v34  ;;  %v1200_v54 = vpop.xlane.xlu0 %1199  ;;  %4760 = vrcp.f32 %v6361_v22  ;;  %v6373_v39 = vadd.f32 %v1267_v8, %v1203_v50  ;;  %vm1423_vm12 = vcmp.gt.f32.partialorder %v6361_v22, %v5872_v44 }
 0x350   : > { %v1845_v63 = vadd.f32 %v4479_v45, %v6182_v60  ;;  %v1839_v29 = vpop.f32.mrb[13].mxu1  ;;  %v1940_v35 = vsel %vm1930_vm4, %v1917_v16, 0.0  ;;  %vm1370_vm13 = vcmp.eq.f32.partialorder %v6344_v57, inf  ;;  %vm1372_vm14 = vcmp.eq.f32.partialorder %v6344_v57, 0.0 }
 0x351   : > { %v1840_v30 = vadd.f32 %v1839_v29, %v6184_v10  ;;  %1941 = vadd.xlane.f32.xlu1 %v1940_v35  ;;  %v1937_v61 = vsel %vm1930_vm4, %v1916_v32, 0.0  ;;  %4762 = vrsqrt.f32 %v6373_v39  ;;  %v1380_v35 = vand.u32 2147483648, %v6312_v40 }
 0x352   : > { %v6338_v60 = vmul.f32 %v1845_v63, %v6257_v52  ;;  %v4753_v52 = vpop.eup %4752  ;;  %1938 = vadd.xlane.f32.xlu0 %v1937_v61  ;;  %vm1391_vm1 = vcmp.eq.f32.partialorder %v6373_v39, inf  ;;  %vm1393_vm2 = vcmp.eq.f32.partialorder %v6373_v39, 0.0 }
 0x353   : > { %v6347_v10 = vmul.f32 %v1840_v30, %v6272_v3  ;;  %v1355_v38 = vmul.f32 %v4753_v52, %v6288_v37  ;;  %v4755_v17 = vpop.eup %4754  ;;  %v1264_v56 = vpop.xlane.xlu0 %1263 }
 0x354   : > { %9062 = vst [vmem:[#allocation11_spill] sm:$0xff] %v6338_v60  ;;  %v1919_v62 = vmul.f32 %v6338_v60, %v6338_v60  ;;  %v1452_v48 = vmul.f32 %v4755_v17, %v5872_v44  ;;  %v4757_v58 = vpop.eup %4756  ;;  %v6394_v28 = vadd.f32 %v1264_v56, %v1200_v54 }
 0x355   : > { %9063 = vst [vmem:[#allocation12_spill] sm:$0xff] %v6347_v10  ;;  %v1918_v3 = vmul.f32 %v6347_v10, %v6347_v10  ;;  %v1357_v4 = vsel %vm1356_vm0, %v6288_v37, %v1355_v38  ;;  %v1376_v31 = vmul.f32 %v4757_v58, %v6312_v40 }
 0x356   : > { %v1946_v53 = vsel %vm1930_vm4, %v1919_v62, 0.0  ;;  %v4482_v11 = vpop.f32.mrb[14].mxu1  ;;  %v1468_v27 = vsel %vm1420_vm9, %v1452_v48, 1.0  ;;  %vm1384_vm3 = vcmp.eq.f32.partialorder %v6394_v28, inf  ;;  %vm1386_vm6 = vcmp.eq.f32.partialorder %v6394_v28, 0.0 }
 0x357   : > { %1947 = vadd.xlane.f32.xlu1 %v1946_v53  ;;  %v1943_v14 = vsel %vm1930_vm4, %v1918_v3, 0.0  ;;  %v1855_v59 = vadd.f32 %v4482_v11, %v6186_v23  ;;  %v1849_v36 = vpop.f32.mrb[15].mxu1  ;;  %v1360_v23 = vsel %vm1358_vm8, %v1359_v47, %v1357_v4  ;;  %v6381_v7 = vmul.f32 %v1468_v27, %v6306_v41 }
 0x358   : > { %1944 = vadd.xlane.f32.xlu0 %v1943_v14  ;;  %v1850_v21 = vadd.f32 %v1849_v36, %v6188_v18  ;;  %v1406_v37 = vmax.f32 %v1360_v23, 1e-15  ;;  %v4759_v41 = vpop.eup %4758  ;;  %v1378_v30 = vsel %vm1377_vm10, %v6312_v40, %v1376_v31  ;;  %v1373_v11 = vand.u32 2147483648, %v6344_v57 }
 0x359   : > { %v6376_v2 = vmul.f32 %v1855_v59, %v6294_v1  ;;  %v4761_v32 = vpop.eup %4760  ;;  %v1369_v62 = vmul.f32 %v4759_v41, %v6344_v57  ;;  %v1381_v42 = vsel %vm1379_vm11, %v1380_v35, %v1378_v30 }
 0x35a   : > { %v6386_v45 = vmul.f32 %v1850_v21, %v6278_v20  ;;  %4764 = vrcp.f32 %v1406_v37  ;;  %v1455_v46 = vmul.f32 %v4761_v32, %v5872_v44  ;;  %v1409_v38 = vmax.f32 %v1381_v42, 1e-15 }
 0x35b   : > { %9064 = vst [vmem:[#allocation13_spill] sm:$0xff] %v6376_v2  ;;  %v1921_v18 = vmul.f32 %v6376_v2, %v6376_v2  ;;  %4766 = vrsqrt.f32 %v6394_v28  ;;  %v1371_v40 = vsel %vm1370_vm13, %v6344_v57, %v1369_v62  ;;  %v4763_v14 = vpop.eup %4762  ;;  %vm1422_vm15 = vcmp.gt.f32.partialorder %v1406_v37, %v5872_v44 }
 0x35c   : > { %9065 = vst [vmem:[#allocation14_spill] sm:$0xff] %v6386_v45  ;;  %v4485_v1 = vpop.f32.mrb[0].mxu1  ;;  %v1920_v20 = vmul.f32 %v6386_v45, %v6386_v45  ;;  %v1471_v3 = vsel %vm1423_vm12, %v1455_v46, 1.0  ;;  %v1374_v36 = vsel %vm1372_vm14, %v1373_v11, %v1371_v40  ;;  %4768 = vrcp.f32 %v1409_v38 }
 0x35d   : > { %v1952_v63 = vsel %vm1930_vm4, %v1921_v18, 0.0  ;;  %v6391_v29 = vmul.f32 %v4485_v1, %v1469_v0  ;;  %v1859_v16 = vpop.f32.mrb[1].mxu1  ;;  %v6416_v17 = vmul.f32 %v1471_v3, %v6361_v22  ;;  %v1408_v21 = vmax.f32 %v1374_v36, 1e-15 }
 0x35e   : > { %1953 = vadd.xlane.f32.xlu1 %v1952_v63  ;;  %v1949_v52 = vsel %vm1930_vm4, %v1920_v20, 0.0  ;;  %v6408_v53 = vmul.f32 %v1859_v16, %v1468_v27  ;;  %v1390_v22 = vmul.f32 %v4763_v14, %v6373_v39  ;;  %v1394_v16 = vand.u32 2147483648, %v6373_v39 }
 0x35f   : > { %9066 = vst [vmem:[#allocation15_spill] sm:$0xff] %v6391_v29  ;;  %v1923_v50 = vmul.f32 %v6391_v29, %v6391_v29  ;;  %1950 = vadd.xlane.f32.xlu0 %v1949_v52  ;;  %4770 = vrcp.f32 %v1408_v21  ;;  %vm1425_vm5 = vcmp.gt.f32.partialorder %v1409_v38, %v5872_v44  ;;  %vm1424_vm7 = vcmp.gt.f32.partialorder %v1408_v21, %v5872_v44 }
 0x360   : > { %9067 = vst [vmem:[#allocation16_spill] sm:$0xff] %v6408_v53  ;;  %v1922_v4 = vmul.f32 %v6408_v53, %v6408_v53  ;;  %v1392_v56 = vsel %vm1391_vm1, %v6373_v39, %v1390_v22  ;;  %v1387_v39 = vand.u32 2147483648, %v6394_v28 }
 0x361   : > { %v1958_v0 = vsel %vm1930_vm4, %v1923_v50, 0.0  ;;  %v1395_v41 = vsel %vm1393_vm2, %v1394_v16, %v1392_v56 }
 0x362   : > { %v4488_v55 = vpop.f32.mrb[2].mxu1  ;;  %1959 = vadd.xlane.f32.xlu1 %v1958_v0  ;;  %v1955_v48 = vsel %vm1930_vm4, %v1922_v4, 0.0 }
 0x363   : > { %v1869_v61 = vpop.f32.mrb[3].mxu1  ;;  %v6418_v54 = vmul.f32 %v4488_v55, %v1471_v3  ;;  %1956 = vadd.xlane.f32.xlu0 %v1955_v48  ;;  %v1411_v55 = vmax.f32 %v1395_v41, 1e-15 }
 0x364   : > { %v4765_v47 = vpop.eup %4764 }
 0x365   : > { %9068 = vst [vmem:[#allocation17_spill] sm:$0xff] %v6418_v54  ;;  %v1925_v58 = vmul.f32 %v6418_v54, %v6418_v54  ;;  %v1454_v27 = vmul.f32 %v4765_v47, %v5872_v44  ;;  %v4767_v1 = vpop.eup %4766  ;;  %4772 = vrcp.f32 %v1411_v55  ;;  %vm1427_vm0 = vcmp.gt.f32.partialorder %v1411_v55, %v5872_v44 }
 0x366   : > { %v1383_v30 = vmul.f32 %v4767_v1, %v6394_v28  ;;  %v4769_v32 = vpop.eup %4768  ;;  %v1495_v1 = vmax.f32 %v6251_v6, 1e-15 }
 0x367   : > { %v4491_v8 = vpop.f32.mrb[4].mxu1  ;;  %v1964_v18 = vsel %vm1930_vm4, %v1925_v58, 0.0  ;;  %v1470_v31 = vsel %vm1422_vm15, %v1454_v27, 1.0  ;;  %v1457_v50 = vmul.f32 %v4769_v32, %v5872_v44  ;;  %v1493_v58 = vmax.f32 %v6237_v12, 1e-15 }
 0x368   : > { %v1879_v59 = vpop.f32.mrb[5].mxu1  ;;  %1965 = vadd.xlane.f32.xlu1 %v1964_v18  ;;  %v6434_v63 = vmul.f32 %v1470_v31, %v1406_v37  ;;  %v6438_v20 = vmul.f32 %v1869_v61, %v1470_v31  ;;  %v1385_v35 = vsel %vm1384_vm3, %v6394_v28, %v1383_v30  ;;  %v1494_v30 = vmax.f32 %v6248_v15, 1e-15 }
 0x369   : > { %v4771_v46 = vpop.eup %4770  ;;  %v1473_v61 = vsel %vm1425_vm5, %v1457_v50, 1.0  ;;  %v1388_v0 = vsel %vm1386_vm6, %v1387_v39, %v1385_v35  ;;  %v2140_v41 = vmul.f32 %v1493_v58, %v5516_v25  ;;  %v2142_v35 = vmul.f32 %v1495_v1, %v5516_v25 }
 0x36a   : > { %9069 = vst [vmem:[#allocation18_spill] sm:$0xff] %v6438_v20  ;;  %v1924_v37 = vmul.f32 %v6438_v20, %v6438_v20  ;;  %v1456_v52 = vmul.f32 %v4771_v46, %v5872_v44  ;;  %v6452_v42 = vmul.f32 %v1473_v61, %v1409_v38  ;;  %v6454_v3 = vmul.f32 %v4491_v8, %v1473_v61 }
 0x36b   : > { %v4494_v23 = vpop.f32.mrb[6].mxu1  ;;  %v1410_v36 = vmax.f32 %v1388_v0, 1e-15  ;;  %v2141_v15 = vmul.f32 %v1494_v30, %v5516_v25 }
 0x36c   : > { %v6428_v57 = vpop.f32.mrb[7].mxu1  ;;  %v1961_v62 = vsel %vm1930_vm4, %v1924_v37, 0.0  ;;  %9070 = vst [vmem:[#allocation19_spill] sm:$0xff] %v6454_v3  ;;  %v1472_v40 = vsel %vm1424_vm7, %v1456_v52, 1.0  ;;  %v1927_v4 = vmul.f32 %v6454_v3, %v6454_v3  ;;  %v6495_v37 = vclamps-f32 %v2140_v41, 0.999999 }
 0x36d   : > { %1962 = vadd.xlane.f32.xlu0 %v1961_v62  ;;  %v6456_v11 = vmul.f32 %v1472_v40, %v1408_v21  ;;  %v6458_v14 = vmul.f32 %v1879_v59, %v1472_v40  ;;  %4774 = vrcp.f32 %v1410_v36  ;;  %v1492_v21 = vmax.f32 %v6221_v13, 1e-15 }
 0x36e   : > { %v1970_v47 = vsel %vm1930_vm4, %v1927_v4, 0.0  ;;  %vm1426_vm8 = vcmp.gt.f32.partialorder %v1410_v36, %v5872_v44  ;;  %v6503_v52 = vclamps-f32 %v2142_v35, 0.999999  ;;  %v2196_v0 = vadd.f32 1.0, %v6495_v37 }
 0x36f   : > { %9071 = vst [vmem:[#allocation20_spill] sm:$0xff] %v6458_v14  ;;  %v1926_v28 = vmul.f32 %v6458_v14, %v6458_v14  ;;  %1971 = vadd.xlane.f32.xlu1 %v1970_v47  ;;  %v4773_v8 = vpop.eup %4772  ;;  %v2139_v48 = vmul.f32 %v1492_v21, %v5516_v25  ;;  %v2199_v40 = vmul.f32 -0.5, %v6495_v37  ;;  %v8987_v4 = vmax.f32 %v6276_v5, 1e-15 }
 0x370   : > { %v1459_v59 = vmul.f32 %v4773_v8, %v5872_v44  ;;  %v6516_v8 = vsub.f32 0.0, %v6495_v37  ;;  %v8988_v41 = vmax.f32 %v6301_v43, 1e-15 }
 0x371   : > { %v1967_v38 = vsel %vm1930_vm4, %v1926_v28, 0.0  ;;  %v6475_v56 = vclamps-f32 %v2139_v48, 0.999999  ;;  %v2214_v48 = vadd.f32 1.0, %v6503_v52 }
 0x372   : > { %1968 = vadd.xlane.f32.xlu0 %v1967_v38  ;;  %v1475_v22 = vsel %vm1427_vm0, %v1459_v59, 1.0  ;;  %v8986_v38 = vmax.f32 %v6281_v26, 1e-15 }
 0x373   : > { %v6471_v27 = vmul.f32 %v1475_v22, %v1411_v55  ;;  %v6473_v18 = vmul.f32 %v4494_v23, %v1475_v22  ;;  %v2187_v6 = vadd.f32 1.0, %v6475_v56  ;;  %v6492_v50 = vsub.f32 0.0, %v6475_v56 }
 0x374   : > { %v2190_v39 = vmul.f32 -0.5, %v6475_v56 }
 0x375   : > { %9072 = vst [vmem:[#allocation21_spill] sm:$0xff] %v6473_v18  ;;  %v1929_v16 = vmul.f32 %v6473_v18, %v6473_v18  ;;  %4776 = vlog2.f32 %v2187_v6  ;;  %v2347_v61 = vadd.f32 1.0, %v6492_v50  ;;  %v6521_v22 = vmul.f32 -0.5, %v6492_v50 }
 0x376   : > { %4778 = vrcp.f32 %v1492_v21  ;;  %v2191_v28 = vadd.f32 1.0, %v2190_v39  ;;  %v2200_v21 = vadd.f32 1.0, %v2199_v40  ;;  %v2145_v6 = vmul.f32 %v8986_v38, %v5516_v25 }
 0x377   : > { %v4775_v31 = vpop.eup %4774  ;;  %v1976_v23 = vsel %vm1930_vm4, %v1929_v16, 0.0  ;;  %4780 = vrcp.f32 %v1493_v58  ;;  %v2143_v16 = vmul.f32 %v8987_v4, %v5516_v25  ;;  %v9080_v18 = vmax.f32 %v6262_v51, 1e-15 }
 0x378   : > { %v1458_v13 = vmul.f32 %v4775_v31, %v5872_v44  ;;  %1977 = vadd.xlane.f32.xlu1 %v1976_v23  ;;  %4782 = vlog2.f32 %v2347_v61  ;;  %v2217_v31 = vmul.f32 -0.5, %v6503_v52  ;;  %v6546_v39 = vmul.f32 %v6495_v37, %v2200_v21 }
 0x379   : > { %4784 = vlog2.f32 %v2196_v0  ;;  %v6549_v61 = vmul.f32 -0.5, %v6516_v8  ;;  %v6559_v21 = vclamps-f32 %v2145_v6, 0.999999 }
 0x37a   : > { %v1474_v12 = vsel %vm1426_vm8, %v1458_v13, 1.0  ;;  %v6526_v13 = vsub.f32 0.0, %v6503_v52  ;;  %4786 = vrcp.f32 %v1495_v1  ;;  %v2218_v0 = vadd.f32 1.0, %v2217_v31 }
 0x37b   : > { %v6485_v32 = vmul.f32 %v1474_v12, %v1410_v36  ;;  %v6488_v55 = vmul.f32 %v6428_v57, %v1474_v12  ;;  %v8989_v57 = vmax.f32 %v6262_v51, 1e-15  ;;  %v6508_v36 = vclamps-f32 %v2141_v15, 0.999999  ;;  %9074 = vst [vmem:[#allocation23_spill] sm:$0xff] %v6559_v21 }
 0x37c   : > { %v6533_v12 = vmul.f32 %v6475_v56, %v2191_v28  ;;  %v2356_v15 = vadd.f32 1.0, %v6516_v8  ;;  %4788 = vlog2.f32 %v2214_v48  ;;  %v2374_v40 = vadd.f32 1.0, %v6526_v13 }
 0x37d   : > { %9073 = vst [vmem:[#allocation22_spill] sm:$0xff] %v6488_v55  ;;  %v1928_v46 = vmul.f32 %v6488_v55, %v6488_v55  ;;  %v2144_v47 = vmul.f32 %v8989_v57, %v5516_v25  ;;  %v2205_v58 = vadd.f32 1.0, %v6508_v36  ;;  %v2208_v1 = vmul.f32 -0.5, %v6508_v36 }
 0x37e   : > { %v6553_v28 = vclamps-f32 %v2143_v16, 0.999999  ;;  %v2241_v19 = vadd.f32 1.0, %v6559_v21  ;;  %v6612_v44 = vsub.f32 0.0, %v6559_v21  ;;  %v2244_v53 = vmul.f32 -0.5, %v6559_v21 }
 0x37f   : > { %v1973_v62 = vsel %vm1930_vm4, %v1928_v46, 0.0  ;;  %v6535_v23 = vclamps-f32 %v2144_v47, 0.999999  ;;  %v6543_v46 = vsub.f32 0.0, %v6508_v36  ;;  %4790 = vlog2.f32 %v2205_v58 }
 0x380   : > { %1974 = vadd.xlane.f32.xlu0 %v1973_v62  ;;  %v4777_v62 = vpop.eup %4776  ;;  %v2146_v47 = vmul.f32 %v8988_v41, %v5516_v25  ;;  %4792 = vrcp.f32 %v1494_v30  ;;  %v6572_v30 = vmul.f32 -0.5, %v6526_v13  ;;  %v2209_v6 = vadd.f32 1.0, %v2208_v1  ;;  %9082 = vst [vmem:[#allocation28_spill] sm:$0xff] %v6612_v44 }
 0x381   : > { %v2232_v48 = vadd.f32 1.0, %v6535_v23  ;;  %v6562_v58 = vpop.eup %4778  ;;  %4794 = vlog2.f32 %v2356_v15  ;;  %v2365_v35 = vadd.f32 1.0, %v6543_v46  ;;  %v6569_v4 = vmul.f32 0.6931472, %v4777_v62 }
 0x382   : > { %9075 = vst [vmem:[#allocation24_spill] sm:$0xff] %v6562_v58  ;;  %v6567_v38 = vpop.eup %4780  ;;  %v6578_v15 = vmul.f32 %v6503_v52, %v2218_v0  ;;  %4796 = vlog2.f32 %v2374_v40  ;;  %v2223_v31 = vadd.f32 1.0, %v6553_v28  ;;  %v6581_v59 = vclamps-f32 %v2146_v47, 0.999999 }
 0x383   : > { %9076 = vst [vmem:[#allocation25_spill] sm:$0xff] %v6567_v38  ;;  %v6575_v57 = vpop.eup %4782  ;;  %v6584_v62 = vmul.f32 -0.5, %v6543_v46  ;;  %4798 = vlog2.f32 %v2232_v48  ;;  %v9077_v1 = vmax.f32 %v6356_v33, 1e-15  ;;  %v6591_v0 = vsub.f32 0.0, %v6535_v23 }
 0x384   : > { %v4785_v16 = vpop.eup %4784  ;;  %4800 = vlog2.f32 %v2365_v35  ;;  %v9078_v40 = vmax.f32 %v6381_v7, 1e-15  ;;  %v6600_v48 = vmul.f32 %v6508_v36, %v2209_v6  ;;  %v6606_v35 = vsub.f32 0.0, %v6553_v28 }
 0x385   : > { %v2148_v41 = vmul.f32 %v9077_v1, %v5516_v25  ;;  %v6597_v55 = vpop.eup %4786  ;;  %4802 = vrcp.f32 %v9080_v18  ;;  %v2235_v1 = vmul.f32 -0.5, %v6535_v23  ;;  %v6608_v3 = vmul.f32 0.6931472, %v4785_v16 }
 0x386   : > { %v2147_v47 = vmul.f32 %v9078_v40, %v5516_v25  ;;  %9079 = vst [vmem:[#allocation26_spill] sm:$0xff] %v6597_v55  ;;  %9081 = vst [vmem:[#allocation27_spill] sm:$0xff] %v6606_v35  ;;  %v4789_v14 = vpop.eup %4788  ;;  %4804 = vlog2.f32 %v2223_v31  ;;  %v2250_v40 = vadd.f32 1.0, %v6581_v59  ;;  %v2226_v51 = vmul.f32 -0.5, %v6553_v28 }
 0x387   : > { %4806 = vlog2.f32 %v2241_v19  ;;  %v6616_v18 = vclamps-f32 %v2148_v41, 0.999999  ;;  %v2392_v54 = vadd.f32 1.0, %v6591_v0  ;;  %v9083_v31 = vmax.f32 %v6416_v17, 1e-15 }
 0x388   : > { %v6620_v16 = vclamps-f32 %v2147_v47, 0.999999  ;;  %v2236_v2 = vadd.f32 1.0, %v2235_v1  ;;  %v9085_v6 = vmax.f32 %v6276_v5, 1e-15  ;;  %v2383_v19 = vadd.f32 1.0, %v6606_v35 }
 0x389   : > { %v4791_v20 = vpop.eup %4790  ;;  %v2150_v29 = vmul.f32 %v9083_v31, %v5516_v25  ;;  %v6633_v60 = vmul.f32 0.6931472, %v4789_v14  ;;  %v2401_v34 = vadd.f32 1.0, %v6612_v44  ;;  %v6639_v31 = vmul.f32 -0.5, %v6591_v0 }
 0x38a   : > { %v6625_v45 = vpop.eup %4792  ;;  %4808 = vrcp.f32 %v9085_v6  ;;  %v6635_v47 = vmul.f32 0.6931472, %v4791_v20  ;;  %v2227_v1 = vadd.f32 1.0, %v2226_v51  ;;  %v9086_v5 = vmax.f32 %v6281_v26, 1e-15 }
 0x38b   : > { %9084 = vst [vmem:[#allocation29_spill] sm:$0xff] %v6625_v45  ;;  %v6631_v10 = vpop.eup %4794  ;;  %4810 = vlog2.f32 %v2250_v40  ;;  %v2268_v6 = vadd.f32 1.0, %v6616_v18  ;;  %v2245_v41 = vadd.f32 1.0, %v2244_v53  ;;  %v2259_v14 = vadd.f32 1.0, %v6620_v16 }
 0x38c   : > { %4812 = vrcp.f32 %v9086_v5  ;;  %v6644_v49 = vpop.eup %4796  ;;  %v6647_v20 = vclamps-f32 %v2150_v29, 0.999999  ;;  %v6650_v24 = vmul.f32 %v6535_v23, %v2236_v2  ;;  %v2253_v51 = vmul.f32 -0.5, %v6581_v59 }
 0x38d   : > { %4814 = vlog2.f32 %v2392_v54  ;;  %v4799_v40 = vpop.eup %4798  ;;  %v9088_v26 = vmax.f32 %v6434_v63, 1e-15  ;;  %v6660_v53 = vmul.f32 -0.5, %v6606_v35  ;;  %v6663_v29 = vsub.f32 0.0, %v6581_v59 }
 0x38e   : > { %9087 = vst [vmem:[#allocation30_spill] sm:$0xff] %v6650_v24  ;;  %4816 = vlog2.f32 %v2383_v19  ;;  %v6656_v9 = vpop.eup %4800  ;;  %v6668_v19 = vmul.f32 %v6553_v28, %v2227_v1  ;;  %v6674_v54 = vmul.f32 0.6931472, %v4799_v40  ;;  %v6677_v58 = vmul.f32 %v6559_v21, %v2245_v41 }
 0x38f   : > { %v2149_v5 = vmul.f32 %v9088_v26, %v5516_v25  ;;  %9089 = vst [vmem:[#allocation31_spill] sm:$0xff] %v6660_v53  ;;  %9090 = vst [vmem:[#allocation32_spill] sm:$0xff] %v6663_v29  ;;  %4818 = vlog2.f32 %v2401_v34  ;;  %v6665_v2 = vpop.eup %4802  ;;  %v6672_v26 = vmul.f32 -0.5, %v6612_v44  ;;  %v2286_v34 = vadd.f32 1.0, %v6647_v20 }
 0x390   : > { %9091 = vst [vmem:[#allocation33_spill] sm:$0xff] %v6665_v2  ;;  %9092 = vst [vmem:[#allocation34_spill] sm:$0xff] %v6668_v19  ;;  %4820 = vlog2.f32 %v2268_v6  ;;  %v4805_v55 = vpop.eup %4804  ;;  %v2254_v2 = vadd.f32 1.0, %v2253_v51  ;;  %v2271_v1 = vmul.f32 -0.5, %v6616_v18  ;;  %v9096_v24 = vmax.f32 %v6301_v43, 1e-15 }
 0x391   : > { %9093 = vst [vmem:[#allocation35_spill] sm:$0xff] %v6672_v26  ;;  %9094 = vst [vmem:[#allocation36_spill] sm:$0xff] %v6674_v54  ;;  %4822 = vlog2.f32 %v2259_v14  ;;  %v4807_v38 = vpop.eup %4806  ;;  %v6681_v19 = vclamps-f32 %v2149_v5, 0.999999  ;;  %v2410_v6 = vadd.f32 1.0, %v6663_v29  ;;  %v6688_v40 = vsub.f32 0.0, %v6616_v18 }
 0x392   : > { %9095 = vst [vmem:[#allocation37_spill] sm:$0xff] %v6677_v58  ;;  %4824 = vrcp.f32 %v9096_v24  ;;  %v6693_v58 = vmul.f32 0.6931472, %v4805_v55  ;;  %v6697_v5 = vmul.f32 -0.5, %v6663_v29  ;;  %v2262_v45 = vmul.f32 -0.5, %v6620_v16 }
 0x393   : > { %9097 = vst [vmem:[#allocation38_spill] sm:$0xff] %v6688_v40  ;;  %v6700_v24 = vmul.f32 0.6931472, %v4807_v38  ;;  %v2274_v54 = vand.u32 2147483647, %v6616_v18  ;;  %v6704_v44 = vsub.f32 0.0, %v6620_v16  ;;  %4826 = vlog2.f32 %v2286_v34 }
 0x394   : > { %v6691_v14 = vpop.eup %4808  ;;  %9099 = vst [vmem:[#allocation40_spill] sm:$0xff] %v6693_v58  ;;  %9100 = vst [vmem:[#allocation41_spill] sm:$0xff] %v6697_v5  ;;  %v6709_v55 = vmul.f32 %v6581_v59, %v2254_v2  ;;  %v2272_v51 = vadd.f32 1.0, %v2271_v1  ;;  %v9105_v58 = vmax.f32 %v6452_v42, 1e-15  ;;  %4828 = vlog2.f32 %v2410_v6 }
 0x395   : > { %9098 = vst [vmem:[#allocation39_spill] sm:$0xff] %v6691_v14  ;;  %v4811_v43 = vpop.eup %4810  ;;  %9101 = vst [vmem:[#allocation42_spill] sm:$0xff] %v6700_v24  ;;  %v2277_v14 = vadd.f32 1.0, %v6681_v19  ;;  %v2428_v24 = vadd.f32 1.0, %v6688_v40  ;;  %v2431_v29 = vmul.f32 -0.5, %v6688_v40  ;;  %v2263_v21 = vadd.f32 1.0, %v2262_v45 }
 0x396   : > { %9102 = vst [vmem:[#allocation43_spill] sm:$0xff] %v6704_v44  ;;  %v6706_v41 = vpop.eup %4812  ;;  %9104 = vst [vmem:[#allocation45_spill] sm:$0xff] %v6709_v55  ;;  %v2152_v26 = vmul.f32 %v9105_v58, %v5516_v25  ;;  %v9107_v34 = vmax.f32 %v6456_v11, 1e-15  ;;  %v6724_v1 = vmul.f32 0.6931472, %v4811_v43 }
 0x397   : > { %9103 = vst [vmem:[#allocation44_spill] sm:$0xff] %v6706_v41  ;;  %v6715_v38 = vpop.eup %4814  ;;  %v9110_v55 = vmax.f32 %v6356_v33, 1e-15  ;;  %v2265_v58 = vand.u32 2147483647, %v6620_v16  ;;  %v6739_v43 = vsub.f32 0.0, %v6647_v20  ;;  %v6742_v33 = vmul.f32 %v6616_v18, %v2272_v51 }
 0x398   : > { %9106 = vst [vmem:[#allocation46_spill] sm:$0xff] %v6715_v38  ;;  %v2151_v41 = vmul.f32 %v9107_v34, %v5516_v25  ;;  %v6722_v2 = vpop.eup %4816  ;;  %9109 = vst [vmem:[#allocation48_spill] sm:$0xff] %v6724_v1  ;;  %vm6731_vm9 = vcmp.lt.f32.partialorder %v2274_v54, 0.0004427343  ;;  %v9114_v40 = vmax.f32 %v6381_v7, 1e-15  ;;  %v6759_v18 = vmul.f32 %v6620_v16, %v2263_v21 }
 0x399   : > { %9108 = vst [vmem:[#allocation47_spill] sm:$0xff] %v6722_v2  ;;  %4830 = vrcp.f32 %v9110_v55  ;;  %v6729_v5 = vpop.eup %4818  ;;  %v2419_v34 = vadd.f32 1.0, %v6704_v44  ;;  %9115 = vst [vmem:[#allocation50_spill] sm:$0xff] %v6739_v43  ;;  %v2289_v45 = vmul.f32 -0.5, %v6647_v20  ;;  %v6745_v55 = vclamps-f32 %v2152_v26, 0.999999 }
 0x39a   : > { %9111 = vst [vmem:[#allocation49_spill] sm:$0xff] %v6729_v5  ;;  %4832 = vrcp.f32 %v9114_v40  ;;  %v4821_v1 = vpop.eup %4820  ;;  %v9116_v5 = vand.u32 2147483647, %v6495_v37  ;;  %v6753_v40 = vadd.f32 1.0, %v2431_v29  ;;  %v2280_v2 = vmul.f32 -0.5, %v6681_v19 }
 0x39b   : > { %4834 = vlog2.f32 %v2277_v14  ;;  %v4823_v54 = vpop.eup %4822  ;;  %v6756_v38 = vclamps-f32 %v2151_v41, 0.999999  ;;  %vm6761_vm11 = vcmp.lt.f32.partialorder %v2265_v58, 0.0004427343  ;;  %v2422_v37 = vmul.f32 -0.5, %v6704_v44 }
 0x39c   : > { %vm6749_vm10 = vcmp.lt.f32.partialorder %v9116_v5, 0.0004427343  ;;  %4836 = vlog2.f32 %v2428_v24  ;;  %9119 = vst [vmem:[#allocation51_spill] sm:$0xff] %v6753_v40  ;;  %v6767_v14 = vsub.f32 0.0, %v6681_v19  ;;  %v6769_v51 = vpop.eup %4824  ;;  %v6771_v29 = vmul.f32 0.6931472, %v4821_v1 }
 0x39d   : > { %9123 = vst [vmem:[#allocation53_spill] sm:$0xff] %v6769_v51  ;;  %4838 = vlog2.f32 %v2419_v34  ;;  %v2292_v41 = vand.u32 2147483647, %v6647_v20  ;;  %v2446_v5 = vadd.f32 1.0, %v6739_v43  ;;  %v6775_v21 = vmul.f32 0.6931472, %v4823_v54  ;;  %v4827_v40 = vpop.eup %4826 }
 0x39e   : > { %9122 = vst [vmem:[#allocation52_spill] sm:$0xff] %v6767_v14  ;;  %v9125_v16 = vmax.f32 %v6416_v17, 1e-15  ;;  %v2290_v24 = vadd.f32 1.0, %v2289_v45  ;;  %v2304_v58 = vadd.f32 1.0, %v6745_v55  ;;  %v2449_v44 = vmul.f32 -0.5, %v6739_v43  ;;  %v6789_v45 = vpop.eup %4828 }
 0x39f   : > { %9124 = vst [vmem:[#allocation54_spill] sm:$0xff] %v6775_v21  ;;  %v2281_v35 = vadd.f32 1.0, %v2280_v2  ;;  %v2283_v1 = vand.u32 2147483647, %v6681_v19  ;;  %v2295_v34 = vadd.f32 1.0, %v6756_v38  ;;  %v6783_v51 = vadd.f32 1.0, %v2422_v37 }
 0x3a0   : > { %4840 = vrcp.f32 %v9125_v16  ;;  %v9126_v53 = vmax.f32 %v6434_v63, 1e-15  ;;  %v2437_v54 = vadd.f32 1.0, %v6767_v14  ;;  %v2440_v17 = vmul.f32 -0.5, %v6767_v14 }
 0x3a1   : > { %v9127_v16 = vand.u32 2147483647, %v6475_v56  ;;  %vm6801_vm13 = vcmp.lt.f32.partialorder %v2292_v41, 0.0004427343  ;;  %v9130_v63 = vmov 0  ;;  %v6815_v14 = vmul.f32 %v6647_v20, %v2290_v24 }
 0x3a2   : > { %4842 = vrcp.f32 %v9126_v53  ;;  %v9131_v63 = vsel %vm6801_vm13, 4294967295, %v9130_v63  ;;  %v6819_v2 = vadd.f32 1.0, %v2449_v44  ;;  %vm6824_vm14 = vcmp.lt.f32.partialorder %v2283_v1, 0.0004427343 }
 0x3a3   : > { %vm6793_vm12 = vcmp.lt.f32.partialorder %v9127_v16, 0.0004427343  ;;  %9132 = vst [vmem:[#allocation55_spill] sm:$0xff] %v9131_v63  ;;  %4844 = vlog2.f32 %v2446_v5  ;;  %v6806_v37 = vpop.eup %4830  ;;  %v6812_v16 = vmul.f32 0.6931472, %v4827_v40  ;;  %9135 = vst [vmem:[#allocation58_spill] sm:$0xff] %v6815_v14  ;;  %v6822_v5 = vmul.f32 %v6681_v19, %v2281_v35 }
 0x3a4   : > { %9133 = vst [vmem:[#allocation56_spill] sm:$0xff] %v6806_v37  ;;  %4846 = vlog2.f32 %v2304_v58  ;;  %v6817_v41 = vpop.eup %4832  ;;  %v9137_v53 = vmov 0  ;;  %v6828_v40 = vadd.f32 1.0, %v2440_v17  ;;  %v2307_v20 = vmul.f32 -0.5, %v6745_v55 }
 0x3a5   : > { %9134 = vst [vmem:[#allocation57_spill] sm:$0xff] %v6812_v16  ;;  %9136 = vst [vmem:[#allocation59_spill] sm:$0xff] %v6817_v41  ;;  %v9138_v53 = vsel %vm6824_vm14, 4294967295, %v9137_v53  ;;  %4848 = vlog2.f32 %v2295_v34  ;;  %v4835_v37 = vpop.eup %4834  ;;  %v2204_v44 = vsel %vm6749_vm10, %v6546_v39, %v6608_v3  ;;  %v9140_v35 = vmax.f32 %v6452_v42, 1e-15  ;;  %v9223_v6 = vld [vmem:[#allocation52_spill] sm:$0xff] }
 0x3a6   : > { %9139 = vst [vmem:[#allocation60_spill] sm:$0xff] %v9138_v53  ;;  %4850 = vlog2.f32 %v2437_v54  ;;  %v6835_v24 = vpop.eup %4836  ;;  %v6840_v19 = vsub.f32 0.0, %v6745_v55  ;;  %v9142_v58 = vmax.f32 %v6471_v27, 1e-15  ;;  %v2360_v34 = vadd.f32 1.0, %v6549_v61 }
 0x3a7   : > { %4852 = vrcp.f32 %v9140_v35  ;;  %v2310_v3 = vand.u32 2147483647, %v6745_v55  ;;  %v9143_v39 = vmax.f32 %v6456_v11, 1e-15  ;;  %v2362_v42 = vand.u32 2147483647, %v6516_v8  ;;  %v6854_v54 = vpop.eup %4838 }
 0x3a8   : > { %9141 = vst [vmem:[#allocation61_spill] sm:$0xff] %v6840_v19  ;;  %v2154_v1 = vmul.f32 %v9142_v58, %v5516_v25  ;;  %v6856_v17 = vmul.f32 0.6931472, %v4835_v37  ;;  %v2298_v35 = vmul.f32 -0.5, %v6756_v38  ;;  %v6860_v61 = vsub.f32 0.0, %v6756_v38 }
 0x3a9   : > { %4854 = vrcp.f32 %v9143_v39  ;;  %v2358_v58 = vmul.f32 0.6931472, %v6631_v10  ;;  %v9145_v7 = vand.u32 2147483647, %v6503_v52  ;;  %v2308_v39 = vadd.f32 1.0, %v2307_v20 }
 0x3aa   : > { %v6863_v56 = vpop.eup %4840  ;;  %v2301_v41 = vand.u32 2147483647, %v6756_v38  ;;  %v1506_v37 = vmax.f32 %v6485_v32, 1e-15  ;;  %v2351_v16 = vadd.f32 1.0, %v6521_v22  ;;  %v2464_v14 = vadd.f32 1.0, %v6840_v19 }
 0x3ab   : > { %9144 = vst [vmem:[#allocation62_spill] sm:$0xff] %v6863_v56  ;;  %vm6867_vm15 = vcmp.lt.f32.partialorder %v9145_v7, 0.0004427343  ;;  %v6875_v63 = vclamps-f32 %v2154_v1, 0.999999  ;;  %v2361_v10 = vmul.f32 %v2360_v34, %v6516_v8  ;;  %v2467_v20 = vmul.f32 -0.5, %v6840_v19 }
 0x3ac   : > { %v2353_v56 = vand.u32 2147483647, %v6492_v50  ;;  %v6879_v52 = vpop.eup %4842  ;;  %vm6881_vm1 = vcmp.lt.f32.partialorder %v2310_v3, 0.0004427343  ;;  %vm6886_vm2 = vcmp.lt.f32.partialorder %v2362_v42, 0.0004427343  ;;  %v2195_v22 = vsel %vm6793_vm12, %v6533_v12, %v6569_v4 }
 0x3ad   : > { %9148 = vst [vmem:[#allocation63_spill] sm:$0xff] %v6879_v52  ;;  %v2349_v8 = vmul.f32 0.6931472, %v6575_v57  ;;  %v6895_v1 = vpop.eup %4844  ;;  %v2299_v3 = vadd.f32 1.0, %v2298_v35  ;;  %v2455_v42 = vadd.f32 1.0, %v6860_v61  ;;  %v2364_v52 = vsel %vm6886_vm2, %v2361_v10, %v2358_v58 }
 0x3ae   : > { %v4847_v19 = vpop.eup %4846  ;;  %v6905_v21 = vmul.f32 %v6745_v55, %v2308_v39  ;;  %v2458_v4 = vmul.f32 -0.5, %v6860_v61  ;;  %v2153_v57 = vmul.f32 %v1506_v37, %v5516_v25  ;;  %v2352_v12 = vmul.f32 %v2351_v16, %v6492_v50 }
 0x3af   : > { %v4849_v43 = vpop.eup %4848  ;;  %v9153_v53 = vand.u32 2147483647, %v6508_v36  ;;  %4856 = vlog2.f32 %v2464_v14  ;;  %vm6916_vm5 = vcmp.lt.f32.partialorder %v2301_v41, 0.0004427343  ;;  %v2325_v55 = vmul.f32 -0.5, %v6875_v63 }
 0x3b0   : > { %vm6921_vm6 = vcmp.lt.f32.partialorder %v2353_v56, 0.0004427343  ;;  %v6925_v10 = vpop.eup %4850  ;;  %v6927_v50 = vadd.f32 1.0, %v2467_v20  ;;  %v2492_v36 = vsub.f32 %v2204_v44, %v2364_v52  ;;  %v2378_v14 = vadd.f32 1.0, %v6572_v30 }
 0x3b1   : > { %vm6912_vm3 = vcmp.lt.f32.partialorder %v9153_v53, 0.0004427343  ;;  %v2355_v53 = vsel %vm6921_vm6, %v2352_v12, %v2349_v8  ;;  %v6932_v16 = vpop.eup %4852  ;;  %v6934_v41 = vmul.f32 0.6931472, %v4847_v19  ;;  %v6937_v32 = vmul.f32 %v6756_v38, %v2299_v3 }
 0x3b2   : > { %9160 = vst [vmem:[#allocation64_spill] sm:$0xff] %v6932_v16  ;;  %4858 = vlog2.f32 %v2455_v42  ;;  %v6940_v56 = vsub.f32 0.0, %v6875_v63  ;;  %v6944_v20 = vmul.f32 0.6931472, %v4849_v43  ;;  %v6946_v44 = vadd.f32 1.0, %v2458_v4 }
 0x3b3   : > { %9161 = vst [vmem:[#allocation65_spill] sm:$0xff] %v6937_v32  ;;  %v6942_v34 = vpop.eup %4854  ;;  %v2322_v52 = vadd.f32 1.0, %v6875_v63  ;;  %v6949_v30 = vclamps-f32 %v2153_v57, 0.999999  ;;  %v2326_v8 = vadd.f32 1.0, %v2325_v55  ;;  %v2491_v19 = vsub.f32 %v2195_v22, %v2355_v53 }
 0x3b4   : > { %9162 = vst [vmem:[#allocation66_spill] sm:$0xff] %v6942_v34  ;;  %9163 = vst [vmem:[#allocation67_spill] sm:$0xff] %v6944_v20  ;;  %v2222_v38 = vsel %vm6867_vm15, %v6578_v15, %v6633_v60  ;;  %v2376_v3 = vmul.f32 0.6931472, %v6644_v49  ;;  %v9165_v42 = vmax.f32 %v6471_v27, 1e-15  ;;  %v2379_v4 = vmul.f32 %v2378_v14, %v6526_v13 }
 0x3b5   : > { %9164 = vst [vmem:[#allocation68_spill] sm:$0xff] %v6949_v30  ;;  %v6958_v12 = vmul.f32 0.5, %v2492_v36  ;;  %v2380_v43 = vand.u32 2147483647, %v6526_v13  ;;  %v2328_v57 = vand.u32 2147483647, %v6875_v63  ;;  %v6976_v11 = vmul.f32 %v6875_v63, %v2326_v8 }
 0x3b6   : > { %4860 = vrcp.f32 %v9165_v42  ;;  %v2482_v60 = vadd.f32 1.0, %v6940_v56  ;;  %v2485_v49 = vmul.f32 -0.5, %v6940_v56  ;;  %v2313_v15 = vadd.f32 1.0, %v6949_v30  ;;  %v9183_v14 = vld [vmem:[#allocation41_spill] sm:$0xff] }
 0x3b7   : > { %4862 = vlog2.f32 %v2322_v52  ;;  %v2316_v13 = vmul.f32 -0.5, %v6949_v30  ;;  %v6979_v55 = vsub.f32 0.0, %v6949_v30  ;;  %v6981_v39 = vmul.f32 0.5, %v2491_v19 }
 0x3b8   : > { %4864 = vrcp.f32 %v1506_v37  ;;  %v9167_v36 = vand.u32 2147483647, %v6535_v23  ;;  %vm6989_vm0 = vcmp.lt.f32.partialorder %v2380_v43, 0.0004427343  ;;  %v2213_v63 = vsel %vm6912_vm3, %v6600_v48, %v6635_v47 }
 0x3b9   : > { %9166 = vst [vmem:[#allocation69_spill] sm:$0xff] %v6979_v55  ;;  %v2367_v37 = vmul.f32 0.6931472, %v6656_v9  ;;  %v2369_v52 = vadd.f32 1.0, %v6584_v62  ;;  %v6999_v8 = vpop.eup %4856  ;;  %v9172_v23 = vand.u32 2147483647, %v6553_v28  ;;  %4866 = vlog2.f32 %v2482_v60 }
 0x3ba   : > { %vm6985_vm7 = vcmp.lt.f32.partialorder %v9167_v36, 0.0004427343  ;;  %v7007_v42 = vadd.f32 1.0, %v2485_v49  ;;  %v2371_v35 = vand.u32 2147483647, %v6543_v46  ;;  %4868 = vlog2.f32 %v2313_v15 }
 0x3bb   : > { %vm7003_vm8 = vcmp.lt.f32.partialorder %v9172_v23, 0.0004427343  ;;  %v9176_v48 = vand.u32 2147483647, %v6581_v59  ;;  %v7017_v62 = vadd.f32 1.0, %v2316_v13  ;;  %v2382_v28 = vsel %vm6989_vm0, %v2379_v4, %v2376_v3  ;;  %v9180_v23 = vld [vmem:[#allocation31_spill] sm:$0xff] }
 0x3bc   : > { %9175 = vst [vmem:[#allocation70_spill] sm:$0xff] %v7007_v42  ;;  %v2396_v47 = vadd.f32 1.0, %v6639_v31  ;;  %v7022_v60 = vpop.eup %4858  ;;  %v2473_v49 = vadd.f32 1.0, %v6979_v55  ;;  %v2398_v36 = vand.u32 2147483647, %v6591_v0  ;;  %v2387_v59 = vadd.f32 1.0, %v9180_v23 }
 0x3bd   : > { %vm7013_vm10 = vcmp.lt.f32.partialorder %v9176_v48, 0.0004427343  ;;  %9179 = vst [vmem:[#allocation71_spill] sm:$0xff] %v7017_v62  ;;  %v9181_v48 = vld [vmem:[#allocation27_spill] sm:$0xff]  ;;  %v2476_v27 = vmul.f32 -0.5, %v6979_v55  ;;  %v2370_v15 = vmul.f32 %v2369_v52, %v6543_v46  ;;  %v9182_v13 = vld [vmem:[#allocation46_spill] sm:$0xff]  ;;  %v2494_v62 = vsub.f32 %v2222_v38, %v2382_v28 }
 0x3be   : > { %v2389_v43 = vand.u32 2147483647, %v9181_v48  ;;  %v2394_v22 = vmul.f32 0.6931472, %v9182_v13  ;;  %v2414_v3 = vadd.f32 1.0, %v9183_v14  ;;  %v9184_v4 = vld [vmem:[#allocation23_spill] sm:$0xff]  ;;  %v2397_v14 = vmul.f32 %v2396_v47, %v6591_v0 }
 0x3bf   : > { %v9185_v31 = vand.u32 2147483647, %v9184_v4  ;;  %vm7038_vm15 = vcmp.lt.f32.partialorder %v2371_v35, 0.0004427343  ;;  %v9190_v23 = vld [vmem:[#allocation47_spill] sm:$0xff]  ;;  %v9191_v55 = vld [vmem:[#allocation32_spill] sm:$0xff] }
 0x3c0   : > { %v2385_v34 = vmul.f32 0.6931472, %v9190_v23  ;;  %v2416_v16 = vand.u32 2147483647, %v9191_v55  ;;  %v7044_v46 = vpop.eup %4860  ;;  %vm7046_vm2 = vcmp.lt.f32.partialorder %v2328_v57, 0.0004427343  ;;  %v2373_v13 = vsel %vm7038_vm15, %v2370_v15, %v2367_v37 }
 0x3c1   : > { %vm7034_vm12 = vcmp.lt.f32.partialorder %v9185_v31, 0.0004427343  ;;  %9192 = vst [vmem:[#allocation31_spill] sm:$0xff] %v7044_v46  ;;  %v2412_v38 = vmul.f32 0.6931472, %v6789_v45  ;;  %v9195_v35 = vld [vmem:[#allocation35_spill] sm:$0xff]  ;;  %v2388_v57 = vmul.f32 %v2387_v59, %v9181_v48  ;;  %v4863_v15 = vpop.eup %4862  ;;  %v2415_v47 = vmul.f32 %v2414_v3, %v9191_v55 }
 0x3c2   : > { %v2405_v28 = vadd.f32 1.0, %v9195_v35  ;;  %vm7057_vm3 = vcmp.lt.f32.partialorder %v2398_v36, 0.0004427343  ;;  %vm7062_vm6 = vcmp.lt.f32.partialorder %v2389_v43, 0.0004427343  ;;  %v9200_v42 = vld [vmem:[#allocation28_spill] sm:$0xff]  ;;  %v7074_v46 = vpop.eup %4864 }
 0x3c3   : > { %v2407_v37 = vand.u32 2147483647, %v9200_v42  ;;  %v2400_v45 = vsel %vm7057_vm3, %v2397_v14, %v2394_v22  ;;  %v9201_v36 = vld [vmem:[#allocation49_spill] sm:$0xff]  ;;  %v9202_v43 = vld [vmem:[#allocation36_spill] sm:$0xff]  ;;  %v9203_v59 = vld [vmem:[#allocation30_spill] sm:$0xff]  ;;  %v2391_v20 = vsel %vm7062_vm6, %v2388_v57, %v2385_v34  ;;  %v2493_v22 = vsub.f32 %v2213_v63, %v2373_v13  ;;  %v7094_v53 = vpop.eup %4866 }
 0x3c4   : > { %v2403_v35 = vmul.f32 0.6931472, %v9201_v36  ;;  %v2240_v48 = vsel %vm6985_vm7, %v9203_v59, %v9202_v43  ;;  %vm7083_vm0 = vcmp.lt.f32.partialorder %v2416_v16, 0.0004427343  ;;  %v9206_v55 = vld [vmem:[#allocation40_spill] sm:$0xff]  ;;  %v9207_v3 = vld [vmem:[#allocation34_spill] sm:$0xff]  ;;  %v2406_v36 = vmul.f32 %v2405_v28, %v9200_v42  ;;  %v7108_v32 = vpop.eup %4868 }
 0x3c5   : > { %v2231_v14 = vsel %vm7003_vm8, %v9207_v3, %v9206_v55  ;;  %v2418_v31 = vsel %vm7083_vm0, %v2415_v47, %v2412_v38  ;;  %v7096_v43 = vmul.f32 0.6931472, %v4863_v15  ;;  %v2496_v16 = vsub.f32 %v2240_v48, %v2400_v45  ;;  %v9208_v57 = vld [vmem:[#allocation48_spill] sm:$0xff]  ;;  %v9209_v23 = vld [vmem:[#allocation45_spill] sm:$0xff]  ;;  %v9212_v42 = vld [vmem:[#allocation38_spill] sm:$0xff] }
 0x3c6   : > { %v2258_v63 = vsel %vm7013_vm10, %v9209_v23, %v9208_v57  ;;  %vm7104_vm7 = vcmp.lt.f32.partialorder %v2407_v37, 0.0004427343  ;;  %v2495_v38 = vsub.f32 %v2231_v14, %v2391_v20  ;;  %v2434_v15 = vand.u32 2147483647, %v9212_v42  ;;  %v9213_v59 = vld [vmem:[#allocation42_spill] sm:$0xff]  ;;  %v9214_v48 = vld [vmem:[#allocation37_spill] sm:$0xff] }
 0x3c7   : > { %v2409_v28 = vsel %vm7104_vm7, %v2406_v36, %v2403_v35  ;;  %v7117_v9 = vmul.f32 0.5, %v2494_v62  ;;  %v2498_v37 = vsub.f32 %v2258_v63, %v2418_v31  ;;  %v2430_v45 = vmul.f32 0.6931472, %v6835_v24  ;;  %v9215_v55 = vld [vmem:[#allocation43_spill] sm:$0xff]  ;;  %v9266_v58 = vld [vmem:[#allocation66_spill] sm:$0xff] }
 0x3c8   : > { %v7120_v47 = vadd.f32 1.0, %v2476_v27  ;;  %v2249_v20 = vsel %vm7034_vm12, %v9214_v48, %v9213_v59  ;;  %v2425_v3 = vand.u32 2147483647, %v9215_v55  ;;  %v2330_v35 = vsel %vm7046_vm2, %v6976_v11, %v7096_v43  ;;  %v9216_v27 = vld [vmem:[#allocation51_spill] sm:$0xff] }
 0x3c9   : > { %v7133_v14 = vmul.f32 0.5, %v2493_v22  ;;  %v2497_v24 = vsub.f32 %v2249_v20, %v2409_v28  ;;  %v7138_v31 = vmul.f32 0.5, %v2496_v16  ;;  %v7140_v30 = vmul.f32 0.5, %v2495_v38 }
 0x3ca   : > { %vm7142_vm8 = vcmp.lt.f32.partialorder %v2434_v15, 0.0004427343  ;;  %v7148_v23 = vmul.f32 0.5, %v2498_v37  ;;  %v2421_v63 = vmul.f32 0.6931472, %v6854_v54  ;;  %v2424_v19 = vmul.f32 %v6783_v51, %v9215_v55 }
 0x3cb   : > { %vm7156_vm10 = vcmp.lt.f32.partialorder %v2425_v3, 0.0004427343  ;;  %v7161_v28 = vmul.f32 0.6931472, %v6895_v1  ;;  %v7172_v59 = vmul.f32 0.6931472, %v6925_v10  ;;  %v7191_v36 = vmul.f32 %v6828_v40, %v9223_v6 }
 0x3cc   : > { %v2427_v10 = vsel %vm7156_vm10, %v2424_v19, %v2421_v63 }
 0x3da   : > { %v7055_v4 = vpop.xlane.xlu1 %1935 }
 0x3db   : > { %4870 = vrsqrt.f32 %v7055_v4  ;;  %v7068_v0 = vpop.xlane.xlu0 %1932  ;;  %vm1988_vm12 = vcmp.eq.f32.partialorder %v7055_v4, inf  ;;  %v1991_v48 = vand.u32 2147483648, %v7055_v4  ;;  %vm1990_vm15 = vcmp.eq.f32.partialorder %v7055_v4, 0.0 }
 0x3dc   : > { %4872 = vrsqrt.f32 %v7068_v0  ;;  %vm1981_vm3 = vcmp.eq.f32.partialorder %v7068_v0, inf }
 0x3de   : > { %v7098_v34 = vpop.xlane.xlu1 %1941 }
 0x3df   : > { %4874 = vrsqrt.f32 %v7098_v34  ;;  %v7111_v13 = vpop.xlane.xlu0 %1938  ;;  %vm2002_vm6 = vcmp.eq.f32.partialorder %v7098_v34, inf  ;;  %vm2004_vm0 = vcmp.eq.f32.partialorder %v7098_v34, 0.0  ;;  %v2005_v19 = vand.u32 2147483648, %v7098_v34 }
 0x3e0   : > { %4876 = vrsqrt.f32 %v7111_v13  ;;  %vm1995_vm7 = vcmp.eq.f32.partialorder %v7111_v13, inf }
 0x3e1   : > { %4878 = vlog2.f32 %v2473_v49  ;;  %v2433_v49 = vmul.f32 %v9216_v27, %v9212_v42  ;;  %v9221_v42 = vld [vmem:[#allocation50_spill] sm:$0xff] }
 0x3e2   : > { %v7165_v15 = vmul.f32 %v6819_v2, %v9221_v42  ;;  %v2452_v51 = vand.u32 2147483647, %v9221_v42  ;;  %v9222_v2 = vsel %vm6731_vm9, %v6742_v33, %v6771_v29  ;;  %vm1983_vm9 = vcmp.eq.f32.partialorder %v7068_v0, 0.0 }
 0x3e3   : > { %v2436_v22 = vsel %vm7142_vm8, %v2433_v49, %v2430_v45  ;;  %v7168_v45 = vmul.f32 0.5, %v2497_v24  ;;  %v1984_v49 = vand.u32 2147483648, %v7068_v0  ;;  %vm1997_vm8 = vcmp.eq.f32.partialorder %v7111_v13, 0.0 }
 0x3e4   : > { %v7131_v62 = vpop.xlane.xlu1 %1947  ;;  %v2500_v20 = vsub.f32 %v9222_v2, %v2436_v22  ;;  %vm7215_vm10 = vcmp.lt.f32.partialorder %v2452_v51, 0.0004427343 }
 0x3e5   : > { %4880 = vrsqrt.f32 %v7131_v62  ;;  %v7146_v57 = vpop.xlane.xlu0 %1944  ;;  %v4871_v16 = vpop.eup %4870  ;;  %v2019_v26 = vand.u32 2147483648, %v7131_v62 }
 0x3e6   : > { %4882 = vrsqrt.f32 %v7146_v57  ;;  %v4873_v37 = vpop.eup %4872  ;;  %v1987_v54 = vmul.f32 %v4871_v16, %v7055_v4  ;;  %v2012_v51 = vand.u32 2147483648, %v7146_v57 }
 0x3e7   : > { %v1980_v1 = vmul.f32 %v4873_v37, %v7068_v0 }
 0x3e8   : > { %v1989_v55 = vsel %vm1988_vm12, %v7055_v4, %v1987_v54  ;;  %vm2016_vm12 = vcmp.eq.f32.partialorder %v7131_v62, inf }
 0x3e9   : > { %v4875_v3 = vpop.eup %4874  ;;  %v1992_v24 = vsel %vm1990_vm15, %v1991_v48, %v1989_v55  ;;  %v1982_v27 = vsel %vm1981_vm3, %v7068_v0, %v1980_v1  ;;  %v1998_v0 = vand.u32 2147483648, %v7111_v13  ;;  %v9224_v48 = vld [vmem:[#allocation54_spill] sm:$0xff]  ;;  %vm2009_vm15 = vcmp.eq.f32.partialorder %v7146_v57, inf }
 0x3ea   : > { %v4877_v33 = vpop.eup %4876  ;;  %v2001_v29 = vmul.f32 %v4875_v3, %v7098_v34  ;;  %v2092_v22 = vmax.f32 %v1992_v24, 1e-15  ;;  %v1985_v63 = vsel %vm1983_vm9, %v1984_v49, %v1982_v27  ;;  %v9225_v1 = vsel %vm6761_vm11, %v6759_v18, %v9224_v48 }
 0x3eb   : > { %v7197_v4 = vpop.eup %4878  ;;  %v1994_v16 = vmul.f32 %v4877_v33, %v7111_v13  ;;  %v7201_v38 = vpop.xlane.xlu1 %1953  ;;  %v2499_v2 = vsub.f32 %v9225_v1, %v2427_v10  ;;  %v2091_v55 = vmax.f32 %v1985_v63, 1e-15  ;;  %vm2018_vm11 = vcmp.eq.f32.partialorder %v7131_v62, 0.0  ;;  %v9229_v1 = vld [vmem:[#allocation24_spill] sm:$0xff] }
 0x3ec   : > { %v2003_v40 = vsel %vm2002_vm6, %v7098_v34, %v2001_v29  ;;  %4884 = vrsqrt.f32 %v7201_v38  ;;  %v2556_v49 = vmul.f32 %v2092_v22, %v5516_v25  ;;  %v7227_v63 = vpop.xlane.xlu0 %1950  ;;  %vm2011_vm3 = vcmp.eq.f32.partialorder %v7146_v57, 0.0 }
 0x3ed   : > { %v2006_v37 = vsel %vm2004_vm0, %v2005_v19, %v2003_v40  ;;  %v1996_v54 = vsel %vm1995_vm7, %v7111_v13, %v1994_v16  ;;  %v2443_v19 = vand.u32 2147483647, %v9223_v6  ;;  %v9228_v16 = vld [vmem:[#allocation25_spill] sm:$0xff]  ;;  %v7238_v48 = vmul.f32 0.6931472, %v6999_v8 }
 0x3ee   : > { %v1999_v34 = vsel %vm1997_vm8, %v1998_v0, %v1996_v54  ;;  %v2094_v33 = vmax.f32 %v2006_v37, 1e-15  ;;  %v2124_v40 = vmul.f32 %v9228_v16, %v2092_v22  ;;  %v2555_v0 = vmul.f32 %v2091_v55, %v5516_v25 }
 0x3ef   : > { %v4881_v42 = vpop.eup %4880  ;;  %v2093_v13 = vmax.f32 %v1999_v34, 1e-15  ;;  %4886 = vrcp.f32 %v2556_v49  ;;  %v2123_v34 = vmul.f32 %v9229_v1, %v2091_v55  ;;  %v2454_v49 = vsel %vm7215_vm10, %v7165_v15, %v7161_v28 }
 0x3f0   : > { %v2015_v3 = vmul.f32 %v4881_v42, %v7131_v62  ;;  %v4883_v27 = vpop.eup %4882  ;;  %v2558_v37 = vmul.f32 %v2094_v33, %v5516_v25  ;;  %4888 = vrsqrt.f32 %v7227_v63  ;;  %vm2030_vm9 = vcmp.eq.f32.partialorder %v7201_v38, inf  ;;  %v7261_v15 = vpop.xlane.xlu0 %1956 }
 0x3f1   : > { %v2008_v10 = vmul.f32 %v4883_v27, %v7146_v57  ;;  %v2557_v6 = vmul.f32 %v2093_v13, %v5516_v25  ;;  %v2033_v28 = vand.u32 2147483648, %v7201_v38  ;;  %vm2032_vm6 = vcmp.eq.f32.partialorder %v7201_v38, 0.0 }
 0x3f2   : > { %v2017_v18 = vsel %vm2016_vm12, %v7131_v62, %v2015_v3  ;;  %v7234_v62 = vpop.xlane.xlu1 %1959  ;;  %v9230_v3 = vld [vmem:[#allocation26_spill] sm:$0xff]  ;;  %vm7282_vm0 = vcmp.lt.f32.partialorder %v2443_v19, 0.0004427343  ;;  %vm2023_vm7 = vcmp.eq.f32.partialorder %v7227_v63, inf }
 0x3f3   : > { %v2020_v29 = vsel %vm2018_vm11, %v2019_v26, %v2017_v18  ;;  %v2010_v42 = vsel %vm2009_vm15, %v7146_v57, %v2008_v10  ;;  %v2126_v27 = vmul.f32 %v9230_v3, %v2094_v33  ;;  %4890 = vrsqrt.f32 %v7234_v62  ;;  %v9231_v26 = vld [vmem:[#allocation29_spill] sm:$0xff] }
 0x3f4   : > { %v2013_v54 = vsel %vm2011_vm3, %v2012_v51, %v2010_v42  ;;  %v2096_v22 = vmax.f32 %v2020_v29, 1e-15  ;;  %v7245_v57 = vmul.f32 0.5, %v2500_v20  ;;  %4892 = vrcp.f32 %v2555_v0  ;;  %v9232_v33 = vld [vmem:[#allocation61_spill] sm:$0xff] }
 0x3f5   : > { %v2125_v55 = vmul.f32 %v9231_v26, %v2093_v13  ;;  %v2095_v18 = vmax.f32 %v2013_v54, 1e-15  ;;  %v2524_v10 = vmul.f32 %v6958_v12, %v2124_v40  ;;  %4894 = vrcp.f32 %v2558_v37  ;;  %v9233_v51 = vld [vmem:[#allocation33_spill] sm:$0xff]  ;;  %v9234_v40 = vld [vmem:[#allocation39_spill] sm:$0xff] }
 0x3f6   : > { %v4885_v8 = vpop.eup %4884  ;;  %v7257_v20 = vmul.f32 %v6927_v50, %v9232_v33  ;;  %4896 = vrcp.f32 %v2557_v6  ;;  %v2128_v24 = vmul.f32 %v9233_v51, %v2096_v22  ;;  %v2523_v13 = vmul.f32 %v6981_v39, %v2123_v34  ;;  %v7269_v42 = vpop.xlane.xlu1 %1965  ;;  %v9237_v6 = vld [vmem:[#allocation57_spill] sm:$0xff] }
 0x3f7   : > { %v2029_v29 = vmul.f32 %v4885_v8, %v7201_v38  ;;  %4898 = vrsqrt.f32 %v7261_v15  ;;  %v2526_v16 = vmul.f32 %v7117_v9, %v2126_v27  ;;  %v2127_v50 = vmul.f32 %v9234_v40, %v2095_v18  ;;  %v9236_v9 = vld [vmem:[#allocation58_spill] sm:$0xff] }
 0x3f8   : > { %4900 = vtanh.f32 %v2524_v10  ;;  %v2525_v37 = vmul.f32 %v7133_v14, %v2125_v55  ;;  %v7273_v39 = vmul.f32 0.5, %v2499_v2  ;;  %v2470_v1 = vand.u32 2147483647, %v9232_v33  ;;  %v9241_v2 = vld [vmem:[#allocation53_spill] sm:$0xff] }
 0x3f9   : > { %v2031_v12 = vsel %vm2030_vm9, %v7201_v38, %v2029_v29  ;;  %4902 = vrsqrt.f32 %v7269_v42  ;;  %v2528_v38 = vmul.f32 %v7138_v31, %v2128_v24  ;;  %v9238_v3 = vsel %vm6801_vm13, %v9236_v9, %v9237_v6  ;;  %v4887_v14 = vpop.eup %4886 }
 0x3fa   : > { %v2034_v0 = vsel %vm2032_vm6, %v2033_v28, %v2031_v12  ;;  %4904 = vtanh.f32 %v2523_v13  ;;  %v2502_v27 = vsub.f32 %v9238_v3, %v2454_v49  ;;  %v2560_v26 = vmul.f32 %v2096_v22, %v5516_v25  ;;  %v4889_v31 = vpop.eup %4888 }
 0x3fb   : > { %v2098_v54 = vmax.f32 %v2034_v0, 1e-15  ;;  %4906 = vtanh.f32 %v2526_v16  ;;  %v7289_v10 = vmul.f32 0.6931472, %v7022_v60  ;;  %v2527_v29 = vmul.f32 %v7140_v30, %v2127_v50 }
 0x3fc   : > { %4908 = vtanh.f32 %v2525_v37  ;;  %v2445_v19 = vsel %vm7282_vm0, %v7191_v36, %v7172_v59  ;;  %v2022_v22 = vmul.f32 %v4889_v31, %v7227_v63  ;;  %vm2025_vm13 = vcmp.eq.f32.partialorder %v7227_v63, 0.0  ;;  %v7326_v31 = vpop.xlane.xlu0 %1962  ;;  %v9251_v36 = vld [vmem:[#allocation59_spill] sm:$0xff] }
 0x3fd   : > { %v2130_v55 = vmul.f32 %v9241_v2, %v2098_v54  ;;  %v4891_v49 = vpop.eup %4890  ;;  %v2026_v33 = vand.u32 2147483648, %v7227_v63  ;;  %v2559_v24 = vmul.f32 %v2095_v18, %v5516_v25  ;;  %vm2044_vm8 = vcmp.eq.f32.partialorder %v7234_v62, inf }
 0x3fe   : > { %v4893_v51 = vpop.eup %4892  ;;  %v2043_v28 = vmul.f32 %v4891_v49, %v7234_v62  ;;  %4910 = vtanh.f32 %v2528_v38  ;;  %v2562_v13 = vmul.f32 %v2098_v54, %v5516_v25  ;;  %v2024_v12 = vsel %vm2023_vm7, %v7227_v63, %v2022_v22 }
 0x3ff   : > { %v2530_v60 = vmul.f32 %v7148_v23, %v2130_v55  ;;  %v4895_v30 = vpop.eup %4894  ;;  %4912 = vrcp.f32 %v2560_v26  ;;  %v2047_v16 = vand.u32 2147483648, %v7234_v62  ;;  %v2027_v23 = vsel %vm2025_vm13, %v2026_v33, %v2024_v12 }
 0x400   : > { %v4897_v40 = vpop.eup %4896  ;;  %v2045_v50 = vsel %vm2044_vm8, %v7234_v62, %v2043_v28  ;;  %vm2046_vm10 = vcmp.eq.f32.partialorder %v7234_v62, 0.0  ;;  %4914 = vtanh.f32 %v2527_v29  ;;  %v2097_v0 = vmax.f32 %v2027_v23, 1e-15  ;;  %v9244_v28 = vld [vmem:[#allocation7_spill] sm:$0xff] }
 0x401   : > { %v4899_v18 = vpop.eup %4898  ;;  %v2048_v37 = vsel %vm2046_vm10, %v2047_v16, %v2045_v50  ;;  %4916 = vtanh.f32 %v2530_v60  ;;  %vm7311_vm12 = vcmp.lt.f32.partialorder %v2470_v1, 0.0004427343  ;;  %v7318_v9 = vmul.f32 %v6946_v44, %v6860_v61 }
 0x402   : > { %v4901_v54 = vpop.eup %4900  ;;  %4918 = vrcp.f32 %v2559_v24  ;;  %v2100_v63 = vmax.f32 %v2048_v37, 1e-15  ;;  %v2036_v34 = vmul.f32 %v4899_v18, %v7261_v15  ;;  %vm2037_vm11 = vcmp.eq.f32.partialorder %v7261_v15, inf }
 0x403   : > { %v4903_v6 = vpop.eup %4902  ;;  %4920 = vrcp.f32 %v2562_v13  ;;  %v2040_v62 = vand.u32 2147483648, %v7261_v15  ;;  %v2588_v3 = vmul.f32 %v4901_v54, %v4887_v14  ;;  %v2561_v26 = vmul.f32 %v2097_v0, %v5516_v25  ;;  %v9245_v54 = vld [vmem:[#allocation8_spill] sm:$0xff] }
 0x404   : > { %v4905_v1 = vpop.eup %4904  ;;  %v2038_v2 = vsel %vm2037_vm11, %v7261_v15, %v2036_v34  ;;  %vm2039_vm15 = vcmp.eq.f32.partialorder %v7261_v15, 0.0  ;;  %v2057_v55 = vmul.f32 %v4903_v6, %v7269_v42  ;;  %vm2058_vm3 = vcmp.eq.f32.partialorder %v7269_v42, inf }
 0x405   : > { %v4907_v44 = vpop.eup %4906  ;;  %v2041_v29 = vsel %vm2039_vm15, %v2040_v62, %v2038_v2  ;;  %v2061_v49 = vand.u32 2147483648, %v7269_v42  ;;  %v2461_v22 = vand.u32 2147483647, %v6860_v61  ;;  %v2564_v33 = vmul.f32 %v2100_v63, %v5516_v25 }
 0x406   : > { %v4909_v14 = vpop.eup %4908  ;;  %v2059_v60 = vsel %vm2058_vm3, %v7269_v42, %v2057_v55  ;;  %vm2060_vm9 = vcmp.eq.f32.partialorder %v7269_v42, 0.0  ;;  %v7334_v15 = vmul.f32 0.5, %v2502_v27  ;;  %4922 = vrsqrt.f32 %v7326_v31  ;;  %v7344_v42 = vpop.xlane.xlu1 %1971 }
 0x407   : > { %v2062_v24 = vsel %vm2060_vm9, %v2061_v49, %v2059_v60  ;;  %v7338_v13 = vmul.f32 %v2588_v3, %v9244_v28  ;;  %v2587_v12 = vmul.f32 %v4905_v1, %v4893_v51  ;;  %4924 = vrcp.f32 %v2561_v26  ;;  %v9246_v3 = vld [vmem:[#allocation44_spill] sm:$0xff]  ;;  %v7352_v26 = vpop.xlane.xlu0 %1968  ;;  %v9253_v49 = vld [vmem:[#allocation9_spill] sm:$0xff] }
 0x408   : > { %v4911_v16 = vpop.eup %4910  ;;  %v2099_v23 = vmax.f32 %v2041_v29, 1e-15  ;;  %v2102_v50 = vmax.f32 %v2062_v24, 1e-15  ;;  %v2472_v18 = vsel %vm7311_vm12, %v7257_v20, %v7238_v48  ;;  %v2590_v6 = vmul.f32 %v4907_v44, %v4895_v30 }
 0x409   : > { %v4913_v37 = vpop.eup %4912  ;;  %v2620_v27 = vmul.f32 %v7338_v13, %v7338_v13  ;;  %v7349_v34 = vmul.f32 %v2587_v12, %v9245_v54  ;;  %v2589_v51 = vmul.f32 %v4909_v14, %v4897_v40  ;;  %v2129_v1 = vmul.f32 %v9246_v3, %v2097_v0  ;;  %v9249_v40 = vld [vmem:[#allocation56_spill] sm:$0xff] }
 0x40a   : > { %v4915_v62 = vpop.eup %4914  ;;  %4926 = vrcp.f32 %v2564_v33  ;;  %v2592_v2 = vmul.f32 %v4913_v37, %v4911_v16  ;;  %v9248_v20 = vsel %vm6824_vm14, %v6822_v5, %v6856_v17  ;;  %v2132_v55 = vmul.f32 %v9249_v40, %v2100_v63  ;;  %v9252_v17 = vld [vmem:[#allocation62_spill] sm:$0xff]  ;;  %v9255_v33 = vld [vmem:[#allocation11_spill] sm:$0xff]  ;;  %v9256_v54 = vld [vmem:[#allocation12_spill] sm:$0xff] }
 0x40b   : > { %v2501_v38 = vsub.f32 %v9248_v20, %v2445_v19  ;;  %v4917_v30 = vpop.eup %4916  ;;  %vm2051_vm6 = vcmp.eq.f32.partialorder %v7326_v31, inf  ;;  %4928 = vrsqrt.f32 %v7344_v42  ;;  %v9250_v8 = vsel %vm6881_vm1, %v6905_v21, %v6934_v41  ;;  %v9254_v41 = vld [vmem:[#allocation10_spill] sm:$0xff] }
 0x40c   : > { %v7372_v0 = vsub.f32 %v9250_v8, %v2472_v18  ;;  %v4919_v59 = vpop.eup %4918  ;;  %v2131_v44 = vmul.f32 %v9251_v36, %v2099_v23  ;;  %v2563_v5 = vmul.f32 %v2099_v23, %v5516_v25  ;;  %v2134_v19 = vmul.f32 %v9252_v17, %v2102_v50 }
 0x40d   : > { %v2638_v63 = vsel %vm1930_vm4, %v2620_v27, 0.0  ;;  %v4921_v29 = vpop.eup %4920  ;;  %4930 = vrsqrt.f32 %v7352_v26  ;;  %v2619_v7 = vmul.f32 %v7349_v34, %v7349_v34  ;;  %v7382_v21 = vmul.f32 %v2590_v6, %v9253_v49  ;;  %v7462_v36 = vpop.xlane.xlu0 %1974 }
 0x40e   : > { %2639 = vadd.xlane.f32.xlu1 %v2638_v63  ;;  %v7385_v14 = vmul.f32 %v2589_v51, %v9254_v41  ;;  %v7388_v60 = vmul.f32 %v2592_v2, %v9255_v33  ;;  %v2591_v24 = vmul.f32 %v4919_v59, %v4915_v62  ;;  %v2594_v28 = vmul.f32 %v4921_v29, %v4917_v30  ;;  %v9257_v51 = vld [vmem:[#allocation13_spill] sm:$0xff] }
 0x40f   : > { %v2529_v12 = vmul.f32 %v7168_v45, %v2129_v1  ;;  %v2635_v16 = vsel %vm1930_vm4, %v2619_v7, 0.0  ;;  %v2622_v23 = vmul.f32 %v7382_v21, %v7382_v21  ;;  %v2532_v37 = vmul.f32 %v7245_v57, %v2132_v55 }
 0x410   : > { %v2621_v18 = vmul.f32 %v7385_v14, %v7385_v14  ;;  %2636 = vadd.xlane.f32.xlu0 %v2635_v16  ;;  %v2624_v27 = vmul.f32 %v7388_v60, %v7388_v60  ;;  %v7400_v6 = vmul.f32 %v2591_v24, %v9256_v54  ;;  %v7403_v62 = vmul.f32 %v2594_v28, %v9257_v51  ;;  %v4923_v45 = vpop.eup %4922  ;;  %v7441_v24 = vpop.xlane.xlu1 %1977  ;;  %v9261_v54 = vld [vmem:[#allocation65_spill] sm:$0xff]  ;;  %v9262_v51 = vld [vmem:[#allocation67_spill] sm:$0xff] }
 0x411   : > { %4932 = vtanh.f32 %v2529_v12  ;;  %v2644_v3 = vsel %vm1930_vm4, %v2622_v23, 0.0  ;;  %v2531_v2 = vmul.f32 %v7273_v39, %v2131_v44  ;;  %v4925_v57 = vpop.eup %4924  ;;  %v2566_v48 = vmul.f32 %v2102_v50, %v5516_v25 }
 0x412   : > { %v2641_v1 = vsel %vm1930_vm4, %v2621_v18, 0.0  ;;  %4934 = vtanh.f32 %v2532_v37  ;;  %v2050_v20 = vmul.f32 %v4923_v45, %v7326_v31  ;;  %v2054_v30 = vand.u32 2147483648, %v7326_v31  ;;  %2645 = vadd.xlane.f32.xlu1 %v2644_v3 }
 0x413   : > { %v2623_v40 = vmul.f32 %v7400_v6, %v7400_v6  ;;  %v2650_v55 = vsel %vm1930_vm4, %v2624_v27, 0.0  ;;  %v2626_v8 = vmul.f32 %v7403_v62, %v7403_v62  ;;  %4936 = vtanh.f32 %v2531_v2 }
 0x414   : > { %v2534_v59 = vmul.f32 %v7334_v15, %v2134_v19  ;;  %v4927_v39 = vpop.eup %4926  ;;  %4938 = vrcp.f32 %v2563_v5  ;;  %v2052_v50 = vsel %vm2051_vm6, %v7326_v31, %v2050_v20  ;;  %vm2053_vm14 = vcmp.eq.f32.partialorder %v7326_v31, 0.0  ;;  %2642 = vadd.xlane.f32.xlu0 %v2641_v1 }
 0x415   : > { %vm7423_vm1 = vcmp.lt.f32.partialorder %v2461_v22, 0.0004427343  ;;  %v4929_v44 = vpop.eup %4928  ;;  %v2055_v17 = vsel %vm2053_vm14, %v2054_v30, %v2052_v50  ;;  %v2647_v63 = vsel %vm1930_vm4, %v2623_v40, 0.0  ;;  %v2517_v15 = vmul.f32 0.5, %v2501_v38  ;;  %v9260_v38 = vld [vmem:[#allocation63_spill] sm:$0xff] }
 0x416   : > { %4940 = vtanh.f32 %v2534_v59  ;;  %v2101_v5 = vmax.f32 %v2055_v17, 1e-15  ;;  %v2071_v19 = vmul.f32 %v4929_v44, %v7344_v42  ;;  %2651 = vadd.xlane.f32.xlu1 %v2650_v55  ;;  %v2463_v61 = vsel %vm7423_vm1, %v7318_v9, %v7289_v10  ;;  %v9265_v55 = vld [vmem:[#allocation14_spill] sm:$0xff]  ;;  %v9267_v44 = vld [vmem:[#allocation15_spill] sm:$0xff] }
 0x417   : > { %4942 = vrcp.f32 %v2566_v48  ;;  %v4931_v31 = vpop.eup %4930  ;;  %vm2072_vm0 = vcmp.eq.f32.partialorder %v7344_v42, inf  ;;  %vm2074_vm7 = vcmp.eq.f32.partialorder %v7344_v42, 0.0  ;;  %v2075_v22 = vand.u32 2147483648, %v7344_v42 }
 0x418   : > { %v2656_v29 = vsel %vm1930_vm4, %v2626_v8, 0.0  ;;  %v2133_v7 = vmul.f32 %v9260_v38, %v2101_v5  ;;  %v2565_v49 = vmul.f32 %v2101_v5, %v5516_v25  ;;  %v2073_v41 = vsel %vm2072_vm0, %v7344_v42, %v2071_v19  ;;  %2648 = vadd.xlane.f32.xlu0 %v2647_v63 }
 0x419   : > { %v2064_v33 = vmul.f32 %v4931_v31, %v7352_v26  ;;  %v2076_v10 = vsel %vm2074_vm7, %v2075_v22, %v2073_v41  ;;  %vm2065_vm13 = vcmp.eq.f32.partialorder %v7352_v26, inf  ;;  %v2068_v9 = vand.u32 2147483648, %v7352_v26 }
 0x41a   : > { %4944 = vrsqrt.f32 %v7441_v24  ;;  %v2104_v12 = vmax.f32 %v2076_v10, 1e-15  ;;  %vm2067_vm8 = vcmp.eq.f32.partialorder %v7352_v26, 0.0  ;;  %2657 = vadd.xlane.f32.xlu1 %v2656_v29  ;;  %v2488_v42 = vand.u32 2147483647, %v6940_v56 }
 0x41b   : > { %v4933_v28 = vpop.eup %4932  ;;  %v2066_v16 = vsel %vm2065_vm13, %v7352_v26, %v2064_v33  ;;  %v2533_v27 = vmul.f32 %v2517_v15, %v2133_v7  ;;  %v9263_v45 = vsel %vm6916_vm5, %v9261_v54, %v9262_v51  ;;  %4946 = vrcp.f32 %v2565_v49  ;;  %v9264_v26 = vld [vmem:[#allocation64_spill] sm:$0xff] }
 0x41c   : > { %v4935_v23 = vpop.eup %4934  ;;  %v2069_v18 = vsel %vm2067_vm8, %v2068_v9, %v2066_v16  ;;  %v2593_v37 = vmul.f32 %v4933_v28, %v4925_v57  ;;  %v2503_v3 = vsub.f32 %v9263_v45, %v2463_v61  ;;  %v2484_v48 = vmul.f32 0.6931472, %v7094_v53  ;;  %v9268_v53 = vld [vmem:[#allocation70_spill] sm:$0xff]  ;;  %v9271_v33 = vld [vmem:[#allocation16_spill] sm:$0xff] }
 0x41d   : > { %v2103_v1 = vmax.f32 %v2069_v18, 1e-15  ;;  %v2596_v2 = vmul.f32 %v4935_v23, %v4927_v39  ;;  %v4937_v20 = vpop.eup %4936  ;;  %v2136_v30 = vmul.f32 %v9264_v26, %v2104_v12  ;;  %v2568_v40 = vmul.f32 %v2104_v12, %v5516_v25  ;;  %v9272_v12 = vld [vmem:[#allocation17_spill] sm:$0xff] }
 0x41e   : > { %v7458_v8 = vmul.f32 %v2593_v37, %v9265_v55  ;;  %4948 = vtanh.f32 %v2533_v27  ;;  %v4939_v57 = vpop.eup %4938  ;;  %v2487_v17 = vmul.f32 %v9268_v53, %v6940_v56  ;;  %v2520_v15 = vmul.f32 0.5, %v7372_v0  ;;  %v9280_v53 = vld [vmem:[#allocation18_spill] sm:$0xff] }
 0x41f   : > { %v2135_v59 = vmul.f32 %v9266_v58, %v2103_v1  ;;  %v2567_v50 = vmul.f32 %v2103_v1, %v5516_v25  ;;  %v7465_v39 = vmul.f32 %v2596_v2, %v9267_v44  ;;  %4950 = vrsqrt.f32 %v7462_v36  ;;  %v9279_v58 = vld [vmem:[#allocation31_spill] sm:$0xff] }
 0x420   : > { %v4941_v63 = vpop.eup %4940  ;;  %v2519_v5 = vmul.f32 0.5, %v2503_v3  ;;  %vm7471_vm5 = vcmp.lt.f32.partialorder %v2488_v42, 0.0004427343  ;;  %v2625_v31 = vmul.f32 %v7458_v8, %v7458_v8  ;;  %v2595_v29 = vmul.f32 %v4939_v57, %v4937_v20  ;;  %v9273_v42 = vld [vmem:[#allocation69_spill] sm:$0xff]  ;;  %v9275_v20 = vld [vmem:[#allocation68_spill] sm:$0xff] }
 0x421   : > { %v4943_v61 = vpop.eup %4942  ;;  %v2628_v22 = vmul.f32 %v7465_v39, %v7465_v39  ;;  %v2490_v56 = vsel %vm7471_vm5, %v2487_v17, %v2484_v48  ;;  %4952 = vrcp.f32 %v2568_v40  ;;  %v2536_v7 = vmul.f32 %v2520_v15, %v2136_v30  ;;  %v9274_v48 = vld [vmem:[#allocation71_spill] sm:$0xff] }
 0x422   : > { %v2598_v38 = vmul.f32 %v4943_v61, %v4941_v63  ;;  %v2535_v0 = vmul.f32 %v2519_v5, %v2135_v59  ;;  %4954 = vrcp.f32 %v2567_v50  ;;  %v2653_v49 = vsel %vm1930_vm4, %v2625_v31, 0.0 }
 0x423   : > { %v2662_v41 = vsel %vm1930_vm4, %v2628_v22, 0.0  ;;  %v7484_v10 = vmul.f32 %v2595_v29, %v9271_v33  ;;  %v2315_v28 = vmul.f32 0.6931472, %v7108_v32  ;;  %2654 = vadd.xlane.f32.xlu0 %v2653_v49  ;;  %4956 = vtanh.f32 %v2536_v7 }
 0x424   : > { %v4945_v9 = vpop.eup %4944  ;;  %2663 = vadd.xlane.f32.xlu1 %v2662_v41  ;;  %v7488_v16 = vmul.f32 %v2598_v38, %v9272_v12  ;;  %v2479_v23 = vand.u32 2147483647, %v9273_v42  ;;  %4958 = vtanh.f32 %v2535_v0  ;;  %v2475_v27 = vmul.f32 0.6931472, %v7197_v4 }
 0x425   : > { %v2085_v18 = vmul.f32 %v4945_v9, %v7441_v24  ;;  %v2627_v37 = vmul.f32 %v7484_v10, %v7484_v10  ;;  %vm2086_vm10 = vcmp.eq.f32.partialorder %v7441_v24, inf  ;;  %v2089_v32 = vand.u32 2147483648, %v7441_v24  ;;  %v4947_v45 = vpop.eup %4946 }
 0x426   : > { %v2630_v54 = vmul.f32 %v7488_v16, %v7488_v16  ;;  %v2506_v51 = vsub.f32 %v2330_v35, %v2490_v56  ;;  %vm2088_vm12 = vcmp.eq.f32.partialorder %v7441_v24, 0.0  ;;  %v2478_v1 = vmul.f32 %v7120_v47, %v9273_v42  ;;  %v9282_v42 = vld [vmem:[#allocation20_spill] sm:$0xff] }
 0x427   : > { %v2087_v3 = vsel %vm2086_vm10, %v7441_v24, %v2085_v18  ;;  %v2659_v4 = vsel %vm1930_vm4, %v2627_v37, 0.0  ;;  %v2318_v26 = vmul.f32 %v9275_v20, %v9274_v48  ;;  %vm7512_vm2 = vcmp.lt.f32.partialorder %v2479_v23, 0.0004427343 }
 0x428   : > { %v4949_v2 = vpop.eup %4948  ;;  %v2090_v30 = vsel %vm2088_vm12, %v2089_v32, %v2087_v3  ;;  %2660 = vadd.xlane.f32.xlu0 %v2659_v4  ;;  %v2668_v52 = vsel %vm1930_vm4, %v2630_v54, 0.0  ;;  %v9278_v43 = vand.u32 2147483647, %v9275_v20  ;;  %v2481_v47 = vsel %vm7512_vm2, %v2478_v1, %v2475_v27  ;;  %v9283_v3 = vld [vmem:[#allocation21_spill] sm:$0xff] }
 0x429   : > { %v2106_v35 = vmax.f32 %v2090_v30, 1e-15  ;;  %2669 = vadd.xlane.f32.xlu1 %v2668_v52  ;;  %v2597_v24 = vmul.f32 %v4949_v2, %v4947_v45  ;;  %v4951_v40 = vpop.eup %4950  ;;  %v2522_v57 = vmul.f32 0.5, %v2506_v51  ;;  %vm2079_vm15 = vcmp.eq.f32.partialorder %v7462_v36, inf  ;;  %v9284_v30 = vld [vmem:[#allocation22_spill] sm:$0xff] }
 0x42a   : > { %vm2320_vm11 = vcmp.lt.f32.partialorder %v9278_v43, 0.0004427343  ;;  %v2078_v44 = vmul.f32 %v4951_v40, %v7462_v36  ;;  %v2082_v15 = vand.u32 2147483648, %v7462_v36  ;;  %vm2081_vm3 = vcmp.eq.f32.partialorder %v7462_v36, 0.0 }
 0x42b   : > { %v2321_v55 = vsel %vm2320_vm11, %v2318_v26, %v2315_v28  ;;  %v2138_v59 = vmul.f32 %v9279_v58, %v2106_v35  ;;  %v2570_v50 = vmul.f32 %v2106_v35, %v5516_v25  ;;  %v7524_v17 = vmul.f32 %v2597_v24, %v9280_v53  ;;  %v4953_v63 = vpop.eup %4952  ;;  %v7562_v35 = vld [vmem:[%s8984_s7] sm:$0x1] }
 0x42c   : > { %v2505_v5 = vsub.f32 %v2321_v55, %v2481_v47  ;;  %v4955_v19 = vpop.eup %4954  ;;  %v2080_v61 = vsel %vm2079_vm15, %v7462_v36, %v2078_v44  ;;  %v9281_v36 = vld [vmem:[#allocation19_spill] sm:$0xff]  ;;  %vm2957_vm9 = vcmask 253952   ;;  %v2956_v24 = vmul.f32 %v7562_v35, %v7562_v35 }
 0x42d   : > { %v2629_v31 = vmul.f32 %v7524_v17, %v7524_v17  ;;  %v2538_v22 = vmul.f32 %v2522_v57, %v2138_v59  ;;  %v4957_v29 = vpop.eup %4956  ;;  %4960 = vrcp.f32 %v2570_v50  ;;  %v2083_v56 = vsel %vm2081_vm3, %v2082_v15, %v2080_v61 }
 0x42e   : > { %v4959_v38 = vpop.eup %4958  ;;  %v2105_v7 = vmax.f32 %v2083_v56, 1e-15  ;;  %v2600_v49 = vmul.f32 %v4957_v29, %v4953_v63  ;;  %v2521_v12 = vmul.f32 0.5, %v2505_v5  ;;  %v2958_v47 = vsel %vm2957_vm9, %v2956_v24, 0.0 }
 0x42f   : > { %v2665_v0 = vsel %vm1930_vm4, %v2629_v31, 0.0  ;;  %4962 = vtanh.f32 %v2538_v22  ;;  %v2599_v41 = vmul.f32 %v4959_v38, %v4955_v19  ;;  %v2962_v56 = vlaneseq }
 0x430   : > { %2666 = vadd.xlane.f32.xlu0 %v2665_v0  ;;  %v2137_v33 = vmul.f32 %v7074_v46, %v2105_v7  ;;  %v2569_v9 = vmul.f32 %v2105_v7, %v5516_v25  ;;  %v7536_v28 = vmul.f32 %v2600_v49, %v9281_v36 }
 0x431   : > { %v7539_v23 = vmul.f32 %v2599_v41, %v9282_v42 }
 0x432   : > { %v2632_v18 = vmul.f32 %v7536_v28, %v7536_v28  ;;  %v2537_v37 = vmul.f32 %v2521_v12, %v2137_v33  ;;  %4964 = vrcp.f32 %v2569_v9 }
 0x433   : > { %v2631_v27 = vmul.f32 %v7539_v23, %v7539_v23 }
 0x434   : > { %v2674_v32 = vsel %vm1930_vm4, %v2632_v18, 0.0  ;;  %4966 = vtanh.f32 %v2537_v37  ;;  %v2963_v18 = vshrl.u32 %v2962_v56, 7 }
 0x435   : > { %2675 = vadd.xlane.f32.xlu1 %v2674_v32  ;;  %v2671_v46 = vsel %vm1930_vm4, %v2631_v27, 0.0 }
 0x436   : > { %2672 = vadd.xlane.f32.xlu0 %v2671_v46 }
 0x437   : > { %v4961_v54 = vpop.eup %4960 }
 0x439   : > { %v4963_v51 = vpop.eup %4962 }
 0x43a   : > { %v2602_v45 = vmul.f32 %v4963_v51, %v4961_v54 }
 0x43c   : > { %v7548_v4 = vmul.f32 %v2602_v45, %v9283_v3  ;;  %v4965_v1 = vpop.eup %4964 }
 0x43e   : > { %v2634_v2 = vmul.f32 %v7548_v4, %v7548_v4  ;;  %v4967_v48 = vpop.eup %4966 }
 0x43f   : > { %v2601_v26 = vmul.f32 %v4967_v48, %v4965_v1 }
 0x440   : > { %v2680_v20 = vsel %vm1930_vm4, %v2634_v2, 0.0 }
 0x441   : > { %2681 = vadd.xlane.f32.xlu1 %v2680_v20  ;;  %v7554_v52 = vmul.f32 %v2601_v26, %v9284_v30  ;;  %v7589_v26 = vsub.s32 0, %v2963_v18 }
 0x443   : > { %v2633_v11 = vmul.f32 %v7554_v52, %v7554_v52 }
 0x445   : > { %v2677_v43 = vsel %vm1930_vm4, %v2633_v11, 0.0 }
 0x446   : > { %2678 = vadd.xlane.f32.xlu0 %v2677_v43 }
 0x44a   : > { %2959 = vadd.xlane.f32.xlu0 %v2958_v47 }
 0x49b   : > { %v2640_v40 = vpop.xlane.xlu1 %2639 }
 0x49c   : > { %4968 = vrsqrt.f32 %v2640_v40  ;;  %vm2692_vm6 = vcmp.eq.f32.partialorder %v2640_v40, inf  ;;  %v2695_v63 = vand.u32 2147483648, %v2640_v40  ;;  %vm2694_vm14 = vcmp.eq.f32.partialorder %v2640_v40, 0.0 }
 0x49d   : > { %v2637_v55 = vpop.xlane.xlu0 %2636 }
 0x49e   : > { %4970 = vrsqrt.f32 %v2637_v55  ;;  %vm2685_vm1 = vcmp.eq.f32.partialorder %v2637_v55, inf  ;;  %v2688_v29 = vand.u32 2147483648, %v2637_v55  ;;  %vm2687_vm0 = vcmp.eq.f32.partialorder %v2637_v55, 0.0 }
 0x49f   : > { %v2646_v57 = vpop.xlane.xlu1 %2645 }
 0x4a0   : > { %4972 = vrsqrt.f32 %v2646_v57  ;;  %vm2706_vm7 = vcmp.eq.f32.partialorder %v2646_v57, inf  ;;  %v2709_v41 = vand.u32 2147483648, %v2646_v57  ;;  %vm2708_vm13 = vcmp.eq.f32.partialorder %v2646_v57, 0.0 }
 0x4a1   : > { %v2643_v58 = vpop.xlane.xlu0 %2642 }
 0x4a2   : > { %4974 = vrsqrt.f32 %v2643_v58  ;;  %vm2699_vm8 = vcmp.eq.f32.partialorder %v2643_v58, inf  ;;  %v2702_v32 = vand.u32 2147483648, %v2643_v58  ;;  %vm2701_vm5 = vcmp.eq.f32.partialorder %v2643_v58, 0.0 }
 0x4a3   : > { %v7566_v59 = vpop.xlane.xlu1 %2651 }
 0x4a4   : > { %4976 = vrsqrt.f32 %v7566_v59  ;;  %vm2720_vm10 = vcmp.eq.f32.partialorder %v7566_v59, inf  ;;  %vm2722_vm12 = vcmp.eq.f32.partialorder %v7566_v59, 0.0  ;;  %v2723_v30 = vand.u32 2147483648, %v7566_v59 }
 0x4a5   : > { %v7569_v44 = vpop.xlane.xlu0 %2648 }
 0x4a6   : > { %v4969_v50 = vpop.eup %4968  ;;  %4978 = vrsqrt.f32 %v7569_v44  ;;  %vm2713_vm2 = vcmp.eq.f32.partialorder %v7569_v44, inf  ;;  %vm2715_vm15 = vcmp.eq.f32.partialorder %v7569_v44, 0.0 }
 0x4a7   : > { %v2691_v53 = vmul.f32 %v4969_v50, %v2640_v40  ;;  %v7572_v15 = vpop.xlane.xlu1 %2657 }
 0x4a8   : > { %v4971_v5 = vpop.eup %4970  ;;  %4980 = vrsqrt.f32 %v7572_v15  ;;  %vm2734_vm11 = vcmp.eq.f32.partialorder %v7572_v15, inf  ;;  %vm2736_vm3 = vcmp.eq.f32.partialorder %v7572_v15, 0.0 }
 0x4a9   : > { %v2693_v19 = vsel %vm2692_vm6, %v2640_v40, %v2691_v53  ;;  %v2684_v61 = vmul.f32 %v4971_v5, %v2637_v55  ;;  %v7613_v53 = vrot.slane %v7562_v35, %v7589_v26 }
 0x4aa   : > { %v2696_v31 = vsel %vm2694_vm14, %v2695_v63, %v2693_v19  ;;  %v4973_v22 = vpop.eup %4972  ;;  %v9285_v63 = vld [vmem:[#allocation6_spill] sm:$0xff] }
 0x4ab   : > { %v2796_v38 = vmax.f32 %v2696_v31, 1e-15  ;;  %v2686_v7 = vsel %vm2685_vm1, %v2637_v55, %v2684_v61  ;;  %v2705_v0 = vmul.f32 %v4973_v22, %v2646_v57 }
 0x4ac   : > { %v4975_v49 = vpop.eup %4974  ;;  %v2689_v33 = vsel %vm2687_vm0, %v2688_v29, %v2686_v7 }
 0x4ad   : > { %4982 = vrcp.f32 %v2796_v38  ;;  %v2707_v9 = vsel %vm2706_vm7, %v2646_v57, %v2705_v0  ;;  %v2698_v36 = vmul.f32 %v4975_v49, %v2643_v58  ;;  %v2795_v12 = vmax.f32 %v2689_v33, 1e-15 }
 0x4ae   : > { %v4977_v42 = vpop.eup %4976  ;;  %v7575_v37 = vsel %vm2708_vm13, %v2709_v41, %v2707_v9  ;;  %vm2812_vm9 = vcmp.gt.f32.partialorder %v2796_v38, %v9285_v63 }
 0x4af   : > { %v2700_v27 = vsel %vm2699_vm8, %v2643_v58, %v2698_v36  ;;  %v2719_v46 = vmul.f32 %v4977_v42, %v7566_v59  ;;  %4984 = vrcp.f32 %v2795_v12  ;;  %v2798_v3 = vmax.f32 %v7575_v37, 1e-15 }
 0x4b0   : > { %v4979_v54 = vpop.eup %4978  ;;  %v7578_v51 = vpop.xlane.xlu0 %2654  ;;  %v7586_v2 = vsel %vm2701_vm5, %v2702_v32, %v2700_v27  ;;  %v2716_v58 = vand.u32 2147483648, %v7569_v44  ;;  %vm7629_vm14 = vcmp.gt.f32.partialorder %v2795_v12, %v9285_v63 }
 0x4b1   : > { %v7580_v45 = vpop.xlane.xlu1 %2663  ;;  %v2712_v1 = vmul.f32 %v4979_v54, %v7569_v44  ;;  %4986 = vrsqrt.f32 %v7578_v51  ;;  %v2721_v20 = vsel %vm2720_vm10, %v7566_v59, %v2719_v46  ;;  %v2797_v24 = vmax.f32 %v7586_v2, 1e-15 }
 0x4b2   : > { %v4981_v48 = vpop.eup %4980  ;;  %4988 = vrsqrt.f32 %v7580_v45  ;;  %v7604_v55 = vsel %vm2722_vm12, %v2723_v30, %v2721_v20  ;;  %v2737_v59 = vand.u32 2147483648, %v7572_v15  ;;  %vm2727_vm6 = vcmp.eq.f32.partialorder %v7578_v51, inf }
 0x4b3   : > { %v2733_v11 = vmul.f32 %v4981_v48, %v7572_v15  ;;  %4990 = vrcp.f32 %v2798_v3  ;;  %v2714_v47 = vsel %vm2713_vm2, %v7569_v44, %v2712_v1  ;;  %v2800_v19 = vmax.f32 %v7604_v55, 1e-15 }
 0x4b4   : > { %v2717_v61 = vsel %vm2715_vm15, %v2716_v58, %v2714_v47  ;;  %vm2729_vm1 = vcmp.eq.f32.partialorder %v7578_v51, 0.0  ;;  %v2730_v36 = vand.u32 2147483648, %v7578_v51  ;;  %vm2748_vm0 = vcmp.eq.f32.partialorder %v7580_v45, inf }
 0x4b5   : > { %v7597_v43 = vpop.xlane.xlu0 %2660  ;;  %v2735_v40 = vsel %vm2734_vm11, %v7572_v15, %v2733_v11  ;;  %v2799_v29 = vmax.f32 %v2717_v61, 1e-15  ;;  %vm2750_vm7 = vcmp.eq.f32.partialorder %v7580_v45, 0.0  ;;  %v2751_v32 = vand.u32 2147483648, %v7580_v45 }
 0x4b6   : > { %4992 = vrsqrt.f32 %v7597_v43  ;;  %v7609_v50 = vpop.xlane.xlu1 %2669  ;;  %v2738_v31 = vsel %vm2736_vm3, %v2737_v59, %v2735_v40  ;;  %vm2741_vm13 = vcmp.eq.f32.partialorder %v7597_v43, inf  ;;  %vm2814_vm8 = vcmp.gt.f32.partialorder %v2798_v3, %v9285_v63 }
 0x4b7   : > { %v4983_v57 = vpop.eup %4982  ;;  %4994 = vrcp.f32 %v2797_v24  ;;  %v2802_v7 = vmax.f32 %v2738_v31, 1e-15  ;;  %vm2762_vm5 = vcmp.eq.f32.partialorder %v7609_v50, inf  ;;  %v2765_v55 = vand.u32 2147483648, %v7609_v50 }
 0x4b8   : > { %v2844_v5 = vmul.f32 %v4983_v57, %v9285_v63  ;;  %4996 = vrsqrt.f32 %v7609_v50  ;;  %vm7679_vm10 = vcmp.gt.f32.partialorder %v2797_v24, %v9285_v63  ;;  %vm2743_vm12 = vcmp.eq.f32.partialorder %v7597_v43, 0.0 }
 0x4b9   : > { %v4985_v22 = vpop.eup %4984  ;;  %4998 = vrcp.f32 %v2800_v19  ;;  %vm7689_vm2 = vcmp.gt.f32.partialorder %v2800_v19, %v9285_v63  ;;  %vm7694_vm11 = vcmp.gt.f32.partialorder %v2799_v29, %v9285_v63  ;;  %vm7705_vm15 = vcmp.gt.f32.partialorder %v2802_v7, %v9285_v63 }
 0x4ba   : > { %v2860_v35 = vsel %vm2812_vm9, %v2844_v5, 1.0  ;;  %v2843_v15 = vmul.f32 %v4985_v22, %v9285_v63  ;;  %5000 = vrcp.f32 %v2799_v29  ;;  %vm2764_vm9 = vcmp.eq.f32.partialorder %v7609_v50, 0.0 }
 0x4bb   : > { %v7624_v44 = vmul.f32 %v2860_v35, %v7338_v13  ;;  %v4987_v56 = vpop.eup %4986 }
 0x4bc   : > { %v2726_v0 = vmul.f32 %v4987_v56, %v7578_v51  ;;  %v2859_v33 = vsel %vm7629_vm14, %v2843_v15, 1.0  ;;  %v4989_v9 = vpop.eup %4988 }
 0x4bd   : > { %v7634_v49 = vpop.xlane.xlu0 %2666  ;;  %v2893_v13 = vmul.f32 %v7624_v44, %v7624_v44  ;;  %v2968_v41 = vmul.f32 %v7613_v53, %v7624_v44  ;;  %v4991_v12 = vpop.eup %4990  ;;  %v7652_v46 = vmul.f32 %v2859_v33, %v7349_v34  ;;  %v2747_v48 = vmul.f32 %v4989_v9, %v7580_v45 }
 0x4be   : > { %5002 = vrsqrt.f32 %v7634_v49  ;;  %v2728_v42 = vsel %vm2727_vm6, %v7578_v51, %v2726_v0  ;;  %v2846_v54 = vmul.f32 %v4991_v12, %v9285_v63  ;;  %v2744_v34 = vand.u32 2147483648, %v7597_v43 }
 0x4bf   : > { %v2911_v18 = vsel %vm1930_vm4, %v2893_v13, 0.0  ;;  %v2986_v27 = vsel %vm1930_vm4, %v2968_v41, 0.0  ;;  %5004 = vrcp.f32 %v2802_v7  ;;  %v7662_v20 = vsel %vm2729_vm1, %v2730_v36, %v2728_v42 }
 0x4c0   : > { %2912 = vadd.xlane.f32.xlu1 %v2911_v18  ;;  %2987 = vadd.xlane.f32.xlu0 %v2986_v27  ;;  %v4993_v1 = vpop.eup %4992  ;;  %v2967_v11 = vmul.f32 %v7613_v53, %v7652_v46  ;;  %v2892_v47 = vmul.f32 %v7652_v46, %v7652_v46  ;;  %v2862_v40 = vsel %vm2814_vm8, %v2846_v54, 1.0  ;;  %v2801_v24 = vmax.f32 %v7662_v20, 1e-15 }
 0x4c1   : > { %v4995_v30 = vpop.eup %4994  ;;  %v7674_v51 = vmul.f32 %v2862_v40, %v7382_v21  ;;  %v2749_v61 = vsel %vm2748_vm0, %v7580_v45, %v2747_v48  ;;  %v2740_v31 = vmul.f32 %v4993_v1, %v7597_v43  ;;  %vm2755_vm3 = vcmp.eq.f32.partialorder %v7634_v49, inf }
 0x4c2   : > { %v7671_v37 = vpop.xlane.xlu1 %2675  ;;  %v2845_v57 = vmul.f32 %v4995_v30, %v9285_v63  ;;  %v4997_v58 = vpop.eup %4996  ;;  %v2983_v35 = vsel %vm1930_vm4, %v2967_v11, 0.0  ;;  %v2908_v29 = vsel %vm1930_vm4, %v2892_v47, 0.0  ;;  %v7728_v9 = vsel %vm2750_vm7, %v2751_v32, %v2749_v61 }
 0x4c3   : > { %5006 = vrsqrt.f32 %v7671_v37  ;;  %v7686_v59 = vpop.xlane.xlu0 %2672  ;;  %v4999_v5 = vpop.eup %4998  ;;  %v2895_v15 = vmul.f32 %v7674_v51, %v7674_v51  ;;  %v2970_v56 = vmul.f32 %v7613_v53, %v7674_v51  ;;  %v2761_v41 = vmul.f32 %v4997_v58, %v7609_v50 }
 0x4c4   : > { %5008 = vrsqrt.f32 %v7686_v59  ;;  %v5001_v22 = vpop.eup %5000  ;;  %2984 = vadd.xlane.f32.xlu1 %v2983_v35  ;;  %2909 = vadd.xlane.f32.xlu0 %v2908_v29  ;;  %v2861_v38 = vsel %vm7679_vm10, %v2845_v57, 1.0  ;;  %v2848_v7 = vmul.f32 %v4999_v5, %v9285_v63  ;;  %v2742_v36 = vsel %vm2741_vm13, %v7597_v43, %v2740_v31 }
 0x4c5   : > { %v2847_v0 = vmul.f32 %v5001_v22, %v9285_v63  ;;  %v7722_v33 = vmul.f32 %v2861_v38, %v7385_v14  ;;  %5010 = vrcp.f32 %v2801_v24  ;;  %v2917_v12 = vsel %vm1930_vm4, %v2895_v15, 0.0 }
 0x4c6   : > { %v2864_v42 = vsel %vm7689_vm2, %v2848_v7, 1.0  ;;  %v2992_v27 = vsel %vm1930_vm4, %v2970_v56, 0.0  ;;  %vm2757_vm6 = vcmp.eq.f32.partialorder %v7634_v49, 0.0  ;;  %v2804_v30 = vmax.f32 %v7728_v9, 1e-15 }
 0x4c7   : > { %v2863_v14 = vsel %vm7694_vm11, %v2847_v0, 1.0  ;;  %v2969_v45 = vmul.f32 %v7613_v53, %v7722_v33  ;;  %v2894_v32 = vmul.f32 %v7722_v33, %v7722_v33  ;;  %v7745_v54 = vmul.f32 %v2864_v42, %v7388_v60 }
 0x4c8   : > { %v5003_v13 = vpop.eup %5002  ;;  %2918 = vadd.xlane.f32.xlu1 %v2917_v12  ;;  %2993 = vadd.xlane.f32.xlu0 %v2992_v27  ;;  %v2763_v11 = vsel %vm2762_vm5, %v7609_v50, %v2761_v41  ;;  %v2758_v47 = vand.u32 2147483648, %v7634_v49  ;;  %vm2776_vm14 = vcmp.eq.f32.partialorder %v7671_v37, inf  ;;  %v7757_v60 = vmul.f32 %v2863_v14, %v7400_v6 }
 0x4c9   : > { %v5005_v18 = vpop.eup %5004  ;;  %v2754_v1 = vmul.f32 %v5003_v13, %v7634_v49  ;;  %vm2778_vm1 = vcmp.eq.f32.partialorder %v7671_v37, 0.0  ;;  %v2989_v40 = vsel %vm1930_vm4, %v2969_v45, 0.0  ;;  %v2897_v3 = vmul.f32 %v7745_v54, %v7745_v54 }
 0x4ca   : > { %v2850_v48 = vmul.f32 %v5005_v18, %v9285_v63  ;;  %v7765_v57 = vsel %vm2743_vm12, %v2744_v34, %v2742_v36  ;;  %v2914_v2 = vsel %vm1930_vm4, %v2894_v32, 0.0  ;;  %v2972_v6 = vmul.f32 %v7613_v53, %v7745_v54 }
 0x4cb   : > { %5012 = vrcp.f32 %v2804_v30  ;;  %v2756_v43 = vsel %vm2755_vm3, %v7634_v49, %v2754_v1  ;;  %v2779_v31 = vand.u32 2147483648, %v7671_v37  ;;  %vm2769_vm0 = vcmp.eq.f32.partialorder %v7686_v59, inf }
 0x4cc   : > { %v2866_v5 = vsel %vm7705_vm15, %v2850_v48, 1.0  ;;  %2990 = vadd.xlane.f32.xlu1 %v2989_v40  ;;  %2915 = vadd.xlane.f32.xlu0 %v2914_v2  ;;  %v2971_v19 = vmul.f32 %v7613_v53, %v7757_v60  ;;  %v2896_v35 = vmul.f32 %v7757_v60, %v7757_v60  ;;  %v2923_v15 = vsel %vm1930_vm4, %v2897_v3, 0.0 }
 0x4cd   : > { %v5007_v58 = vpop.eup %5006  ;;  %v7793_v56 = vmul.f32 %v2866_v5, %v7403_v62  ;;  %v2803_v38 = vmax.f32 %v7765_v57, 1e-15  ;;  %v2998_v0 = vsel %vm1930_vm4, %v2972_v6, 0.0  ;;  %v7801_v13 = vsel %vm2764_vm9, %v2765_v55, %v2763_v11 }
 0x4ce   : > { %v7767_v21 = vpop.xlane.xlu1 %2681  ;;  %v5009_v61 = vpop.eup %5008  ;;  %v2775_v34 = vmul.f32 %v5007_v58, %v7671_v37  ;;  %v7805_v41 = vsel %vm2757_vm6, %v2758_v47, %v2756_v43  ;;  %vm2771_vm7 = vcmp.eq.f32.partialorder %v7686_v59, 0.0  ;;  %v2772_v12 = vand.u32 2147483648, %v7686_v59 }
 0x4cf   : > { %5014 = vrsqrt.f32 %v7767_v21  ;;  %v2768_v22 = vmul.f32 %v5009_v61, %v7686_v59  ;;  %v5011_v7 = vpop.eup %5010  ;;  %v2806_v49 = vmax.f32 %v7801_v13, 1e-15  ;;  %v2805_v42 = vmax.f32 %v7805_v41, 1e-15 }
 0x4d0   : > { %v2777_v29 = vsel %vm2776_vm14, %v7671_v37, %v2775_v34  ;;  %2924 = vadd.xlane.f32.xlu1 %v2923_v15  ;;  %2999 = vadd.xlane.f32.xlu0 %v2998_v0  ;;  %v2849_v50 = vmul.f32 %v5011_v7, %v9285_v63  ;;  %5016 = vrcp.f32 %v2803_v38  ;;  %v2995_v14 = vsel %vm1930_vm4, %v2971_v19, 0.0 }
 0x4d1   : > { %v7809_v36 = vsel %vm2778_vm1, %v2779_v31, %v2777_v29  ;;  %v2770_v62 = vsel %vm2769_vm0, %v7686_v59, %v2768_v22  ;;  %v2899_v18 = vmul.f32 %v7793_v56, %v7793_v56  ;;  %vm2817_vm13 = vcmp.gt.f32.partialorder %v2801_v24, %v9285_v63 }
 0x4d2   : > { %v2808_v37 = vmax.f32 %v7809_v36, 1e-15  ;;  %v2920_v27 = vsel %vm1930_vm4, %v2896_v35, 0.0  ;;  %v2974_v45 = vmul.f32 %v7613_v53, %v7793_v56  ;;  %v2865_v32 = vsel %vm2817_vm13, %v2849_v50, 1.0 }
 0x4d3   : > { %v7815_v55 = vpop.xlane.xlu0 %2678  ;;  %v7831_v1 = vmul.f32 %v2865_v32, %v7458_v8  ;;  %v7835_v48 = vsel %vm2771_vm7, %v2772_v12, %v2770_v62  ;;  %v2929_v47 = vsel %vm1930_vm4, %v2899_v18, 0.0  ;;  %vm2820_vm8 = vcmp.gt.f32.partialorder %v2804_v30, %v9285_v63 }
 0x4d4   : > { %5018 = vrsqrt.f32 %v7815_v55  ;;  %2996 = vadd.xlane.f32.xlu1 %v2995_v14  ;;  %2921 = vadd.xlane.f32.xlu0 %v2920_v27  ;;  %v2807_v20 = vmax.f32 %v7835_v48, 1e-15  ;;  %v3004_v3 = vsel %vm1930_vm4, %v2974_v45, 0.0  ;;  %vm2790_vm5 = vcmp.eq.f32.partialorder %v7767_v21, inf }
 0x4d5   : > { %5020 = vrcp.f32 %v2806_v49  ;;  %v5013_v11 = vpop.eup %5012  ;;  %v2973_v40 = vmul.f32 %v7613_v53, %v7831_v1  ;;  %v2898_v57 = vmul.f32 %v7831_v1, %v7831_v1  ;;  %v2793_v58 = vand.u32 2147483648, %v7767_v21 }
 0x4d6   : > { %5022 = vrcp.f32 %v2805_v42  ;;  %v2852_v8 = vmul.f32 %v5013_v11, %v9285_v63  ;;  %vm2792_vm10 = vcmp.eq.f32.partialorder %v7767_v21, 0.0  ;;  %vm2783_vm12 = vcmp.eq.f32.partialorder %v7815_v55, inf }
 0x4d7   : > { %5024 = vrcp.f32 %v2808_v37  ;;  %v3001_v6 = vsel %vm1930_vm4, %v2973_v40, 0.0  ;;  %v2926_v43 = vsel %vm1930_vm4, %v2898_v57, 0.0  ;;  %vm2785_vm2 = vcmp.eq.f32.partialorder %v7815_v55, 0.0 }
 0x4d8   : > { %5026 = vrcp.f32 %v2807_v20  ;;  %2930 = vadd.xlane.f32.xlu1 %v2929_v47  ;;  %3005 = vadd.xlane.f32.xlu0 %v3004_v3  ;;  %v2868_v9 = vsel %vm2820_vm8, %v2852_v8, 1.0  ;;  %vm2819_vm11 = vcmp.gt.f32.partialorder %v2803_v38, %v9285_v63  ;;  %v2786_v29 = vand.u32 2147483648, %v7815_v55 }
 0x4d9   : > { %v5015_v24 = vpop.eup %5014  ;;  %v7858_v2 = vmul.f32 %v2868_v9, %v7465_v39  ;;  %vm7876_vm15 = vcmp.gt.f32.partialorder %v2806_v49, %v9285_v63  ;;  %vm7881_vm3 = vcmp.gt.f32.partialorder %v2805_v42, %v9285_v63  ;;  %vm7900_vm9 = vcmp.gt.f32.partialorder %v2808_v37, %v9285_v63 }
 0x4da   : > { %v2789_v59 = vmul.f32 %v5015_v24, %v7767_v21  ;;  %v5017_v61 = vpop.eup %5016  ;;  %vm2823_vm6 = vcmp.gt.f32.partialorder %v2807_v20, %v9285_v63  ;;  %v7982_v18 = vstv %s3167_s22 }
 0x4db   : > { %v2901_v34 = vmul.f32 %v7858_v2, %v7858_v2  ;;  %v2976_v31 = vmul.f32 %v7613_v53, %v7858_v2  ;;  %v2851_v39 = vmul.f32 %v5017_v61, %v9285_v63 }
 0x4dc   : > { %v2791_v30 = vsel %vm2790_vm5, %v7767_v21, %v2789_v59  ;;  %3002 = vadd.xlane.f32.xlu1 %v3001_v6  ;;  %2927 = vadd.xlane.f32.xlu0 %v2926_v43 }
 0x4dd   : > { %v7861_v5 = vsel %vm2792_vm10, %v2793_v58, %v2791_v30  ;;  %v2935_v38 = vsel %vm1930_vm4, %v2901_v34, 0.0  ;;  %v2867_v13 = vsel %vm2819_vm11, %v2851_v39, 1.0  ;;  %v3010_v50 = vsel %vm1930_vm4, %v2976_v31, 0.0 }
 0x4de   : > { %v2810_v22 = vmax.f32 %v7861_v5, 1e-15  ;;  %v5019_v19 = vpop.eup %5018  ;;  %v7892_v49 = vmul.f32 %v2867_v13, %v7484_v10 }
 0x4df   : > { %v5021_v21 = vpop.eup %5020  ;;  %v2782_v35 = vmul.f32 %v5019_v19, %v7815_v55 }
 0x4e0   : > { %v5023_v0 = vpop.eup %5022  ;;  %v2854_v41 = vmul.f32 %v5021_v21, %v9285_v63  ;;  %5028 = vrcp.f32 %v2810_v22  ;;  %2936 = vadd.xlane.f32.xlu1 %v2935_v38  ;;  %3011 = vadd.xlane.f32.xlu0 %v3010_v50  ;;  %v2975_v32 = vmul.f32 %v7613_v53, %v7892_v49  ;;  %v2900_v11 = vmul.f32 %v7892_v49, %v7892_v49 }
 0x4e1   : > { %v5025_v62 = vpop.eup %5024  ;;  %v2784_v12 = vsel %vm2783_vm12, %v7815_v55, %v2782_v35  ;;  %v2853_v42 = vmul.f32 %v5023_v0, %v9285_v63  ;;  %vm2826_vm14 = vcmp.gt.f32.partialorder %v2810_v22, %v9285_v63 }
 0x4e2   : > { %v2870_v14 = vsel %vm7876_vm15, %v2854_v41, 1.0  ;;  %v2856_v27 = vmul.f32 %v5025_v62, %v9285_v63  ;;  %v2787_v10 = vsel %vm2785_vm2, %v2786_v29, %v2784_v12  ;;  %v5027_v45 = vpop.eup %5026  ;;  %v3007_v8 = vsel %vm1930_vm4, %v2975_v32, 0.0 }
 0x4e3   : > { %v7912_v24 = vmul.f32 %v2870_v14, %v7488_v16  ;;  %v2869_v36 = vsel %vm7881_vm3, %v2853_v42, 1.0  ;;  %v2855_v47 = vmul.f32 %v5027_v45, %v9285_v63  ;;  %v2809_v40 = vmax.f32 %v2787_v10, 1e-15  ;;  %v2960_v14 = vpop.xlane.xlu0 %2959 }
 0x4e4   : > { %v7917_v37 = vmul.f32 %v2869_v36, %v7524_v17  ;;  %v2872_v55 = vsel %vm7900_vm9, %v2856_v27, 1.0  ;;  %v2932_v59 = vsel %vm1930_vm4, %v2900_v11, 0.0  ;;  %3008 = vadd.xlane.f32.xlu1 %v3007_v8  ;;  %v7984_v27 = vstv %s3031_s24  ;;  %v9302_v8 = vld [vmem:[#allocation5_spill] sm:$0xff] }
 0x4e5   : > { %v2903_v16 = vmul.f32 %v7912_v24, %v7912_v24  ;;  %v2978_v3 = vmul.f32 %v7613_v53, %v7912_v24  ;;  %2933 = vadd.xlane.f32.xlu0 %v2932_v59  ;;  %v7933_v58 = vmul.f32 %v2872_v55, %v7536_v28  ;;  %v2871_v6 = vsel %vm2823_vm6, %v2855_v47, 1.0 }
 0x4e6   : > { %v2977_v17 = vmul.f32 %v7613_v53, %v7917_v37  ;;  %v2902_v57 = vmul.f32 %v7917_v37, %v7917_v37  ;;  %5030 = vrcp.f32 %v2809_v40  ;;  %v7942_v43 = vmul.f32 %v2871_v6, %v7539_v23 }
 0x4e7   : > { %v2941_v9 = vsel %vm1930_vm4, %v2903_v16, 0.0  ;;  %v3016_v30 = vsel %vm1930_vm4, %v2978_v3, 0.0  ;;  %v2905_v20 = vmul.f32 %v7933_v58, %v7933_v58  ;;  %v2980_v34 = vmul.f32 %v7613_v53, %v7933_v58 }
 0x4e8   : > { %2942 = vadd.xlane.f32.xlu1 %v2941_v9  ;;  %v3013_v28 = vsel %vm1930_vm4, %v2977_v17, 0.0  ;;  %v2938_v48 = vsel %vm1930_vm4, %v2902_v57, 0.0  ;;  %v2979_v19 = vmul.f32 %v7613_v53, %v7942_v43  ;;  %v2904_v39 = vmul.f32 %v7942_v43, %v7942_v43 }
 0x4e9   : > { %3017 = vadd.xlane.f32.xlu0 %v3016_v30  ;;  %v2947_v23 = vsel %vm1930_vm4, %v2905_v20, 0.0  ;;  %v3022_v22 = vsel %vm1930_vm4, %v2980_v34, 0.0  ;;  %vm2825_vm1 = vcmp.gt.f32.partialorder %v2809_v40, %v9285_v63  ;;  %v7987_v32 = vrot.slane %v2960_v14, %v7589_v26 }
 0x4ea   : > { %v5029_v5 = vpop.eup %5028  ;;  %v3019_v15 = vsel %vm1930_vm4, %v2979_v19, 0.0  ;;  %v2944_v7 = vsel %vm1930_vm4, %v2904_v39, 0.0  ;;  %v3066_v59 = vmul.f32 %v2960_v14, %v9302_v8 }
 0x4eb   : > { %v2858_v61 = vmul.f32 %v5029_v5, %v9285_v63 }
 0x4ec   : > { %3014 = vadd.xlane.f32.xlu1 %v3013_v28  ;;  %v7997_v5 = vrot.slane %v3066_v59, %v7589_v26 }
 0x4ed   : > { %2939 = vadd.xlane.f32.xlu0 %v2938_v48  ;;  %v2874_v31 = vsel %vm2826_vm14, %v2858_v61, 1.0 }
 0x4ee   : > { %v7958_v21 = vmul.f32 %v2874_v31, %v7548_v4 }
 0x4f0   : > { %2948 = vadd.xlane.f32.xlu1 %v2947_v23  ;;  %v5031_v35 = vpop.eup %5030  ;;  %v2907_v0 = vmul.f32 %v7958_v21, %v7958_v21  ;;  %v2982_v50 = vmul.f32 %v7613_v53, %v7958_v21 }
 0x4f1   : > { %3023 = vadd.xlane.f32.xlu0 %v3022_v22  ;;  %v2857_v29 = vmul.f32 %v5031_v35, %v9285_v63 }
 0x4f2   : > { %v2953_v13 = vsel %vm1930_vm4, %v2907_v0, 0.0 }
 0x4f3   : > { %v2873_v4 = vsel %vm2825_vm1, %v2857_v29, 1.0 }
 0x4f4   : > { %3020 = vadd.xlane.f32.xlu1 %v3019_v15  ;;  %v7967_v38 = vmul.f32 %v2873_v4, %v7554_v52  ;;  %v3028_v52 = vsel %vm1930_vm4, %v2982_v50, 0.0 }
 0x4f5   : > { %2945 = vadd.xlane.f32.xlu0 %v2944_v7 }
 0x4f6   : > { %v2906_v41 = vmul.f32 %v7967_v38, %v7967_v38  ;;  %v2981_v62 = vmul.f32 %v7613_v53, %v7967_v38 }
 0x4f8   : > { %2954 = vadd.xlane.f32.xlu1 %v2953_v13  ;;  %v2950_v12 = vsel %vm1930_vm4, %v2906_v41, 0.0  ;;  %v3025_v42 = vsel %vm1930_vm4, %v2981_v62, 0.0 }
 0x4f9   : > { %2951 = vadd.xlane.f32.xlu0 %v2950_v12 }
 0x4fc   : > { %3026 = vadd.xlane.f32.xlu1 %v3025_v42 }
 0x4fd   : > { %3029 = vadd.xlane.f32.xlu0 %v3028_v52 }
 0x54d   : > { %v2913_v10 = vpop.xlane.xlu1 %2912  ;;  %v2988_v45 = vpop.xlane.xlu0 %2987 }
 0x54e   : > { %v3170_v11 = vmul.f32 %v7982_v18, %v2913_v10  ;;  %v3034_v36 = vmul.f32 %v7984_v27, %v2988_v45  ;;  %v3104_v61 = vmul.f32 %v2913_v10, %v9302_v8 }
 0x550   : > { %v3190_v55 = vmul.f32 %v7987_v32, %v3170_v11  ;;  %v3050_v47 = vadd.f32 1.0, %v3034_v36  ;;  %v3120_v22 = vsub.f32 1.0, %v3104_v61 }
 0x551   : > { %v2985_v3 = vpop.xlane.xlu1 %2984  ;;  %v2910_v17 = vpop.xlane.xlu0 %2909 }
 0x552   : > { %v3206_v40 = vadd.f32 %v3190_v55, %v3050_v47  ;;  %v3033_v57 = vmul.f32 %v7984_v27, %v2985_v3  ;;  %v3169_v9 = vmul.f32 %v7982_v18, %v2910_v17  ;;  %v3072_v34 = vadd.f32 %v7997_v5, %v3050_v47 }
 0x553   : > { %v3103_v39 = vmul.f32 %v2910_v17, %v9302_v8  ;;  %v3136_v12 = vmul.f32 %v3120_v22, %v7613_v53 }
 0x554   : > { %v3222_v16 = vmax.f32 %v3206_v40, 1e-15  ;;  %v3049_v30 = vadd.f32 1.0, %v3033_v57  ;;  %v3189_v6 = vmul.f32 %v7987_v32, %v3169_v9  ;;  %v3088_v0 = vmul.f32 %v3072_v34, %v7624_v44 }
 0x555   : > { %v2919_v28 = vpop.xlane.xlu1 %2918  ;;  %v2994_v48 = vpop.xlane.xlu0 %2993  ;;  %v3119_v50 = vsub.f32 1.0, %v3103_v39 }
 0x556   : > { %5032 = vrcp.f32 %v3222_v16  ;;  %v3205_v20 = vadd.f32 %v3189_v6, %v3049_v30  ;;  %v3172_v31 = vmul.f32 %v7982_v18, %v2919_v28  ;;  %v3036_v19 = vmul.f32 %v7984_v27, %v2994_v48 }
 0x557   : > { %v3071_v4 = vadd.f32 %v7997_v5, %v3049_v30  ;;  %v3106_v11 = vmul.f32 %v2919_v28, %v9302_v8  ;;  %v3152_v55 = vadd.f32 %v3136_v12, %v3088_v0  ;;  %v3135_v17 = vmul.f32 %v3119_v50, %v7613_v53 }
 0x558   : > { %v3221_v23 = vmax.f32 %v3205_v20, 1e-15  ;;  %v3192_v35 = vmul.f32 %v7987_v32, %v3172_v31  ;;  %v3052_v29 = vadd.f32 1.0, %v3036_v19 }
 0x559   : > { %v2991_v26 = vpop.xlane.xlu1 %2990  ;;  %v2916_v15 = vpop.xlane.xlu0 %2915  ;;  %v3087_v47 = vmul.f32 %v3071_v4, %v7652_v46  ;;  %v3122_v61 = vsub.f32 1.0, %v3106_v11 }
 0x55a   : > { %5034 = vrcp.f32 %v3221_v23  ;;  %v3035_v7 = vmul.f32 %v7984_v27, %v2991_v26  ;;  %v3208_v13 = vadd.f32 %v3192_v35, %v3052_v29  ;;  %v3171_v41 = vmul.f32 %v7982_v18, %v2916_v15 }
 0x55b   : > { %v3074_v59 = vadd.f32 %v7997_v5, %v3052_v29  ;;  %v3151_v48 = vadd.f32 %v3135_v17, %v3087_v47  ;;  %v3105_v20 = vmul.f32 %v2916_v15, %v9302_v8  ;;  %v3138_v0 = vmul.f32 %v3122_v61, %v7613_v53 }
 0x55c   : > { %v3051_v62 = vadd.f32 1.0, %v3035_v7  ;;  %v3224_v42 = vmax.f32 %v3208_v13, 1e-15  ;;  %v3191_v52 = vmul.f32 %v7987_v32, %v3171_v41 }
 0x55d   : > { %v2925_v14 = vpop.xlane.xlu1 %2924  ;;  %v3000_v10 = vpop.xlane.xlu0 %2999  ;;  %v3090_v19 = vmul.f32 %v3074_v59, %v7674_v51  ;;  %v3121_v13 = vsub.f32 1.0, %v3105_v20 }
 0x55e   : > { %v3174_v36 = vmul.f32 %v7982_v18, %v2925_v14  ;;  %v3038_v44 = vmul.f32 %v7984_v27, %v3000_v10  ;;  %v3207_v40 = vadd.f32 %v3191_v52, %v3051_v62  ;;  %5036 = vrcp.f32 %v3224_v42 }
 0x55f   : > { %v3108_v39 = vmul.f32 %v2925_v14, %v9302_v8  ;;  %v3073_v4 = vadd.f32 %v7997_v5, %v3051_v62  ;;  %v3154_v10 = vadd.f32 %v3138_v0, %v3090_v19 }
 0x560   : > { %v5033_v45 = vpop.eup %5032  ;;  %v3194_v16 = vmul.f32 %v7987_v32, %v3174_v36  ;;  %v3054_v3 = vadd.f32 1.0, %v3038_v44  ;;  %v3223_v57 = vmax.f32 %v3207_v40, 1e-15 }
 0x561   : > { %v2997_v9 = vpop.xlane.xlu1 %2996  ;;  %v2922_v30 = vpop.xlane.xlu0 %2921  ;;  %v8018_v6 = vmul.f32 %v5033_v45, %v3152_v55  ;;  %v3124_v45 = vsub.f32 1.0, %v3108_v39  ;;  %v3089_v47 = vmul.f32 %v3073_v4, %v7722_v33 }
 0x562   : > { %v3210_v28 = vadd.f32 %v3194_v16, %v3054_v3  ;;  %v3037_v46 = vmul.f32 %v7984_v27, %v2997_v9  ;;  %v3173_v34 = vmul.f32 %v7982_v18, %v2922_v30  ;;  %5038 = vrcp.f32 %v3223_v57 }
 0x563   : > { %v3270_v22 = vmul.f32 %v8018_v6, %v8018_v6  ;;  %v3076_v41 = vadd.f32 %v7997_v5, %v3054_v3  ;;  %v3107_v40 = vmul.f32 %v2922_v30, %v9302_v8  ;;  %v3137_v3 = vmul.f32 %v3121_v13, %v7613_v53 }
 0x564   : > { %v5035_v31 = vpop.eup %5034  ;;  %v3226_v23 = vmax.f32 %v3210_v28, 1e-15  ;;  %v3053_v35 = vadd.f32 1.0, %v3037_v46  ;;  %v3193_v29 = vmul.f32 %v7987_v32, %v3173_v34  ;;  %v3140_v33 = vmul.f32 %v3124_v45, %v7613_v53 }
 0x565   : > { %v2931_v26 = vpop.xlane.xlu1 %2930  ;;  %v3006_v7 = vpop.xlane.xlu0 %3005  ;;  %v8028_v15 = vmul.f32 %v5035_v31, %v3151_v48  ;;  %v3288_v52 = vsel %vm1930_vm4, %v3270_v22, 0.0  ;;  %v3092_v17 = vmul.f32 %v3076_v41, %v7745_v54  ;;  %v3153_v19 = vadd.f32 %v3137_v3, %v3089_v47 }
 0x566   : > { %5040 = vrcp.f32 %v3226_v23  ;;  %v3176_v51 = vmul.f32 %v7982_v18, %v2931_v26  ;;  %v3209_v12 = vadd.f32 %v3193_v29, %v3053_v35  ;;  %v3040_v50 = vmul.f32 %v7984_v27, %v3006_v7  ;;  %3289 = vadd.xlane.f32.xlu0 %v3288_v52 }
 0x567   : > { %v3269_v14 = vmul.f32 %v8028_v15, %v8028_v15  ;;  %v3075_v57 = vadd.f32 %v7997_v5, %v3053_v35  ;;  %v3123_v54 = vsub.f32 1.0, %v3107_v40  ;;  %v3156_v23 = vadd.f32 %v3140_v33, %v3092_v17 }
 0x568   : > { %v3196_v42 = vmul.f32 %v7987_v32, %v3176_v51  ;;  %v3225_v11 = vmax.f32 %v3209_v12, 1e-15  ;;  %v3056_v62 = vadd.f32 1.0, %v3040_v50  ;;  %v5037_v55 = vpop.eup %5036  ;;  %v3110_v0 = vmul.f32 %v2931_v26, %v9302_v8 }
 0x569   : > { %v3003_v36 = vpop.xlane.xlu1 %3002  ;;  %v2928_v44 = vpop.xlane.xlu0 %2927  ;;  %v3285_v48 = vsel %vm1930_vm4, %v3269_v14, 0.0  ;;  %v8049_v34 = vmul.f32 %v5037_v55, %v3154_v10  ;;  %v3091_v7 = vmul.f32 %v3075_v57, %v7757_v60  ;;  %v3139_v52 = vmul.f32 %v3123_v54, %v7613_v53 }
 0x56a   : > { %v3039_v59 = vmul.f32 %v7984_v27, %v3003_v36  ;;  %v3175_v16 = vmul.f32 %v7982_v18, %v2928_v44  ;;  %v3212_v9 = vadd.f32 %v3196_v42, %v3056_v62  ;;  %5042 = vrcp.f32 %v3225_v11  ;;  %3286 = vadd.xlane.f32.xlu1 %v3285_v48 }
 0x56b   : > { %v3272_v4 = vmul.f32 %v8049_v34, %v8049_v34  ;;  %v3078_v14 = vadd.f32 %v7997_v5, %v3056_v62  ;;  %v3109_v60 = vmul.f32 %v2928_v44, %v9302_v8  ;;  %v3155_v55 = vadd.f32 %v3139_v52, %v3091_v7 }
 0x56c   : > { %v3055_v61 = vadd.f32 1.0, %v3039_v59  ;;  %v3195_v28 = vmul.f32 %v7987_v32, %v3175_v16  ;;  %v3228_v30 = vmax.f32 %v3212_v9, 1e-15  ;;  %v5039_v31 = vpop.eup %5038  ;;  %v3126_v47 = vsub.f32 1.0, %v3110_v0 }
 0x56d   : > { %v2937_v20 = vpop.xlane.xlu1 %2936  ;;  %v3012_v46 = vpop.xlane.xlu0 %3011  ;;  %v8058_v50 = vmul.f32 %v5039_v31, %v3153_v19  ;;  %v3294_v26 = vsel %vm1930_vm4, %v3272_v4, 0.0 }
 0x56e   : > { %v3211_v22 = vadd.f32 %v3195_v28, %v3055_v61  ;;  %v3178_v39 = vmul.f32 %v7982_v18, %v2937_v20  ;;  %v3042_v35 = vmul.f32 %v7984_v27, %v3012_v46  ;;  %5044 = vrcp.f32 %v3228_v30  ;;  %3295 = vadd.xlane.f32.xlu0 %v3294_v26 }
 0x56f   : > { %v3077_v10 = vadd.f32 %v7997_v5, %v3055_v61  ;;  %v3271_v59 = vmul.f32 %v8058_v50, %v8058_v50  ;;  %v3112_v62 = vmul.f32 %v2937_v20, %v9302_v8  ;;  %v3125_v61 = vsub.f32 1.0, %v3109_v60 }
 0x570   : > { %v5041_v29 = vpop.eup %5040  ;;  %v3198_v51 = vmul.f32 %v7987_v32, %v3178_v39  ;;  %v3058_v13 = vadd.f32 1.0, %v3042_v35  ;;  %v3227_v45 = vmax.f32 %v3211_v22, 1e-15  ;;  %v3094_v30 = vmul.f32 %v3078_v14, %v7793_v56 }
 0x571   : > { %v3009_v41 = vpop.xlane.xlu1 %3008  ;;  %v8060_v42 = vmul.f32 %v5041_v29, %v3156_v23  ;;  %v3291_v48 = vsel %vm1930_vm4, %v3271_v59, 0.0  ;;  %v3093_v46 = vmul.f32 %v3077_v10, %v7831_v1  ;;  %v3142_v23 = vmul.f32 %v3126_v47, %v7613_v53 }
 0x572   : > { %v2934_v12 = vpop.xlane.xlu0 %2933  ;;  %v3214_v11 = vadd.f32 %v3198_v51, %v3058_v13  ;;  %v3041_v36 = vmul.f32 %v7984_v27, %v3009_v41  ;;  %5046 = vrcp.f32 %v3227_v45  ;;  %v3080_v20 = vadd.f32 %v7997_v5, %v3058_v13  ;;  %3292 = vadd.xlane.f32.xlu1 %v3291_v48 }
 0x573   : > { %v3177_v40 = vmul.f32 %v7982_v18, %v2934_v12  ;;  %v3274_v57 = vmul.f32 %v8060_v42, %v8060_v42  ;;  %v3128_v22 = vsub.f32 1.0, %v3112_v62  ;;  %v3141_v7 = vmul.f32 %v3125_v61, %v7613_v53 }
 0x574   : > { %v3230_v16 = vmax.f32 %v3214_v11, 1e-15  ;;  %v3057_v44 = vadd.f32 1.0, %v3041_v36  ;;  %v5043_v9 = vpop.eup %5042  ;;  %v3158_v13 = vadd.f32 %v3142_v23, %v3094_v30  ;;  %v3111_v41 = vmul.f32 %v2934_v12, %v9302_v8 }
 0x575   : > { %v2943_v3 = vpop.xlane.xlu1 %2942  ;;  %v3197_v28 = vmul.f32 %v7987_v32, %v3177_v40  ;;  %v3300_v39 = vsel %vm1930_vm4, %v3274_v57, 0.0  ;;  %v8084_v56 = vmul.f32 %v5043_v9, %v3155_v55  ;;  %v3157_v60 = vadd.f32 %v3141_v7, %v3093_v46 }
 0x576   : > { %v3018_v17 = vpop.xlane.xlu0 %3017  ;;  %v3180_v33 = vmul.f32 %v7982_v18, %v2943_v3  ;;  %5048 = vrcp.f32 %v3230_v16  ;;  %3301 = vadd.xlane.f32.xlu0 %v3300_v39  ;;  %v3096_v26 = vmul.f32 %v3080_v20, %v7858_v2  ;;  %v3144_v11 = vmul.f32 %v3128_v22, %v7613_v53 }
 0x577   : > { %v3213_v31 = vadd.f32 %v3197_v28, %v3057_v44  ;;  %v3044_v54 = vmul.f32 %v7984_v27, %v3018_v17  ;;  %v3273_v14 = vmul.f32 %v8084_v56, %v8084_v56  ;;  %v3079_v12 = vadd.f32 %v7997_v5, %v3057_v44 }
 0x578   : > { %v3200_v19 = vmul.f32 %v7987_v32, %v3180_v33  ;;  %v5045_v1 = vpop.eup %5044  ;;  %v3114_v62 = vmul.f32 %v2943_v3, %v9302_v8  ;;  %v3127_v2 = vsub.f32 1.0, %v3111_v41  ;;  %v3160_v61 = vadd.f32 %v3144_v11, %v3096_v26 }
 0x579   : > { %v3015_v35 = vpop.xlane.xlu1 %3014  ;;  %v3229_v0 = vmax.f32 %v3213_v31, 1e-15  ;;  %v3060_v4 = vadd.f32 1.0, %v3044_v54  ;;  %v3297_v55 = vsel %vm1930_vm4, %v3273_v14, 0.0  ;;  %v8096_v59 = vmul.f32 %v5045_v1, %v3158_v13 }
 0x57a   : > { %v2940_v29 = vpop.xlane.xlu0 %2939  ;;  %v3043_v51 = vmul.f32 %v7984_v27, %v3015_v35  ;;  %3298 = vadd.xlane.f32.xlu1 %v3297_v55  ;;  %v3095_v54 = vmul.f32 %v3079_v12, %v7892_v49  ;;  %v3130_v23 = vsub.f32 1.0, %v3114_v62  ;;  %v3143_v14 = vmul.f32 %v3127_v2, %v7613_v53 }
 0x57b   : > { %v3179_v52 = vmul.f32 %v7982_v18, %v2940_v29  ;;  %v3216_v10 = vadd.f32 %v3200_v19, %v3060_v4  ;;  %5050 = vrcp.f32 %v3229_v0  ;;  %v3082_v28 = vadd.f32 %v7997_v5, %v3060_v4 }
 0x57c   : > { %v3059_v45 = vadd.f32 1.0, %v3043_v51  ;;  %v3113_v48 = vmul.f32 %v2940_v29, %v9302_v8  ;;  %v5047_v33 = vpop.eup %5046  ;;  %v3276_v3 = vmul.f32 %v8096_v59, %v8096_v59  ;;  %v3146_v11 = vmul.f32 %v3130_v23, %v7613_v53 }
 0x57d   : > { %v3199_v36 = vmul.f32 %v7987_v32, %v3179_v52  ;;  %v2949_v47 = vpop.xlane.xlu1 %2948  ;;  %v3232_v16 = vmax.f32 %v3216_v10, 1e-15  ;;  %v8113_v51 = vmul.f32 %v5047_v33, %v3157_v60  ;;  %v3098_v49 = vmul.f32 %v3082_v28, %v7912_v24 }
 0x57e   : > { %v3024_v40 = vpop.xlane.xlu0 %3023  ;;  %v3182_v57 = vmul.f32 %v7982_v18, %v2949_v47  ;;  %v3081_v22 = vadd.f32 %v7997_v5, %v3059_v45  ;;  %v3116_v35 = vmul.f32 %v2949_v47, %v9302_v8  ;;  %v3306_v1 = vsel %vm1930_vm4, %v3276_v3, 0.0 }
 0x57f   : > { %v3215_v17 = vadd.f32 %v3199_v36, %v3059_v45  ;;  %v3046_v9 = vmul.f32 %v7984_v27, %v3024_v40  ;;  %5052 = vrcp.f32 %v3232_v16  ;;  %v3129_v7 = vsub.f32 1.0, %v3113_v48  ;;  %3307 = vadd.xlane.f32.xlu0 %v3306_v1 }
 0x580   : > { %v3202_v44 = vmul.f32 %v7987_v32, %v3182_v57  ;;  %v5049_v19 = vpop.eup %5048  ;;  %v3097_v26 = vmul.f32 %v3081_v22, %v7917_v37  ;;  %v3275_v45 = vmul.f32 %v8113_v51, %v8113_v51  ;;  %v3132_v36 = vsub.f32 1.0, %v3116_v35 }
 0x581   : > { %v3231_v30 = vmax.f32 %v3215_v17, 1e-15  ;;  %v3062_v46 = vadd.f32 1.0, %v3046_v9  ;;  %v3021_v20 = vpop.xlane.xlu1 %3020  ;;  %v8116_v52 = vmul.f32 %v5049_v19, %v3160_v61  ;;  %v3159_v47 = vadd.f32 %v3143_v14, %v3095_v54 }
 0x582   : > { %v2946_v31 = vpop.xlane.xlu0 %2945  ;;  %v3045_v39 = vmul.f32 %v7984_v27, %v3021_v20  ;;  %v3145_v40 = vmul.f32 %v3129_v7, %v7613_v53  ;;  %v3303_v62 = vsel %vm1930_vm4, %v3275_v45, 0.0  ;;  %v3162_v37 = vadd.f32 %v3146_v11, %v3098_v49 }
 0x583   : > { %5054 = vrcp.f32 %v3231_v30  ;;  %v3218_v29 = vadd.f32 %v3202_v44, %v3062_v46  ;;  %v3181_v4 = vmul.f32 %v7982_v18, %v2946_v31  ;;  %v3084_v60 = vadd.f32 %v7997_v5, %v3062_v46  ;;  %3304 = vadd.xlane.f32.xlu1 %v3303_v62 }
 0x584   : > { %v3061_v0 = vadd.f32 1.0, %v3045_v39  ;;  %v3115_v16 = vmul.f32 %v2946_v31, %v9302_v8  ;;  %v3278_v17 = vmul.f32 %v8116_v52, %v8116_v52  ;;  %v3161_v61 = vadd.f32 %v3145_v40, %v3097_v26 }
 0x585   : > { %v3234_v13 = vmax.f32 %v3218_v29, 1e-15  ;;  %v2955_v41 = vpop.xlane.xlu1 %2954  ;;  %v3201_v10 = vmul.f32 %v7987_v32, %v3181_v4  ;;  %v5051_v55 = vpop.eup %5050  ;;  %v3148_v30 = vmul.f32 %v3132_v36, %v7613_v53  ;;  %v3100_v44 = vmul.f32 %v3084_v60, %v7933_v58 }
 0x586   : > { %v2952_v24 = vpop.xlane.xlu0 %2951  ;;  %v3184_v48 = vmul.f32 %v7982_v18, %v2955_v41  ;;  %v3312_v46 = vsel %vm1930_vm4, %v3278_v17, 0.0  ;;  %v8136_v20 = vmul.f32 %v5051_v55, %v3159_v47  ;;  %v3131_v22 = vsub.f32 1.0, %v3115_v16 }
 0x587   : > { %5056 = vrcp.f32 %v3234_v13  ;;  %v3217_v12 = vadd.f32 %v3201_v10, %v3061_v0  ;;  %v3183_v2 = vmul.f32 %v7982_v18, %v2952_v24  ;;  %3313 = vadd.xlane.f32.xlu0 %v3312_v46  ;;  %v3083_v18 = vadd.f32 %v7997_v5, %v3061_v0 }
 0x588   : > { %v3277_v39 = vmul.f32 %v8136_v20, %v8136_v20  ;;  %v3204_v35 = vmul.f32 %v7987_v32, %v3184_v48  ;;  %v3164_v49 = vadd.f32 %v3148_v30, %v3100_v44  ;;  %v3117_v10 = vmul.f32 %v2952_v24, %v9302_v8 }
 0x589   : > { %v3027_v57 = vpop.xlane.xlu1 %3026  ;;  %v5053_v9 = vpop.eup %5052  ;;  %v3233_v28 = vmax.f32 %v3217_v12, 1e-15  ;;  %v3203_v31 = vmul.f32 %v7987_v32, %v3183_v2  ;;  %v3099_v26 = vmul.f32 %v3083_v18, %v7942_v43  ;;  %v3147_v11 = vmul.f32 %v3131_v22, %v7613_v53 }
 0x58a   : > { %v3047_v33 = vmul.f32 %v7984_v27, %v3027_v57  ;;  %v3030_v3 = vpop.xlane.xlu0 %3029  ;;  %v8143_v58 = vmul.f32 %v5053_v9, %v3162_v37  ;;  %v3309_v4 = vsel %vm1930_vm4, %v3277_v39, 0.0  ;;  %v3118_v60 = vmul.f32 %v2955_v41, %v9302_v8 }
 0x58b   : > { %5058 = vrcp.f32 %v3233_v28  ;;  %v3048_v54 = vmul.f32 %v7984_v27, %v3030_v3  ;;  %3310 = vadd.xlane.f32.xlu1 %v3309_v4  ;;  %v3163_v43 = vadd.f32 %v3147_v11, %v3099_v26  ;;  %v3133_v24 = vsub.f32 1.0, %v3117_v10 }
 0x58c   : > { %v3063_v19 = vadd.f32 1.0, %v3047_v33  ;;  %v3280_v27 = vmul.f32 %v8143_v58, %v8143_v58  ;;  %v3134_v16 = vsub.f32 1.0, %v3118_v60 }
 0x58d   : > { %v5055_v23 = vpop.eup %5054  ;;  %v3064_v1 = vadd.f32 1.0, %v3048_v54  ;;  %v3149_v17 = vmul.f32 %v3133_v24, %v7613_v53 }
 0x58e   : > { %v3219_v29 = vadd.f32 %v3203_v31, %v3063_v19  ;;  %v8146_v7 = vmul.f32 %v5055_v23, %v3161_v61  ;;  %v3318_v32 = vsel %vm1930_vm4, %v3280_v27, 0.0  ;;  %v3085_v55 = vadd.f32 %v7997_v5, %v3063_v19 }
 0x58f   : > { %v3220_v0 = vadd.f32 %v3204_v35, %v3064_v1  ;;  %3319 = vadd.xlane.f32.xlu0 %v3318_v32  ;;  %v3086_v12 = vadd.f32 %v7997_v5, %v3064_v1  ;;  %v3150_v5 = vmul.f32 %v3134_v16, %v7613_v53 }
 0x590   : > { %v3235_v13 = vmax.f32 %v3219_v29, 1e-15  ;;  %v3279_v45 = vmul.f32 %v8146_v7, %v8146_v7  ;;  %v3101_v2 = vmul.f32 %v3085_v55, %v7967_v38 }
 0x591   : > { %v5057_v14 = vpop.eup %5056  ;;  %v3236_v36 = vmax.f32 %v3220_v0, 1e-15  ;;  %v3102_v57 = vmul.f32 %v3086_v12, %v7958_v21 }
 0x592   : > { %5060 = vrcp.f32 %v3235_v13  ;;  %v3315_v47 = vsel %vm1930_vm4, %v3279_v45, 0.0  ;;  %v8160_v40 = vmul.f32 %v5057_v14, %v3164_v49  ;;  %v3165_v61 = vadd.f32 %v3149_v17, %v3101_v2 }
 0x593   : > { %5062 = vrcp.f32 %v3236_v36  ;;  %3316 = vadd.xlane.f32.xlu1 %v3315_v47  ;;  %v3166_v38 = vadd.f32 %v3150_v5, %v3102_v57 }
 0x594   : > { %v3282_v62 = vmul.f32 %v8160_v40, %v8160_v40 }
 0x595   : > { %v5059_v37 = vpop.eup %5058 }
 0x596   : > { %v3324_v8 = vsel %vm1930_vm4, %v3282_v62, 0.0  ;;  %v8167_v41 = vmul.f32 %v5059_v37, %v3163_v43 }
 0x597   : > { %3325 = vadd.xlane.f32.xlu0 %v3324_v8 }
 0x598   : > { %v3281_v9 = vmul.f32 %v8167_v41, %v8167_v41 }
 0x59a   : > { %v3321_v28 = vsel %vm1930_vm4, %v3281_v9, 0.0 }
 0x59b   : > { %3322 = vadd.xlane.f32.xlu1 %v3321_v28 }
 0x59c   : > { %v5061_v48 = vpop.eup %5060 }
 0x59d   : > { %v8175_v33 = vmul.f32 %v5061_v48, %v3165_v61  ;;  %v5063_v30 = vpop.eup %5062 }
 0x59e   : > { %v8179_v46 = vmul.f32 %v5063_v30, %v3166_v38 }
 0x59f   : > { %v3283_v44 = vmul.f32 %v8175_v33, %v8175_v33 }
 0x5a0   : > { %v3284_v3 = vmul.f32 %v8179_v46, %v8179_v46 }
 0x5a1   : > { %v3327_v21 = vsel %vm1930_vm4, %v3283_v44, 0.0 }
 0x5a2   : > { %3328 = vadd.xlane.f32.xlu1 %v3327_v21  ;;  %v3330_v53 = vsel %vm1930_vm4, %v3284_v3, 0.0 }
 0x5a3   : > { %3331 = vadd.xlane.f32.xlu0 %v3330_v53 }
 0x5f3   : > { %v3290_v31 = vpop.xlane.xlu0 %3289 }
 0x5f4   : > { %5064 = vrsqrt.f32 %v3290_v31  ;;  %vm3342_vm0 = vcmp.eq.f32.partialorder %v3290_v31, inf  ;;  %v3345_v39 = vand.u32 2147483648, %v3290_v31  ;;  %vm3344_vm7 = vcmp.eq.f32.partialorder %v3290_v31, 0.0 }
 0x5f7   : > { %v3287_v19 = vpop.xlane.xlu1 %3286 }
 0x5f8   : > { %5066 = vrsqrt.f32 %v3287_v19  ;;  %vm3335_vm13 = vcmp.eq.f32.partialorder %v3287_v19, inf  ;;  %v3338_v27 = vand.u32 2147483648, %v3287_v19  ;;  %vm3337_vm8 = vcmp.eq.f32.partialorder %v3287_v19, 0.0 }
 0x5fb   : > { %v3296_v54 = vpop.xlane.xlu0 %3295 }
 0x5fc   : > { %5068 = vrsqrt.f32 %v3296_v54  ;;  %vm3356_vm5 = vcmp.eq.f32.partialorder %v3296_v54, inf  ;;  %v3359_v11 = vand.u32 2147483648, %v3296_v54  ;;  %vm3358_vm10 = vcmp.eq.f32.partialorder %v3296_v54, 0.0 }
 0x5fe   : > { %v5065_v23 = vpop.eup %5064 }
 0x5ff   : > { %v3341_v18 = vmul.f32 %v5065_v23, %v3290_v31  ;;  %v3293_v35 = vpop.xlane.xlu1 %3292 }
 0x600   : > { %5070 = vrsqrt.f32 %v3293_v35  ;;  %vm3349_vm12 = vcmp.eq.f32.partialorder %v3293_v35, inf  ;;  %v3352_v37 = vand.u32 2147483648, %v3293_v35  ;;  %vm3351_vm2 = vcmp.eq.f32.partialorder %v3293_v35, 0.0 }
 0x601   : > { %v3343_v22 = vsel %vm3342_vm0, %v3290_v31, %v3341_v18 }
 0x602   : > { %v5067_v29 = vpop.eup %5066  ;;  %v3346_v4 = vsel %vm3344_vm7, %v3345_v39, %v3343_v22 }
 0x603   : > { %v3334_v1 = vmul.f32 %v5067_v29, %v3287_v19  ;;  %v3302_v49 = vpop.xlane.xlu0 %3301  ;;  %v3446_v13 = vmax.f32 %v3346_v4, 1e-15 }
 0x604   : > { %5072 = vrsqrt.f32 %v3302_v49  ;;  %vm3370_vm11 = vcmp.eq.f32.partialorder %v3302_v49, inf  ;;  %v3373_v8 = vand.u32 2147483648, %v3302_v49  ;;  %vm3372_vm15 = vcmp.eq.f32.partialorder %v3302_v49, 0.0 }
 0x605   : > { %v3336_v0 = vsel %vm3335_vm13, %v3287_v19, %v3334_v1  ;;  %5074 = vrcp.f32 %v3446_v13  ;;  %vm3462_vm3 = vcmp.gt.f32.partialorder %v3446_v13, %v9285_v63 }
 0x606   : > { %v3339_v14 = vsel %vm3337_vm8, %v3338_v27, %v3336_v0  ;;  %v5069_v10 = vpop.eup %5068 }
 0x607   : > { %v3445_v26 = vmax.f32 %v3339_v14, 1e-15  ;;  %v3299_v32 = vpop.xlane.xlu1 %3298  ;;  %v3355_v45 = vmul.f32 %v5069_v10, %v3296_v54 }
 0x608   : > { %5076 = vrsqrt.f32 %v3299_v32  ;;  %vm3363_vm9 = vcmp.eq.f32.partialorder %v3299_v32, inf  ;;  %vm3365_vm14 = vcmp.eq.f32.partialorder %v3299_v32, 0.0 }
 0x609   : > { %5078 = vrcp.f32 %v3445_v26  ;;  %v3357_v36 = vsel %vm3356_vm5, %v3296_v54, %v3355_v45  ;;  %v3366_v54 = vand.u32 2147483648, %v3299_v32  ;;  %vm3461_vm6 = vcmp.gt.f32.partialorder %v3445_v26, %v9285_v63 }
 0x60a   : > { %v5071_v60 = vpop.eup %5070  ;;  %v3360_v55 = vsel %vm3358_vm10, %v3359_v11, %v3357_v36 }
 0x60b   : > { %v3348_v47 = vmul.f32 %v5071_v60, %v3293_v35  ;;  %v3448_v43 = vmax.f32 %v3360_v55, 1e-15 }
 0x60c   : > { %v8185_v24 = vpop.xlane.xlu0 %3307 }
 0x60d   : > { %v3350_v62 = vsel %vm3349_vm12, %v3293_v35, %v3348_v47  ;;  %5080 = vrsqrt.f32 %v8185_v24  ;;  %vm3384_vm1 = vcmp.eq.f32.partialorder %v8185_v24, inf  ;;  %vm3386_vm0 = vcmp.eq.f32.partialorder %v8185_v24, 0.0 }
 0x60e   : > { %v5073_v12 = vpop.eup %5072  ;;  %5082 = vrcp.f32 %v3448_v43  ;;  %v8189_v57 = vsel %vm3351_vm2, %v3352_v37, %v3350_v62  ;;  %vm3464_vm7 = vcmp.gt.f32.partialorder %v3448_v43, %v9285_v63 }
 0x60f   : > { %v5075_v16 = vpop.eup %5074  ;;  %v3369_v2 = vmul.f32 %v5073_v12, %v3302_v49  ;;  %v3447_v5 = vmax.f32 %v8189_v57, 1e-15 }
 0x610   : > { %v3494_v17 = vmul.f32 %v5075_v16, %v9285_v63  ;;  %v8193_v28 = vpop.xlane.xlu1 %3304 }
 0x611   : > { %v3371_v9 = vsel %vm3370_vm11, %v3302_v49, %v3369_v2  ;;  %5084 = vrsqrt.f32 %v8193_v28  ;;  %vm3377_vm13 = vcmp.eq.f32.partialorder %v8193_v28, inf  ;;  %vm3379_vm8 = vcmp.eq.f32.partialorder %v8193_v28, 0.0 }
 0x612   : > { %v5077_v61 = vpop.eup %5076  ;;  %v3510_v48 = vsel %vm3462_vm3, %v3494_v17, 1.0  ;;  %v8195_v38 = vsel %vm3372_vm15, %v3373_v8, %v3371_v9  ;;  %5086 = vrcp.f32 %v3447_v5  ;;  %v3380_v55 = vand.u32 2147483648, %v8193_v28 }
 0x613   : > { %v5079_v30 = vpop.eup %5078  ;;  %v3362_v44 = vmul.f32 %v5077_v61, %v3299_v32  ;;  %v8199_v21 = vmul.f32 %v3510_v48, %v8018_v6  ;;  %v3450_v19 = vmax.f32 %v8195_v38, 1e-15  ;;  %vm8248_vm12 = vcmp.gt.f32.partialorder %v3447_v5, %v9285_v63 }
 0x614   : > { %v3493_v3 = vmul.f32 %v5079_v30, %v9285_v63  ;;  %v8202_v31 = vpop.xlane.xlu0 %3313 }
 0x615   : > { %v3364_v53 = vsel %vm3363_vm9, %v3299_v32, %v3362_v44  ;;  %5088 = vrsqrt.f32 %v8202_v31  ;;  %v3542_v23 = vmul.f32 %v8199_v21, %v8199_v21  ;;  %vm3398_vm5 = vcmp.eq.f32.partialorder %v8202_v31, inf }
 0x616   : > { %v3509_v18 = vsel %vm3461_vm6, %v3493_v3, 1.0  ;;  %5090 = vrcp.f32 %v3450_v19  ;;  %v8212_v39 = vsel %vm3365_vm14, %v3366_v54, %v3364_v53  ;;  %vm3400_vm10 = vcmp.eq.f32.partialorder %v8202_v31, 0.0 }
 0x617   : > { %v5081_v6 = vpop.eup %5080  ;;  %v8210_v22 = vmul.f32 %v3509_v18, %v8028_v15  ;;  %v3560_v4 = vsel %vm1930_vm4, %v3542_v23, 0.0  ;;  %v3449_v27 = vmax.f32 %v8212_v39, 1e-15  ;;  %v3387_v15 = vand.u32 2147483648, %v8185_v24 }
 0x618   : > { %v5083_v35 = vpop.eup %5082  ;;  %v3383_v29 = vmul.f32 %v5081_v6, %v8185_v24  ;;  %v8215_v1 = vpop.xlane.xlu1 %3310  ;;  %3561 = vadd.xlane.f32.xlu0 %v3560_v4  ;;  %v3401_v17 = vand.u32 2147483648, %v8202_v31  ;;  %vm8265_vm11 = vcmp.gt.f32.partialorder %v3450_v19, %v9285_v63 }
 0x619   : > { %5092 = vrsqrt.f32 %v8215_v1  ;;  %v3541_v0 = vmul.f32 %v8210_v22, %v8210_v22  ;;  %v3496_v14 = vmul.f32 %v5083_v35, %v9285_v63  ;;  %vm3391_vm2 = vcmp.eq.f32.partialorder %v8215_v1, inf }
 0x61a   : > { %v3385_v49 = vsel %vm3384_vm1, %v8185_v24, %v3383_v29  ;;  %vm3393_vm15 = vcmp.eq.f32.partialorder %v8215_v1, 0.0  ;;  %v3394_v19 = vand.u32 2147483648, %v8215_v1  ;;  %vm8297_vm3 = vcmp.gt.f32.partialorder %v3449_v27, %v9285_v63 }
 0x61b   : > { %v5085_v26 = vpop.eup %5084  ;;  %v3557_v10 = vsel %vm1930_vm4, %v3541_v0, 0.0  ;;  %v3512_v45 = vsel %vm3464_vm7, %v3496_v14, 1.0  ;;  %v8234_v11 = vsel %vm3386_vm0, %v3387_v15, %v3385_v49 }
 0x61c   : > { %v8223_v13 = vpop.xlane.xlu0 %3319  ;;  %v3376_v36 = vmul.f32 %v5085_v26, %v8193_v28  ;;  %3558 = vadd.xlane.f32.xlu1 %v3557_v10  ;;  %v5087_v60 = vpop.eup %5086  ;;  %v8242_v47 = vmul.f32 %v3512_v45, %v8049_v34  ;;  %v3452_v43 = vmax.f32 %v8234_v11, 1e-15 }
 0x61d   : > { %5094 = vrsqrt.f32 %v8223_v13  ;;  %v3495_v62 = vmul.f32 %v5087_v60, %v9285_v63  ;;  %vm3412_vm9 = vcmp.eq.f32.partialorder %v8223_v13, inf  ;;  %vm3414_vm6 = vcmp.eq.f32.partialorder %v8223_v13, 0.0 }
 0x61e   : > { %5096 = vrcp.f32 %v3449_v27  ;;  %v3378_v16 = vsel %vm3377_vm13, %v8193_v28, %v3376_v36  ;;  %v3544_v2 = vmul.f32 %v8242_v47, %v8242_v47  ;;  %v3415_v14 = vand.u32 2147483648, %v8223_v13 }
 0x61f   : > { %v5089_v24 = vpop.eup %5088  ;;  %v3511_v61 = vsel %vm8248_vm12, %v3495_v62, 1.0  ;;  %v8280_v44 = vsel %vm3379_vm8, %v3380_v55, %v3378_v16  ;;  %vm8342_vm0 = vcmp.gt.f32.partialorder %v3452_v43, %v9285_v63 }
 0x620   : > { %v8232_v32 = vpop.xlane.xlu1 %3316  ;;  %v5091_v37 = vpop.eup %5090  ;;  %v3397_v34 = vmul.f32 %v5089_v24, %v8202_v31  ;;  %v3566_v5 = vsel %vm1930_vm4, %v3544_v2, 0.0  ;;  %v8276_v30 = vmul.f32 %v3511_v61, %v8058_v50  ;;  %v3451_v50 = vmax.f32 %v8280_v44, 1e-15 }
 0x621   : > { %5098 = vrsqrt.f32 %v8232_v32  ;;  %v3498_v48 = vmul.f32 %v5091_v37, %v9285_v63  ;;  %3567 = vadd.xlane.f32.xlu0 %v3566_v5  ;;  %vm3405_vm14 = vcmp.eq.f32.partialorder %v8232_v32, inf  ;;  %vm3407_vm1 = vcmp.eq.f32.partialorder %v8232_v32, 0.0 }
 0x622   : > { %5100 = vrcp.f32 %v3452_v43  ;;  %v3399_v9 = vsel %vm3398_vm5, %v8202_v31, %v3397_v34  ;;  %v3543_v28 = vmul.f32 %v8276_v30, %v8276_v30  ;;  %v3408_v37 = vand.u32 2147483648, %v8232_v32 }
 0x623   : > { %v5093_v38 = vpop.eup %5092  ;;  %v8284_v3 = vsel %vm3400_vm10, %v3401_v17, %v3399_v9  ;;  %v3514_v23 = vsel %vm8265_vm11, %v3498_v48, 1.0  ;;  %vm3467_vm10 = vcmp.gt.f32.partialorder %v3451_v50, %v9285_v63 }
 0x624   : > { %v8257_v8 = vpop.xlane.xlu0 %3325  ;;  %v3390_v53 = vmul.f32 %v5093_v38, %v8215_v1  ;;  %v3454_v6 = vmax.f32 %v8284_v3, 1e-15  ;;  %v8308_v4 = vmul.f32 %v3514_v23, %v8060_v42  ;;  %v3563_v27 = vsel %vm1930_vm4, %v3543_v28, 0.0 }
 0x625   : > { %5102 = vrsqrt.f32 %v8257_v8  ;;  %3564 = vadd.xlane.f32.xlu1 %v3563_v27  ;;  %vm3426_vm7 = vcmp.eq.f32.partialorder %v8257_v8, inf  ;;  %vm3428_vm13 = vcmp.eq.f32.partialorder %v8257_v8, 0.0 }
 0x626   : > { %v3392_v35 = vsel %vm3391_vm2, %v8215_v1, %v3390_v53  ;;  %v3546_v42 = vmul.f32 %v8308_v4, %v8308_v4  ;;  %vm3470_vm12 = vcmp.gt.f32.partialorder %v3454_v6, %v9285_v63 }
 0x627   : > { %v5095_v18 = vpop.eup %5094  ;;  %v8327_v45 = vsel %vm3393_vm15, %v3394_v19, %v3392_v35 }
 0x628   : > { %v8288_v54 = vpop.xlane.xlu1 %3322  ;;  %v5097_v39 = vpop.eup %5096  ;;  %v3411_v29 = vmul.f32 %v5095_v18, %v8223_v13  ;;  %v3572_v60 = vsel %vm1930_vm4, %v3546_v42, 0.0  ;;  %v3453_v12 = vmax.f32 %v8327_v45, 1e-15 }
 0x629   : > { %5104 = vrsqrt.f32 %v8288_v54  ;;  %v3497_v15 = vmul.f32 %v5097_v39, %v9285_v63  ;;  %3573 = vadd.xlane.f32.xlu0 %v3572_v60  ;;  %vm3419_vm8 = vcmp.eq.f32.partialorder %v8288_v54, inf  ;;  %vm3421_vm5 = vcmp.eq.f32.partialorder %v8288_v54, 0.0 }
 0x62a   : > { %5106 = vrcp.f32 %v3451_v50  ;;  %v3413_v0 = vsel %vm3412_vm9, %v8223_v13, %v3411_v29  ;;  %v3429_v13 = vand.u32 2147483648, %v8257_v8  ;;  %vm3469_vm9 = vcmp.gt.f32.partialorder %v3453_v12, %v9285_v63 }
 0x62b   : > { %v5099_v49 = vpop.eup %5098  ;;  %v3513_v10 = vsel %vm8297_vm3, %v3497_v15, 1.0  ;;  %5108 = vrcp.f32 %v3454_v6 }
 0x62c   : > { %v3404_v26 = vmul.f32 %v5099_v49, %v8232_v32  ;;  %v5101_v36 = vpop.eup %5100  ;;  %v8332_v55 = vmul.f32 %v3513_v10, %v8084_v56  ;;  %v8348_v56 = vsel %vm3414_vm6, %v3415_v14, %v3413_v0 }
 0x62d   : > { %v3500_v11 = vmul.f32 %v5101_v36, %v9285_v63  ;;  %v3456_v48 = vmax.f32 %v8348_v56, 1e-15 }
 0x62e   : > { %v3406_v16 = vsel %vm3405_vm14, %v8232_v32, %v3404_v26  ;;  %v3545_v2 = vmul.f32 %v8332_v55, %v8332_v55 }
 0x62f   : > { %v8334_v24 = vpop.xlane.xlu1 %3328  ;;  %v5103_v62 = vpop.eup %5102  ;;  %v3516_v9 = vsel %vm8342_vm0, %v3500_v11, 1.0  ;;  %v8375_v38 = vsel %vm3407_vm1, %v3408_v37, %v3406_v16  ;;  %vm3472_vm6 = vcmp.gt.f32.partialorder %v3456_v48, %v9285_v63 }
 0x630   : > { %5110 = vrsqrt.f32 %v8334_v24  ;;  %v3425_v34 = vmul.f32 %v5103_v62, %v8257_v8  ;;  %v8356_v17 = vpop.xlane.xlu0 %3331  ;;  %v3569_v57 = vsel %vm1930_vm4, %v3545_v2, 0.0  ;;  %v8370_v61 = vmul.f32 %v3516_v9, %v8096_v59 }
 0x631   : > { %5112 = vrsqrt.f32 %v8356_v17  ;;  %3570 = vadd.xlane.f32.xlu1 %v3569_v57  ;;  %v3455_v19 = vmax.f32 %v8375_v38, 1e-15  ;;  %v3422_v59 = vand.u32 2147483648, %v8288_v54  ;;  %vm3433_vm2 = vcmp.eq.f32.partialorder %v8334_v24, inf }
 0x632   : > { %v3427_v43 = vsel %vm3426_vm7, %v8257_v8, %v3425_v34  ;;  %5114 = vrcp.f32 %v3453_v12  ;;  %v3548_v28 = vmul.f32 %v8370_v61, %v8370_v61  ;;  %vm3435_vm11 = vcmp.eq.f32.partialorder %v8334_v24, 0.0 }
 0x633   : > { %v5105_v5 = vpop.eup %5104  ;;  %v8377_v8 = vsel %vm3428_vm13, %v3429_v13, %v3427_v43  ;;  %5116 = vrcp.f32 %v3456_v48  ;;  %v3436_v26 = vand.u32 2147483648, %v8334_v24  ;;  %vm3440_vm15 = vcmp.eq.f32.partialorder %v8356_v17, inf }
 0x634   : > { %v3418_v53 = vmul.f32 %v5105_v5, %v8288_v54  ;;  %v3458_v23 = vmax.f32 %v8377_v8, 1e-15  ;;  %v5107_v18 = vpop.eup %5106  ;;  %5118 = vrcp.f32 %v3455_v19  ;;  %v3578_v35 = vsel %vm1930_vm4, %v3548_v28, 0.0 }
 0x635   : > { %v3499_v31 = vmul.f32 %v5107_v18, %v9285_v63  ;;  %v5109_v39 = vpop.eup %5108  ;;  %3579 = vadd.xlane.f32.xlu0 %v3578_v35  ;;  %v3443_v36 = vand.u32 2147483648, %v8356_v17  ;;  %vm3442_vm3 = vcmp.eq.f32.partialorder %v8356_v17, 0.0  ;;  %vm3471_vm14 = vcmp.gt.f32.partialorder %v3455_v19, %v9285_v63 }
 0x636   : > { %v3420_v32 = vsel %vm3419_vm8, %v8288_v54, %v3418_v53  ;;  %5120 = vrcp.f32 %v3458_v23  ;;  %v3502_v27 = vmul.f32 %v5109_v39, %v9285_v63  ;;  %vm3474_vm1 = vcmp.gt.f32.partialorder %v3458_v23, %v9285_v63 }
 0x637   : > { %v3423_v29 = vsel %vm3421_vm5, %v3422_v59, %v3420_v32  ;;  %v3515_v49 = vsel %vm3467_vm10, %v3499_v31, 1.0 }
 0x638   : > { %v3457_v15 = vmax.f32 %v3423_v29, 1e-15  ;;  %v8397_v0 = vmul.f32 %v3515_v49, %v8113_v51  ;;  %v3518_v50 = vsel %vm3470_vm12, %v3502_v27, 1.0 }
 0x639   : > { %v8409_v51 = vmul.f32 %v3518_v50, %v8116_v52 }
 0x63a   : > { %v5111_v54 = vpop.eup %5110  ;;  %5122 = vrcp.f32 %v3457_v15  ;;  %v3547_v42 = vmul.f32 %v8397_v0, %v8397_v0  ;;  %vm3473_vm0 = vcmp.gt.f32.partialorder %v3457_v15, %v9285_v63 }
 0x63b   : > { %v3432_v44 = vmul.f32 %v5111_v54, %v8334_v24  ;;  %v5113_v14 = vpop.eup %5112  ;;  %v3550_v62 = vmul.f32 %v8409_v51, %v8409_v51 }
 0x63c   : > { %v5115_v10 = vpop.eup %5114  ;;  %v3439_v6 = vmul.f32 %v5113_v14, %v8356_v17  ;;  %v3575_v60 = vsel %vm1930_vm4, %v3547_v42, 0.0 }
 0x63d   : > { %v3434_v3 = vsel %vm3433_vm2, %v8334_v24, %v3432_v44  ;;  %v3501_v37 = vmul.f32 %v5115_v10, %v9285_v63  ;;  %3576 = vadd.xlane.f32.xlu1 %v3575_v60  ;;  %v5117_v56 = vpop.eup %5116  ;;  %v3584_v16 = vsel %vm1930_vm4, %v3550_v62, 0.0 }
 0x63e   : > { %v3437_v1 = vsel %vm3435_vm11, %v3436_v26, %v3434_v3  ;;  %v3441_v52 = vsel %vm3440_vm15, %v8356_v17, %v3439_v6  ;;  %v5119_v11 = vpop.eup %5118  ;;  %3585 = vadd.xlane.f32.xlu0 %v3584_v16  ;;  %v3504_v43 = vmul.f32 %v5117_v56, %v9285_v63 }
 0x63f   : > { %v3459_v24 = vmax.f32 %v3437_v1, 1e-15  ;;  %v3517_v34 = vsel %vm3469_vm9, %v3501_v37, 1.0  ;;  %v3444_v2 = vsel %vm3442_vm3, %v3443_v36, %v3441_v52  ;;  %v3503_v45 = vmul.f32 %v5119_v11, %v9285_v63 }
 0x640   : > { %v8426_v13 = vmul.f32 %v3517_v34, %v8136_v20  ;;  %v5121_v17 = vpop.eup %5120  ;;  %v3460_v12 = vmax.f32 %v3444_v2, 1e-15  ;;  %v3520_v9 = vsel %vm3472_vm6, %v3504_v43, 1.0 }
 0x641   : > { %5124 = vrcp.f32 %v3459_v24  ;;  %v3506_v5 = vmul.f32 %v5121_v17, %v9285_v63  ;;  %v8436_v20 = vmul.f32 %v3520_v9, %v8143_v58  ;;  %v3519_v38 = vsel %vm3471_vm14, %v3503_v45, 1.0 }
 0x642   : > { %v3549_v57 = vmul.f32 %v8426_v13, %v8426_v13  ;;  %5126 = vrcp.f32 %v3460_v12  ;;  %v8443_v18 = vmul.f32 %v3519_v38, %v8146_v7  ;;  %vm3475_vm7 = vcmp.gt.f32.partialorder %v3459_v24, %v9285_v63 }
 0x643   : > { %v3522_v59 = vsel %vm3474_vm1, %v3506_v5, 1.0  ;;  %v3552_v19 = vmul.f32 %v8436_v20, %v8436_v20  ;;  %vm3476_vm13 = vcmp.gt.f32.partialorder %v3460_v12, %v9285_v63 }
 0x644   : > { %v5123_v48 = vpop.eup %5122  ;;  %v3581_v53 = vsel %vm1930_vm4, %v3549_v57, 0.0  ;;  %v8448_v58 = vmul.f32 %v3522_v59, %v8160_v40  ;;  %v3551_v8 = vmul.f32 %v8443_v18, %v8443_v18 }
 0x645   : > { %3582 = vadd.xlane.f32.xlu1 %v3581_v53  ;;  %v3505_v28 = vmul.f32 %v5123_v48, %v9285_v63  ;;  %v3590_v23 = vsel %vm1930_vm4, %v3552_v19, 0.0 }
 0x646   : > { %v3554_v7 = vmul.f32 %v8448_v58, %v8448_v58  ;;  %3591 = vadd.xlane.f32.xlu0 %v3590_v23  ;;  %v3587_v31 = vsel %vm1930_vm4, %v3551_v8, 0.0 }
 0x647   : > { %v3521_v32 = vsel %vm3473_vm0, %v3505_v28, 1.0 }
 0x648   : > { %v8459_v39 = vmul.f32 %v3521_v32, %v8167_v41  ;;  %v3596_v40 = vsel %vm1930_vm4, %v3554_v7, 0.0 }
 0x649   : > { %3588 = vadd.xlane.f32.xlu1 %v3587_v31 }
 0x64a   : > { %v3553_v29 = vmul.f32 %v8459_v39, %v8459_v39  ;;  %3597 = vadd.xlane.f32.xlu0 %v3596_v40 }
 0x64b   : > { %v5125_v35 = vpop.eup %5124 }
 0x64c   : > { %v3507_v49 = vmul.f32 %v5125_v35, %v9285_v63  ;;  %v3593_v27 = vsel %vm1930_vm4, %v3553_v29, 0.0  ;;  %v5127_v15 = vpop.eup %5126 }
 0x64d   : > { %3594 = vadd.xlane.f32.xlu1 %v3593_v27  ;;  %v3508_v44 = vmul.f32 %v5127_v15, %v9285_v63 }
 0x64e   : > { %v3523_v54 = vsel %vm3475_vm7, %v3507_v49, 1.0 }
 0x64f   : > { %v8468_v41 = vmul.f32 %v3523_v54, %v8175_v33  ;;  %v3524_v14 = vsel %vm3476_vm13, %v3508_v44, 1.0 }
 0x650   : > { %v8475_v26 = vmul.f32 %v3524_v14, %v8179_v46 }
 0x651   : > { %v3555_v50 = vmul.f32 %v8468_v41, %v8468_v41 }
 0x652   : > { %v3556_v10 = vmul.f32 %v8475_v26, %v8475_v26 }
 0x653   : > { %v3599_v42 = vsel %vm1930_vm4, %v3555_v50, 0.0 }
 0x654   : > { %3600 = vadd.xlane.f32.xlu1 %v3599_v42  ;;  %v3602_v33 = vsel %vm1930_vm4, %v3556_v10, 0.0 }
 0x655   : > { %3603 = vadd.xlane.f32.xlu0 %v3602_v33 }
 0x6a5   : > { %v3562_v3 = vpop.xlane.xlu0 %3561 }
 0x6a6   : > { %5128 = vrsqrt.f32 %v3562_v3  ;;  %vm3614_vm8 = vcmp.eq.f32.partialorder %v3562_v3, inf  ;;  %v3617_v46 = vand.u32 2147483648, %v3562_v3  ;;  %vm3616_vm5 = vcmp.eq.f32.partialorder %v3562_v3, 0.0 }
 0x6a9   : > { %v3559_v6 = vpop.xlane.xlu1 %3558 }
 0x6aa   : > { %5130 = vrsqrt.f32 %v3559_v6  ;;  %vm3607_vm10 = vcmp.eq.f32.partialorder %v3559_v6, inf  ;;  %v3610_v16 = vand.u32 2147483648, %v3559_v6  ;;  %vm3609_vm12 = vcmp.eq.f32.partialorder %v3559_v6, 0.0 }
 0x6ae   : > { %v3568_v63 = vpop.xlane.xlu0 %3567 }
 0x6af   : > { %5132 = vrsqrt.f32 %v3568_v63  ;;  %vm3628_vm2 = vcmp.eq.f32.partialorder %v3568_v63, inf  ;;  %vm3630_vm11 = vcmp.eq.f32.partialorder %v3568_v63, 0.0  ;;  %v3631_v19 = vand.u32 2147483648, %v3568_v63 }
 0x6b0   : > { %v5129_v36 = vpop.eup %5128 }
 0x6b1   : > { %v3613_v60 = vmul.f32 %v5129_v36, %v3562_v3 }
 0x6b2   : > { %v3565_v52 = vpop.xlane.xlu1 %3564 }
 0x6b3   : > { %v3615_v62 = vsel %vm3614_vm8, %v3562_v3, %v3613_v60  ;;  %5134 = vrsqrt.f32 %v3565_v52  ;;  %vm3621_vm15 = vcmp.eq.f32.partialorder %v3565_v52, inf  ;;  %vm3623_vm3 = vcmp.eq.f32.partialorder %v3565_v52, 0.0 }
 0x6b4   : > { %v5131_v37 = vpop.eup %5130  ;;  %v3618_v1 = vsel %vm3616_vm5, %v3617_v46, %v3615_v62  ;;  %v3624_v32 = vand.u32 2147483648, %v3565_v52 }
 0x6b5   : > { %v3718_v24 = vmax.f32 %v3618_v1, 1e-15  ;;  %v3606_v56 = vmul.f32 %v5131_v37, %v3559_v6 }
 0x6b6   : > { %v8482_v11 = vpop.xlane.xlu0 %3573 }
 0x6b7   : > { %v3734_v34 = vmul.f32 %v3718_v24, %v5516_v25  ;;  %v3608_v2 = vsel %vm3607_vm10, %v3559_v6, %v3606_v56  ;;  %5136 = vrsqrt.f32 %v8482_v11  ;;  %vm3642_vm9 = vcmp.eq.f32.partialorder %v8482_v11, inf }
 0x6b8   : > { %v3611_v43 = vsel %vm3609_vm12, %v3610_v16, %v3608_v2  ;;  %vm3644_vm6 = vcmp.eq.f32.partialorder %v8482_v11, 0.0  ;;  %v3645_v14 = vand.u32 2147483648, %v8482_v11 }
 0x6b9   : > { %v4340_v17 = vclamps-f32 %v3734_v34, 0.999999  ;;  %v3717_v45 = vmax.f32 %v3611_v43, 1e-15  ;;  %v5133_v12 = vpop.eup %5132 }
 0x6ba   : > { %v3627_v48 = vmul.f32 %v5133_v12, %v3568_v63 }
 0x6bb   : > { %v3790_v57 = vadd.f32 1.0, %v4340_v17  ;;  %v3926_v9 = vsub.f32 0.0, %v4340_v17  ;;  %v3733_v38 = vmul.f32 %v3717_v45, %v5516_v25  ;;  %v3793_v8 = vmul.f32 -0.5, %v4340_v17 }
 0x6bc   : > { %v3629_v23 = vsel %vm3628_vm2, %v3568_v63, %v3627_v48  ;;  %v3796_v44 = vand.u32 2147483647, %v4340_v17 }
 0x6bd   : > { %5138 = vlog2.f32 %v3790_v57  ;;  %v3950_v53 = vadd.f32 1.0, %v3926_v9  ;;  %v4339_v59 = vclamps-f32 %v3733_v38, 0.999999  ;;  %v5135_v28 = vpop.eup %5134  ;;  %v3953_v31 = vmul.f32 -0.5, %v3926_v9 }
 0x6be   : > { %v8485_v5 = vpop.xlane.xlu1 %3570  ;;  %v3632_v35 = vsel %vm3630_vm11, %v3631_v19, %v3629_v23  ;;  %v3620_v29 = vmul.f32 %v5135_v28, %v3565_v52  ;;  %v3794_v54 = vadd.f32 1.0, %v3793_v8  ;;  %v3956_v42 = vand.u32 2147483647, %v3926_v9 }
 0x6bf   : > { %5140 = vrsqrt.f32 %v8485_v5  ;;  %v3781_v7 = vadd.f32 1.0, %v4339_v59  ;;  %v8490_v40 = vsub.f32 0.0, %v4339_v59  ;;  %v3784_v27 = vmul.f32 -0.5, %v4339_v59 }
 0x6c0   : > { %5142 = vlog2.f32 %v3950_v53  ;;  %v3720_v15 = vmax.f32 %v3632_v35, 1e-15  ;;  %v3622_v33 = vsel %vm3621_vm15, %v3565_v52, %v3620_v29  ;;  %v3954_v6 = vadd.f32 1.0, %v3953_v31 }
 0x6c1   : > { %5144 = vrcp.f32 %v3734_v34  ;;  %v5137_v49 = vpop.eup %5136  ;;  %v3941_v50 = vadd.f32 1.0, %v8490_v40  ;;  %v3787_v63 = vand.u32 2147483647, %v4339_v59  ;;  %v3625_v36 = vsel %vm3623_vm3, %v3624_v32, %v3622_v33 }
 0x6c2   : > { %5146 = vlog2.f32 %v3781_v7  ;;  %v3736_v10 = vmul.f32 %v3720_v15, %v5516_v25  ;;  %v3641_v3 = vmul.f32 %v5137_v49, %v8482_v11  ;;  %v3785_v60 = vadd.f32 1.0, %v3784_v27 }
 0x6c3   : > { %5148 = vlog2.f32 %v3941_v50  ;;  %v3719_v62 = vmax.f32 %v3625_v36, 1e-15  ;;  %vm3635_vm14 = vcmp.eq.f32.partialorder %v8485_v5, inf  ;;  %v3795_v1 = vmul.f32 %v4340_v17, %v3794_v54 }
 0x6c4   : > { %v8500_v46 = vclamps-f32 %v3736_v10, 0.999999  ;;  %vm8503_vm1 = vcmp.lt.f32.partialorder %v3796_v44, 0.0004427343  ;;  %v3944_v56 = vmul.f32 -0.5, %v8490_v40  ;;  %5150 = vrcp.f32 %v3733_v38 }
 0x6c5   : > { %v3947_v52 = vand.u32 2147483647, %v8490_v40  ;;  %v3643_v43 = vsel %vm3642_vm9, %v8482_v11, %v3641_v3  ;;  %v3955_v12 = vmul.f32 %v3954_v6, %v3926_v9  ;;  %vm8513_vm0 = vcmp.lt.f32.partialorder %v3956_v42, 0.0004427343 }
 0x6c6   : > { %v3808_v2 = vadd.f32 1.0, %v8500_v46  ;;  %v8518_v57 = vsub.f32 0.0, %v8500_v46  ;;  %v8521_v38 = vmul.f32 %v3719_v62, %v5516_v25  ;;  %vm3637_vm7 = vcmp.eq.f32.partialorder %v8485_v5, 0.0 }
 0x6c7   : > { %v5139_v37 = vpop.eup %5138  ;;  %v3786_v19 = vmul.f32 %v4339_v59, %v3785_v60  ;;  %vm8524_vm13 = vcmp.lt.f32.partialorder %v3787_v63, 0.0004427343  ;;  %v3945_v9 = vadd.f32 1.0, %v3944_v56  ;;  %v3646_v23 = vsel %vm3644_vm6, %v3645_v14, %v3643_v43 }
 0x6c8   : > { %v3792_v34 = vmul.f32 0.6931472, %v5139_v37  ;;  %5152 = vlog2.f32 %v3808_v2  ;;  %v3968_v8 = vadd.f32 1.0, %v8518_v57  ;;  %vm8536_vm8 = vcmp.lt.f32.partialorder %v3947_v52, 0.0004427343 }
 0x6c9   : > { %v5141_v16 = vpop.eup %5140  ;;  %v8541_v29 = vclamps-f32 %v8521_v38, 0.999999  ;;  %v3811_v11 = vmul.f32 -0.5, %v8500_v46  ;;  %v3814_v27 = vand.u32 2147483647, %v8500_v46  ;;  %v3946_v42 = vmul.f32 %v3945_v9, %v8490_v40 }
 0x6ca   : > { %v5143_v45 = vpop.eup %5142  ;;  %v3634_v7 = vmul.f32 %v5141_v16, %v8485_v5  ;;  %v3798_v31 = vsel %vm8503_vm1, %v3795_v1, %v3792_v34  ;;  %5154 = vlog2.f32 %v3968_v8  ;;  %v3722_v44 = vmax.f32 %v3646_v23, 1e-15  ;;  %v8573_v34 = vpop.xlane.xlu0 %3579 }
 0x6cb   : > { %v5145_v48 = vpop.eup %5144  ;;  %v3952_v53 = vmul.f32 0.6931472, %v5143_v45  ;;  %5156 = vrcp.f32 %v3736_v10  ;;  %v3799_v54 = vadd.f32 1.0, %v8541_v29  ;;  %v8548_v33 = vsub.f32 0.0, %v8541_v29 }
 0x6cc   : > { %v5147_v32 = vpop.eup %5146  ;;  %v3636_v3 = vsel %vm3635_vm14, %v8485_v5, %v3634_v7  ;;  %v3971_v63 = vmul.f32 -0.5, %v8518_v57  ;;  %v3638_v10 = vand.u32 2147483648, %v8485_v5  ;;  %v3812_v62 = vadd.f32 1.0, %v3811_v11 }
 0x6cd   : > { %v3958_v59 = vsel %vm8513_vm0, %v3955_v12, %v3952_v53  ;;  %v3783_v15 = vmul.f32 0.6931472, %v5147_v32  ;;  %v5149_v50 = vpop.eup %5148  ;;  %5158 = vlog2.f32 %v3799_v54  ;;  %vm8555_vm5 = vcmp.lt.f32.partialorder %v3814_v27, 0.0004427343 }
 0x6ce   : > { %v4086_v49 = vsub.f32 %v3798_v31, %v3958_v59  ;;  %v3943_v6 = vmul.f32 0.6931472, %v5149_v50  ;;  %v5151_v36 = vpop.eup %5150  ;;  %v3959_v40 = vadd.f32 1.0, %v8548_v33  ;;  %v3738_v56 = vmul.f32 %v3722_v44, %v5516_v25 }
 0x6cf   : > { %v3789_v1 = vsel %vm8524_vm13, %v3786_v19, %v3783_v15  ;;  %v3639_v16 = vsel %vm3637_vm7, %v3638_v10, %v3636_v3  ;;  %v3974_v43 = vand.u32 2147483647, %v8518_v57  ;;  %v3972_v12 = vadd.f32 1.0, %v3971_v63 }
 0x6d0   : > { %v4102_v14 = vmul.f32 0.5, %v4086_v49  ;;  %v3949_v24 = vsel %vm8536_vm8, %v3946_v42, %v3943_v6  ;;  %5160 = vlog2.f32 %v3959_v40  ;;  %v3802_v17 = vmul.f32 -0.5, %v8541_v29 }
 0x6d1   : > { %v4085_v2 = vsub.f32 %v3789_v1, %v3949_v24  ;;  %v3721_v53 = vmax.f32 %v3639_v16, 1e-15  ;;  %v3813_v5 = vmul.f32 %v8500_v46, %v3812_v62  ;;  %v3805_v28 = vand.u32 2147483647, %v8541_v29 }
 0x6d2   : > { %v4134_v60 = vmul.f32 %v5145_v48, %v4102_v14  ;;  %v5153_v45 = vpop.eup %5152  ;;  %v8578_v48 = vclamps-f32 %v3738_v56, 0.999999  ;;  %5162 = vrsqrt.f32 %v8573_v34  ;;  %v3962_v9 = vmul.f32 -0.5, %v8548_v33 }
 0x6d3   : > { %v4101_v19 = vmul.f32 0.5, %v4085_v2  ;;  %vm8590_vm10 = vcmp.lt.f32.partialorder %v3974_v43, 0.0004427343  ;;  %5164 = vrcp.f32 %v8521_v38  ;;  %v8596_v46 = vmul.f32 %v3721_v53, %v5516_v25 }
 0x6d4   : > { %v4150_v52 = vmul.f32 %v4134_v60, %v8199_v21  ;;  %v3810_v21 = vmul.f32 0.6931472, %v5153_v45  ;;  %v3826_v8 = vadd.f32 1.0, %v8578_v48  ;;  %v8588_v23 = vsub.f32 0.0, %v8578_v48  ;;  %v5155_v7 = vpop.eup %5154 }
 0x6d5   : > { %v4133_v32 = vmul.f32 %v5151_v36, %v4101_v19  ;;  %v5157_v59 = vpop.eup %5156  ;;  %v3970_v35 = vmul.f32 0.6931472, %v5155_v7  ;;  %v3973_v49 = vmul.f32 %v3972_v12, %v8518_v57  ;;  %v3803_v11 = vadd.f32 1.0, %v3802_v17  ;;  %v8634_v12 = vpop.xlane.xlu1 %3576 }
 0x6d6   : > { %4166 = vst.msk [vmem:[%s8564_s26 + $0x8] sm:$0xff] %vm1930_vm4, %v4150_v52  ;;  %5166 = vlog2.f32 %v3826_v8  ;;  %vm8600_vm12 = vcmp.lt.f32.partialorder %v3805_v28, 0.0004427343  ;;  %v3965_v54 = vand.u32 2147483647, %v8548_v33  ;;  %v3986_v38 = vadd.f32 1.0, %v8588_v23 }
 0x6d7   : > { %v4149_v27 = vmul.f32 %v4133_v32, %v8210_v22  ;;  %v5159_v44 = vpop.eup %5158  ;;  %v3816_v50 = vsel %vm8555_vm5, %v3813_v5, %v3810_v21  ;;  %v3976_v14 = vsel %vm8590_vm10, %v3973_v49, %v3970_v35  ;;  %v3963_v57 = vadd.f32 1.0, %v3962_v9  ;;  %v8643_v9 = vpop.xlane.xlu0 %3585 }
 0x6d8   : > { %v8611_v42 = vclamps-f32 %v8596_v46, 0.999999  ;;  %v4088_v22 = vsub.f32 %v3816_v50, %v3976_v14  ;;  %v3829_v3 = vmul.f32 -0.5, %v8578_v48  ;;  %v3832_v6 = vand.u32 2147483647, %v8578_v48 }
 0x6d9   : > { %4165 = vst.msk [vmem:[%s8564_s26] sm:$0xff] %vm1930_vm4, %v4149_v27  ;;  %5168 = vlog2.f32 %v3986_v38  ;;  %v3801_v63 = vmul.f32 0.6931472, %v5159_v44  ;;  %v3804_v10 = vmul.f32 %v8541_v29, %v3803_v11  ;;  %v3989_v36 = vmul.f32 -0.5, %v8588_v23  ;;  %v8656_v49 = vpop.xlane.xlu1 %3582 }
 0x6da   : > { %v3817_v60 = vadd.f32 1.0, %v8611_v42  ;;  %v5161_v62 = vpop.eup %5160  ;;  %v4104_v37 = vmul.f32 0.5, %v4088_v22  ;;  %vm8620_vm2 = vcmp.lt.f32.partialorder %v3965_v54, 0.0004427343  ;;  %5170 = vrcp.f32 %v3738_v56 }
 0x6db   : > { %v8625_v1 = vsub.f32 0.0, %v8611_v42  ;;  %v3961_v24 = vmul.f32 0.6931472, %v5161_v62  ;;  %v3964_v16 = vmul.f32 %v3963_v57, %v8548_v33  ;;  %vm3656_vm11 = vcmp.eq.f32.partialorder %v8573_v34, inf }
 0x6dc   : > { %5172 = vlog2.f32 %v3817_v60  ;;  %v5163_v29 = vpop.eup %5162  ;;  %v4136_v52 = vmul.f32 %v5157_v59, %v4104_v37  ;;  %v3830_v2 = vadd.f32 1.0, %v3829_v3  ;;  %vm8629_vm15 = vcmp.lt.f32.partialorder %v3832_v6, 0.0004427343 }
 0x6dd   : > { %v3977_v45 = vadd.f32 1.0, %v8625_v1  ;;  %v3807_v56 = vsel %vm8600_vm12, %v3804_v10, %v3801_v63  ;;  %v3967_v33 = vsel %vm8620_vm2, %v3964_v16, %v3961_v24  ;;  %v3990_v17 = vadd.f32 1.0, %v3989_v36  ;;  %v5165_v19 = vpop.eup %5164  ;;  %v8679_v37 = vpop.xlane.xlu1 %3588 }
 0x6de   : > { %v3655_v53 = vmul.f32 %v5163_v29, %v8573_v34  ;;  %v4152_v5 = vmul.f32 %v4136_v52, %v8242_v47  ;;  %v4087_v28 = vsub.f32 %v3807_v56, %v3967_v33  ;;  %v3820_v21 = vmul.f32 -0.5, %v8611_v42 }
 0x6df   : > { %5174 = vlog2.f32 %v3977_v45  ;;  %v3980_v7 = vmul.f32 -0.5, %v8625_v1  ;;  %v3659_v31 = vand.u32 2147483648, %v8573_v34  ;;  %v3831_v59 = vmul.f32 %v8578_v48, %v3830_v2  ;;  %v8661_v48 = vpop.xlane.xlu0 %3591 }
 0x6e0   : > { %v5167_v8 = vpop.eup %5166  ;;  %v3657_v32 = vsel %vm3656_vm11, %v8573_v34, %v3655_v53  ;;  %5176 = vrsqrt.f32 %v8634_v12  ;;  %4168 = vst.msk [vmem:[%s8564_s26 + $0x18] sm:$0xff] %vm1930_vm4, %v4152_v5  ;;  %v4103_v47 = vmul.f32 0.5, %v4087_v28  ;;  %v3992_v35 = vand.u32 2147483647, %v8588_v23 }
 0x6e1   : > { %vm3658_vm3 = vcmp.eq.f32.partialorder %v8573_v34, 0.0  ;;  %v3828_v11 = vmul.f32 0.6931472, %v5167_v8  ;;  %v3823_v27 = vand.u32 2147483647, %v8611_v42  ;;  %5178 = vrsqrt.f32 %v8643_v9 }
 0x6e2   : > { %v3660_v15 = vsel %vm3658_vm3, %v3659_v31, %v3657_v32  ;;  %v4135_v38 = vmul.f32 %v5165_v19, %v4103_v47  ;;  %v3991_v44 = vmul.f32 %v3990_v17, %v8588_v23  ;;  %v3821_v50 = vadd.f32 1.0, %v3820_v21 }
 0x6e3   : > { %v5169_v54 = vpop.eup %5168  ;;  %v3724_v14 = vmax.f32 %v3660_v15, 1e-15  ;;  %v3981_v22 = vadd.f32 1.0, %v3980_v7  ;;  %v3983_v34 = vand.u32 2147483647, %v8625_v1  ;;  %5180 = vrsqrt.f32 %v8656_v49 }
 0x6e4   : > { %v3988_v57 = vmul.f32 0.6931472, %v5169_v54  ;;  %v5171_v3 = vpop.eup %5170  ;;  %v4151_v6 = vmul.f32 %v4135_v38, %v8276_v30  ;;  %vm3993_vm9 = vcmp.lt.f32.partialorder %v3992_v35, 0.0004427343  ;;  %5182 = vrcp.f32 %v8596_v46 }
 0x6e5   : > { %v3740_v63 = vmul.f32 %v3724_v14, %v5516_v25  ;;  %v3834_v10 = vsel %vm8629_vm15, %v3831_v59, %v3828_v11  ;;  %5184 = vrsqrt.f32 %v8661_v48  ;;  %vm8673_vm6 = vcmp.lt.f32.partialorder %v3823_v27, 0.0004427343 }
 0x6e6   : > { %v5173_v23 = vpop.eup %5172  ;;  %v3994_v36 = vsel %vm3993_vm9, %v3991_v44, %v3988_v57  ;;  %4167 = vst.msk [vmem:[%s8564_s26 + $0x10] sm:$0xff] %vm1930_vm4, %v4151_v6  ;;  %v3822_v40 = vmul.f32 %v8611_v42, %v3821_v50  ;;  %v3982_v24 = vmul.f32 %v3981_v22, %v8625_v1  ;;  %vm8683_vm14 = vcmp.lt.f32.partialorder %v3983_v34, 0.0004427343 }
 0x6e7   : > { %v4090_v60 = vsub.f32 %v3834_v10, %v3994_v36  ;;  %v8677_v30 = vclamps-f32 %v3740_v63, 0.999999  ;;  %v3819_v46 = vmul.f32 0.6931472, %v5173_v23  ;;  %vm3649_vm1 = vcmp.eq.f32.partialorder %v8634_v12, inf }
 0x6e8   : > { %vm3651_vm0 = vcmp.eq.f32.partialorder %v8634_v12, 0.0  ;;  %v3652_v42 = vand.u32 2147483648, %v8634_v12  ;;  %5186 = vrsqrt.f32 %v8679_v37  ;;  %vm3670_vm7 = vcmp.eq.f32.partialorder %v8643_v9, inf }
 0x6e9   : > { %v5175_v29 = vpop.eup %5174  ;;  %v4106_v52 = vmul.f32 0.5, %v4090_v60  ;;  %v3844_v2 = vadd.f32 1.0, %v8677_v30  ;;  %v8691_v56 = vsub.f32 0.0, %v8677_v30  ;;  %v3825_v53 = vsel %vm8673_vm6, %v3822_v40, %v3819_v46  ;;  %v8737_v40 = vpop.xlane.xlu0 %3597 }
 0x6ea   : > { %v5177_v43 = vpop.eup %5176  ;;  %v3979_v45 = vmul.f32 0.6931472, %v5175_v29  ;;  %vm3672_vm13 = vcmp.eq.f32.partialorder %v8643_v9, 0.0  ;;  %v3673_v8 = vand.u32 2147483648, %v8643_v9  ;;  %vm3663_vm8 = vcmp.eq.f32.partialorder %v8656_v49, inf }
 0x6eb   : > { %v4138_v1 = vmul.f32 %v5171_v3, %v4106_v52  ;;  %5188 = vlog2.f32 %v3844_v2  ;;  %v3648_v33 = vmul.f32 %v5177_v43, %v8634_v12  ;;  %v5179_v17 = vpop.eup %5178  ;;  %v4004_v5 = vadd.f32 1.0, %v8691_v56 }
 0x6ec   : > { %v3985_v19 = vsel %vm8683_vm14, %v3982_v24, %v3979_v45  ;;  %v3669_v31 = vmul.f32 %v5179_v17, %v8643_v9  ;;  %vm3665_vm5 = vcmp.eq.f32.partialorder %v8656_v49, 0.0  ;;  %v3666_v11 = vand.u32 2147483648, %v8656_v49 }
 0x6ed   : > { %v4154_v28 = vmul.f32 %v4138_v1, %v8308_v4  ;;  %v4089_v21 = vsub.f32 %v3825_v53, %v3985_v19  ;;  %v5181_v7 = vpop.eup %5180  ;;  %5190 = vlog2.f32 %v4004_v5  ;;  %v3650_v32 = vsel %vm3649_vm1, %v8634_v12, %v3648_v33 }
 0x6ee   : > { %v5183_v47 = vpop.eup %5182  ;;  %v3653_v4 = vsel %vm3651_vm0, %v3652_v42, %v3650_v32  ;;  %v3662_v35 = vmul.f32 %v5181_v7, %v8656_v49  ;;  %v3847_v15 = vmul.f32 -0.5, %v8677_v30  ;;  %v4007_v54 = vmul.f32 -0.5, %v8691_v56 }
 0x6ef   : > { %4170 = vst.msk [vmem:[%s8564_s26 + $0x28] sm:$0xff] %vm1930_vm4, %v4154_v28  ;;  %v4105_v59 = vmul.f32 0.5, %v4089_v21  ;;  %v5185_v27 = vpop.eup %5184  ;;  %v3723_v38 = vmax.f32 %v3653_v4, 1e-15  ;;  %v3671_v44 = vsel %vm3670_vm7, %v8643_v9, %v3669_v31  ;;  %v3850_v14 = vand.u32 2147483647, %v8677_v30 }
 0x6f0   : > { %v3674_v12 = vsel %vm3672_vm13, %v3673_v8, %v3671_v44  ;;  %v3664_v57 = vsel %vm3663_vm8, %v8656_v49, %v3662_v35  ;;  %v3683_v6 = vmul.f32 %v5185_v27, %v8661_v48  ;;  %5192 = vrcp.f32 %v3740_v63 }
 0x6f1   : > { %v4137_v50 = vmul.f32 %v5183_v47, %v4105_v59  ;;  %v3739_v22 = vmul.f32 %v3723_v38, %v5516_v25  ;;  %v3726_v34 = vmax.f32 %v3674_v12, 1e-15  ;;  %v3667_v3 = vsel %vm3665_vm5, %v3666_v11, %v3664_v57 }
 0x6f2   : > { %v3725_v10 = vmax.f32 %v3667_v3, 1e-15  ;;  %vm3684_vm10 = vcmp.eq.f32.partialorder %v8661_v48, inf  ;;  %v5187_v9 = vpop.eup %5186  ;;  %v3848_v36 = vadd.f32 1.0, %v3847_v15  ;;  %v4008_v60 = vadd.f32 1.0, %v4007_v54 }
 0x6f3   : > { %v4153_v23 = vmul.f32 %v4137_v50, %v8332_v55  ;;  %v8734_v62 = vclamps-f32 %v3739_v22, 0.999999  ;;  %v3742_v46 = vmul.f32 %v3726_v34, %v5516_v25  ;;  %vm3686_vm12 = vcmp.eq.f32.partialorder %v8661_v48, 0.0 }
 0x6f4   : > { %v8742_v49 = vmul.f32 %v3725_v10, %v5516_v25  ;;  %v3687_v55 = vand.u32 2147483648, %v8661_v48  ;;  %vm3677_vm2 = vcmp.eq.f32.partialorder %v8679_v37, inf  ;;  %vm8747_vm11 = vcmp.lt.f32.partialorder %v3850_v14, 0.0004427343 }
 0x6f5   : > { %v5189_v24 = vpop.eup %5188  ;;  %4169 = vst.msk [vmem:[%s8564_s26 + $0x20] sm:$0xff] %vm1930_vm4, %v4153_v23  ;;  %v4010_v16 = vand.u32 2147483647, %v8691_v56  ;;  %v3835_v29 = vadd.f32 1.0, %v8734_v62  ;;  %v3685_v52 = vsel %vm3684_vm10, %v8661_v48, %v3683_v6  ;;  %v8757_v43 = vsub.f32 0.0, %v8734_v62 }
 0x6f6   : > { %v3846_v2 = vmul.f32 0.6931472, %v5189_v24  ;;  %v8759_v45 = vclamps-f32 %v3742_v46, 0.999999  ;;  %5194 = vrsqrt.f32 %v8737_v40  ;;  %v3849_v1 = vmul.f32 %v8677_v30, %v3848_v36 }
 0x6f7   : > { %v5191_v42 = vpop.eup %5190  ;;  %v4009_v33 = vmul.f32 %v4008_v60, %v8691_v56  ;;  %5196 = vlog2.f32 %v3835_v29  ;;  %v3676_v17 = vmul.f32 %v5187_v9, %v8679_v37  ;;  %v3995_v19 = vadd.f32 1.0, %v8757_v43 }
 0x6f8   : > { %v4006_v53 = vmul.f32 0.6931472, %v5191_v42  ;;  %v8767_v5 = vclamps-f32 %v8742_v49, 0.999999  ;;  %v3688_v28 = vsel %vm3686_vm12, %v3687_v55, %v3685_v52  ;;  %vm4011_vm15 = vcmp.lt.f32.partialorder %v4010_v16, 0.0004427343 }
 0x6f9   : > { %5198 = vrcp.f32 %v3739_v22  ;;  %v3862_v21 = vadd.f32 1.0, %v8759_v45  ;;  %v3680_v30 = vand.u32 2147483648, %v8679_v37  ;;  %v3852_v56 = vsel %vm8747_vm11, %v3849_v1, %v3846_v2  ;;  %v8817_v2 = vpop.xlane.xlu1 %3594 }
 0x6fa   : > { %v4012_v8 = vsel %vm4011_vm15, %v4009_v33, %v4006_v53  ;;  %v3838_v7 = vmul.f32 -0.5, %v8734_v62  ;;  %5200 = vlog2.f32 %v3995_v19  ;;  %vm3679_vm3 = vcmp.eq.f32.partialorder %v8679_v37, 0.0  ;;  %v5193_v59 = vpop.eup %5192 }
 0x6fb   : > { %v4092_v32 = vsub.f32 %v3852_v56, %v4012_v8  ;;  %v3841_v31 = vand.u32 2147483647, %v8734_v62  ;;  %v3728_v48 = vmax.f32 %v3688_v28, 1e-15  ;;  %v3678_v47 = vsel %vm3677_vm2, %v8679_v37, %v3676_v17 }
 0x6fc   : > { %v3998_v4 = vmul.f32 -0.5, %v8757_v43  ;;  %5202 = vlog2.f32 %v3862_v21  ;;  %v8783_v35 = vsub.f32 0.0, %v8759_v45  ;;  %v3853_v11 = vadd.f32 1.0, %v8767_v5 }
 0x6fd   : > { %v4108_v27 = vmul.f32 0.5, %v4092_v32  ;;  %v3865_v15 = vmul.f32 -0.5, %v8759_v45  ;;  %5204 = vrcp.f32 %v3742_v46  ;;  %v8788_v54 = vsub.f32 0.0, %v8767_v5 }
 0x6fe   : > { %v3839_v38 = vadd.f32 1.0, %v3838_v7  ;;  %v4022_v44 = vadd.f32 1.0, %v8783_v35  ;;  %5206 = vlog2.f32 %v3853_v11  ;;  %v3856_v50 = vmul.f32 -0.5, %v8767_v5 }
 0x6ff   : > { %v4140_v14 = vmul.f32 %v5193_v59, %v4108_v27  ;;  %v4001_v12 = vand.u32 2147483647, %v8757_v43  ;;  %v3868_v57 = vand.u32 2147483647, %v8759_v45  ;;  %v4013_v22 = vadd.f32 1.0, %v8788_v54 }
 0x700   : > { %v5195_v34 = vpop.eup %5194  ;;  %v3999_v3 = vadd.f32 1.0, %v3998_v4  ;;  %5208 = vlog2.f32 %v4022_v44  ;;  %v4025_v6 = vmul.f32 -0.5, %v8783_v35  ;;  %v4028_v23 = vand.u32 2147483647, %v8783_v35 }
 0x701   : > { %v5197_v10 = vpop.eup %5196  ;;  %v4156_v9 = vmul.f32 %v4140_v14, %v8370_v61  ;;  %v3866_v36 = vadd.f32 1.0, %v3865_v15  ;;  %v3859_v60 = vand.u32 2147483647, %v8767_v5  ;;  %5210 = vlog2.f32 %v4013_v22 }
 0x702   : > { %v3840_v46 = vmul.f32 %v8734_v62, %v3839_v38  ;;  %vm8800_vm9 = vcmp.lt.f32.partialorder %v3841_v31, 0.0004427343  ;;  %v3857_v55 = vadd.f32 1.0, %v3856_v50  ;;  %v4016_v63 = vmul.f32 -0.5, %v8788_v54 }
 0x703   : > { %vm3698_vm6 = vcmp.eq.f32.partialorder %v8737_v40, inf  ;;  %v5199_v16 = vpop.eup %5198  ;;  %4172 = vst.msk [vmem:[%s8564_s26 + $0x38] sm:$0xff] %vm1930_vm4, %v4156_v9  ;;  %v3837_v29 = vmul.f32 0.6931472, %v5197_v10  ;;  %vm8808_vm14 = vcmp.lt.f32.partialorder %v4001_v12, 0.0004427343  ;;  %v8813_v52 = vmul.f32 %v3728_v48, %v5516_v25 }
 0x704   : > { %v3681_v62 = vsel %vm3679_vm3, %v3680_v30, %v3678_v47  ;;  %v5201_v42 = vpop.eup %5200  ;;  %v4000_v1 = vmul.f32 %v3999_v3, %v8757_v43  ;;  %vm8820_vm1 = vcmp.lt.f32.partialorder %v3868_v57, 0.0004427343  ;;  %v4026_v17 = vadd.f32 1.0, %v4025_v6 }
 0x705   : > { %vm8824_vm0 = vcmp.lt.f32.partialorder %v4028_v23, 0.0004427343  ;;  %v3727_v19 = vmax.f32 %v3681_v62, 1e-15  ;;  %v3997_v28 = vmul.f32 0.6931472, %v5201_v42  ;;  %v3867_v21 = vmul.f32 %v8759_v45, %v3866_v36 }
 0x706   : > { %vm8829_vm7 = vcmp.lt.f32.partialorder %v3859_v60, 0.0004427343  ;;  %v4019_v30 = vand.u32 2147483647, %v8788_v54  ;;  %v8835_v43 = vclamps-f32 %v8813_v52, 0.999999  ;;  %v5203_v56 = vpop.eup %5202  ;;  %v3858_v8 = vmul.f32 %v8767_v5, %v3857_v55 }
 0x707   : > { %v4017_v7 = vadd.f32 1.0, %v4016_v63  ;;  %v8839_v32 = vmul.f32 %v3727_v19, %v5516_v25  ;;  %5212 = vrsqrt.f32 %v8817_v2  ;;  %v5205_v31 = vpop.eup %5204  ;;  %v3843_v45 = vsel %vm8800_vm9, %v3840_v46, %v3837_v29 }
 0x708   : > { %v4003_v48 = vsel %vm8808_vm14, %v4000_v1, %v3997_v28  ;;  %v3880_v47 = vadd.f32 1.0, %v8835_v43  ;;  %v3697_v59 = vmul.f32 %v5195_v34, %v8737_v40  ;;  %v5207_v4 = vpop.eup %5206  ;;  %5214 = vrcp.f32 %v8742_v49 }
 0x709   : > { %v4091_v11 = vsub.f32 %v3843_v45, %v4003_v48  ;;  %v8850_v5 = vsub.f32 0.0, %v8835_v43  ;;  %v8853_v27 = vclamps-f32 %v8839_v32, 0.999999  ;;  %v3864_v15 = vmul.f32 0.6931472, %v5203_v56 }
 0x70a   : > { %v4027_v38 = vmul.f32 %v4026_v17, %v8783_v35  ;;  %vm8856_vm13 = vcmp.lt.f32.partialorder %v4019_v30, 0.0004427343  ;;  %5216 = vlog2.f32 %v3880_v47  ;;  %v5209_v50 = vpop.eup %5208  ;;  %v3855_v12 = vmul.f32 0.6931472, %v5207_v4 }
 0x70b   : > { %v4107_v14 = vmul.f32 0.5, %v4091_v11  ;;  %v4018_v57 = vmul.f32 %v4017_v7, %v8788_v54  ;;  %v4040_v49 = vadd.f32 1.0, %v8850_v5  ;;  %v5211_v22 = vpop.eup %5210  ;;  %v4024_v34 = vmul.f32 0.6931472, %v5209_v50 }
 0x70c   : > { %v3871_v3 = vadd.f32 1.0, %v8853_v27  ;;  %v3699_v35 = vsel %vm3698_vm6, %v8737_v40, %v3697_v59  ;;  %vm3700_vm8 = vcmp.eq.f32.partialorder %v8737_v40, 0.0  ;;  %v4015_v23 = vmul.f32 0.6931472, %v5211_v22 }
 0x70d   : > { %v4139_v6 = vmul.f32 %v5199_v16, %v4107_v14  ;;  %5218 = vlog2.f32 %v4040_v49  ;;  %v3701_v10 = vand.u32 2147483648, %v8737_v40  ;;  %v3870_v54 = vsel %vm8820_vm1, %v3867_v21, %v3864_v15 }
 0x70e   : > { %v4030_v9 = vsel %vm8824_vm0, %v4027_v38, %v4024_v34  ;;  %v3883_v36 = vmul.f32 -0.5, %v8835_v43  ;;  %v3886_v60 = vand.u32 2147483647, %v8835_v43  ;;  %v3861_v55 = vsel %vm8829_vm7, %v3858_v8, %v3855_v12 }
 0x70f   : > { %v4155_v46 = vmul.f32 %v4139_v6, %v8397_v0  ;;  %v4094_v24 = vsub.f32 %v3870_v54, %v4030_v9  ;;  %v4021_v63 = vsel %vm8856_vm13, %v4018_v57, %v4015_v23  ;;  %v4043_v29 = vmul.f32 -0.5, %v8850_v5 }
 0x710   : > { %v4093_v16 = vsub.f32 %v3861_v55, %v4021_v63  ;;  %5220 = vlog2.f32 %v3871_v3  ;;  %v8881_v61 = vsub.f32 0.0, %v8853_v27  ;;  %v3702_v0 = vsel %vm3700_vm8, %v3701_v10, %v3699_v35 }
 0x711   : > { %v5213_v62 = vpop.eup %5212  ;;  %4171 = vst.msk [vmem:[%s8564_s26 + $0x30] sm:$0xff] %vm1930_vm4, %v4155_v46  ;;  %v4110_v42 = vmul.f32 0.5, %v4094_v24  ;;  %v3884_v33 = vadd.f32 1.0, %v3883_v36  ;;  %5222 = vrcp.f32 %v8813_v52  ;;  %vm8889_vm5 = vcmp.lt.f32.partialorder %v3886_v60, 0.0004427343  ;;  %v8895_v52 = vpop.xlane.xlu1 %3600 }
 0x712   : > { %v4109_v1 = vmul.f32 0.5, %v4093_v16  ;;  %v4031_v17 = vadd.f32 1.0, %v8881_v61  ;;  %v5215_v53 = vpop.eup %5214  ;;  %v4046_v21 = vand.u32 2147483647, %v8850_v5  ;;  %v3730_v37 = vmax.f32 %v3702_v0, 1e-15 }
 0x713   : > { %v4142_v19 = vmul.f32 %v5205_v31, %v4110_v42  ;;  %v4044_v40 = vadd.f32 1.0, %v4043_v29  ;;  %v3690_v8 = vmul.f32 %v5213_v62, %v8817_v2  ;;  %v3874_v45 = vmul.f32 -0.5, %v8853_v27 }
 0x714   : > { %v5217_v30 = vpop.eup %5216  ;;  %v4141_v56 = vmul.f32 %v5215_v53, %v4109_v1  ;;  %5224 = vlog2.f32 %v4031_v17  ;;  %vm3691_vm10 = vcmp.eq.f32.partialorder %v8817_v2, inf  ;;  %v3746_v47 = vmul.f32 %v3730_v37, %v5516_v25 }
 0x715   : > { %v4158_v7 = vmul.f32 %v4142_v19, %v8409_v51  ;;  %v3882_v31 = vmul.f32 0.6931472, %v5217_v30  ;;  %v3692_v59 = vsel %vm3691_vm10, %v8817_v2, %v3690_v8  ;;  %v3694_v4 = vand.u32 2147483648, %v8817_v2 }
 0x716   : > { %v4157_v48 = vmul.f32 %v4141_v56, %v8426_v13  ;;  %v3885_v15 = vmul.f32 %v8835_v43, %v3884_v33  ;;  %v4034_v51 = vmul.f32 -0.5, %v8881_v61  ;;  %vm3693_vm12 = vcmp.eq.f32.partialorder %v8817_v2, 0.0 }
 0x717   : > { %v5219_v11 = vpop.eup %5218  ;;  %4174 = vst.msk [vmem:[%s8564_s26 + $0x48] sm:$0xff] %vm1930_vm4, %v4158_v7  ;;  %5226 = vrsqrt.f32 %v8895_v52  ;;  %v4045_v38 = vmul.f32 %v4044_v40, %v8850_v5  ;;  %v8913_v44 = vclamps-f32 %v3746_v47, 0.999999  ;;  %v3695_v50 = vsel %vm3693_vm12, %v3694_v4, %v3692_v59 }
 0x718   : > { %4173 = vst.msk [vmem:[%s8564_s26 + $0x40] sm:$0xff] %vm1930_vm4, %v4157_v48  ;;  %v4042_v13 = vmul.f32 0.6931472, %v5219_v11  ;;  %vm4047_vm2 = vcmp.lt.f32.partialorder %v4046_v21, 0.0004427343  ;;  %v3875_v14 = vadd.f32 1.0, %v3874_v45  ;;  %v3888_v43 = vsel %vm8889_vm5, %v3885_v15, %v3882_v31 }
 0x719   : > { %v3729_v12 = vmax.f32 %v3695_v50, 1e-15  ;;  %5228 = vrcp.f32 %v8839_v32  ;;  %v3898_v2 = vadd.f32 1.0, %v8913_v44  ;;  %v4035_v34 = vadd.f32 1.0, %v4034_v51 }
 0x71a   : > { %v5221_v57 = vpop.eup %5220  ;;  %v4048_v49 = vsel %vm4047_vm2, %v4045_v38, %v4042_v13  ;;  %v3938_v3 = vsub.f32 0.0, %v8913_v44  ;;  %v3877_v6 = vand.u32 2147483647, %v8853_v27  ;;  %v4037_v23 = vand.u32 2147483647, %v8881_v61 }
 0x71b   : > { %v4096_v22 = vsub.f32 %v3888_v43, %v4048_v49  ;;  %v3745_v5 = vmul.f32 %v3729_v12, %v5516_v25  ;;  %v5223_v35 = vpop.eup %5222  ;;  %5230 = vlog2.f32 %v3898_v2  ;;  %v3873_v54 = vmul.f32 0.6931472, %v5221_v57 }
 0x71c   : > { %v4058_v9 = vadd.f32 1.0, %v3938_v3  ;;  %v3876_v32 = vmul.f32 %v8853_v27, %v3875_v14  ;;  %v4036_v55 = vmul.f32 %v4035_v34, %v8881_v61  ;;  %vm3878_vm11 = vcmp.lt.f32.partialorder %v3877_v6, 0.0004427343  ;;  %v8932_v27 = vpop.xlane.xlu0 %3603 }
 0x71d   : > { %v4112_v10 = vmul.f32 0.5, %v4096_v22  ;;  %v8924_v60 = vclamps-f32 %v3745_v5, 0.999999  ;;  %vm4038_vm15 = vcmp.lt.f32.partialorder %v4037_v23, 0.0004427343  ;;  %v3901_v33 = vmul.f32 -0.5, %v8913_v44 }
 0x71e   : > { %v5225_v36 = vpop.eup %5224  ;;  %5232 = vlog2.f32 %v4058_v9  ;;  %v3879_v62 = vsel %vm3878_vm11, %v3876_v32, %v3873_v54  ;;  %v4061_v17 = vmul.f32 -0.5, %v3938_v3  ;;  %vm3705_vm3 = vcmp.eq.f32.partialorder %v8895_v52, inf }
 0x71f   : > { %v4144_v46 = vmul.f32 %v5223_v35, %v4112_v10  ;;  %v4033_v24 = vmul.f32 0.6931472, %v5225_v36  ;;  %v3889_v63 = vadd.f32 1.0, %v8924_v60  ;;  %v8930_v0 = vsub.f32 0.0, %v8924_v60 }
 0x720   : > { %v3708_v28 = vand.u32 2147483648, %v8895_v52  ;;  %vm3707_vm9 = vcmp.eq.f32.partialorder %v8895_v52, 0.0  ;;  %v3902_v56 = vadd.f32 1.0, %v3901_v33  ;;  %v4062_v40 = vadd.f32 1.0, %v4061_v17 }
 0x721   : > { %v5227_v16 = vpop.eup %5226  ;;  %v4160_v29 = vmul.f32 %v4144_v46, %v8436_v20  ;;  %v4039_v42 = vsel %vm4038_vm15, %v4036_v55, %v4033_v24  ;;  %5234 = vlog2.f32 %v3889_v63  ;;  %v4049_v61 = vadd.f32 1.0, %v8930_v0 }
 0x722   : > { %v4095_v1 = vsub.f32 %v3879_v62, %v4039_v42  ;;  %5236 = vrcp.f32 %v3746_v47  ;;  %v3704_v53 = vmul.f32 %v5227_v16, %v8895_v52  ;;  %v3904_v7 = vand.u32 2147483647, %v8913_v44 }
 0x723   : > { %4176 = vst.msk [vmem:[%s8564_s26 + $0x58] sm:$0xff] %vm1930_vm4, %v4160_v29  ;;  %v5229_v20 = vpop.eup %5228  ;;  %5238 = vrsqrt.f32 %v8932_v27  ;;  %v4064_v31 = vand.u32 2147483647, %v3938_v3  ;;  %v3892_v59 = vmul.f32 -0.5, %v8924_v60  ;;  %v4052_v4 = vmul.f32 -0.5, %v8930_v0 }
 0x724   : > { %v4111_v19 = vmul.f32 0.5, %v4095_v1  ;;  %5240 = vlog2.f32 %v4049_v61  ;;  %v3706_v21 = vsel %vm3705_vm3, %v8895_v52, %v3704_v53  ;;  %v3903_v52 = vmul.f32 %v8913_v44, %v3902_v56 }
 0x725   : > { %v5231_v37 = vpop.eup %5230  ;;  %v3709_v8 = vsel %vm3707_vm9, %v3708_v28, %v3706_v21  ;;  %v4063_v13 = vmul.f32 %v4062_v40, %v3938_v3  ;;  %vm3905_vm6 = vcmp.lt.f32.partialorder %v3904_v7, 0.0004427343  ;;  %vm4065_vm14 = vcmp.lt.f32.partialorder %v4064_v31, 0.0004427343 }
 0x726   : > { %v4143_v30 = vmul.f32 %v5229_v20, %v4111_v19  ;;  %v3731_v45 = vmax.f32 %v3709_v8, 1e-15  ;;  %v3900_v47 = vmul.f32 0.6931472, %v5231_v37  ;;  %5242 = vrcp.f32 %v3745_v5 }
 0x727   : > { %v3893_v12 = vadd.f32 1.0, %v3892_v59  ;;  %v4053_v57 = vadd.f32 1.0, %v4052_v4  ;;  %v3895_v2 = vand.u32 2147483647, %v8924_v60  ;;  %v4055_v22 = vand.u32 2147483647, %v8930_v0 }
 0x728   : > { %v4159_v48 = vmul.f32 %v4143_v30, %v8443_v18  ;;  %v5233_v11 = vpop.eup %5232  ;;  %v3747_v15 = vmul.f32 %v3731_v45, %v5516_v25  ;;  %v3906_v18 = vsel %vm3905_vm6, %v3903_v52, %v3900_v47  ;;  %vm3712_vm1 = vcmp.eq.f32.partialorder %v8932_v27, inf }
 0x729   : > { %v4060_v51 = vmul.f32 0.6931472, %v5233_v11  ;;  %v3894_v5 = vmul.f32 %v8924_v60, %v3893_v12  ;;  %v4054_v54 = vmul.f32 %v4053_v57, %v8930_v0  ;;  %vm3896_vm0 = vcmp.lt.f32.partialorder %v3895_v2, 0.0004427343 }
 0x72a   : > { %4175 = vst.msk [vmem:[%s8564_s26 + $0x50] sm:$0xff] %vm1930_vm4, %v4159_v48  ;;  %v4353_v38 = vclamps-f32 %v3747_v15, 0.999999  ;;  %vm4056_vm7 = vcmp.lt.f32.partialorder %v4055_v22, 0.0004427343  ;;  %v3715_v55 = vand.u32 2147483648, %v8932_v27 }
 0x72b   : > { %v5235_v50 = vpop.eup %5234  ;;  %v4066_v14 = vsel %vm4065_vm14, %v4063_v13, %v4060_v51  ;;  %vm3714_vm13 = vcmp.eq.f32.partialorder %v8932_v27, 0.0 }
 0x72c   : > { %v5237_v43 = vpop.eup %5236  ;;  %v4098_v49 = vsub.f32 %v3906_v18, %v4066_v14  ;;  %v3907_v34 = vadd.f32 1.0, %v4353_v38  ;;  %v3891_v44 = vmul.f32 0.6931472, %v5235_v50  ;;  %v3939_v6 = vsub.f32 0.0, %v4353_v38 }
 0x72d   : > { %v5239_v35 = vpop.eup %5238  ;;  %v3910_v0 = vmul.f32 -0.5, %v4353_v38 }
 0x72e   : > { %v5241_v3 = vpop.eup %5240  ;;  %v4114_v23 = vmul.f32 0.5, %v4098_v49  ;;  %5244 = vlog2.f32 %v3907_v34  ;;  %v4067_v9 = vadd.f32 1.0, %v3939_v6  ;;  %v3711_v32 = vmul.f32 %v5239_v35, %v8932_v27 }
 0x72f   : > { %v4051_v10 = vmul.f32 0.6931472, %v5241_v3  ;;  %v3897_v46 = vsel %vm3896_vm0, %v3894_v5, %v3891_v44  ;;  %v4070_v1 = vmul.f32 -0.5, %v3939_v6  ;;  %v3911_v20 = vadd.f32 1.0, %v3910_v0 }
 0x730   : > { %v4146_v36 = vmul.f32 %v5237_v43, %v4114_v23  ;;  %5246 = vlog2.f32 %v4067_v9  ;;  %v3713_v60 = vsel %vm3712_vm1, %v8932_v27, %v3711_v32  ;;  %v5243_v62 = vpop.eup %5242  ;;  %v3913_v27 = vand.u32 2147483647, %v4353_v38 }
 0x731   : > { %v4057_v24 = vsel %vm4056_vm7, %v4054_v54, %v4051_v10  ;;  %v3716_v29 = vsel %vm3714_vm13, %v3715_v55, %v3713_v60  ;;  %5248 = vrcp.f32 %v3747_v15  ;;  %v4071_v19 = vadd.f32 1.0, %v4070_v1 }
 0x732   : > { %v4162_v63 = vmul.f32 %v4146_v36, %v8448_v58  ;;  %v4097_v16 = vsub.f32 %v3897_v46, %v4057_v24  ;;  %v3732_v33 = vmax.f32 %v3716_v29, 1e-15  ;;  %v4073_v21 = vand.u32 2147483647, %v3939_v6 }
 0x733   : > { %v3912_v8 = vmul.f32 %v4353_v38, %v3911_v20  ;;  %v4072_v31 = vmul.f32 %v4071_v19, %v3939_v6  ;;  %vm3914_vm8 = vcmp.lt.f32.partialorder %v3913_v27, 0.0004427343 }
 0x734   : > { %4178 = vst.msk [vmem:[%s8564_s26 + $0x68] sm:$0xff] %vm1930_vm4, %v4162_v63  ;;  %v4113_v42 = vmul.f32 0.5, %v4097_v16  ;;  %v3748_v61 = vmul.f32 %v3732_v33, %v5516_v25  ;;  %vm4074_vm5 = vcmp.lt.f32.partialorder %v4073_v21, 0.0004427343 }
 0x736   : > { %v4145_v17 = vmul.f32 %v5243_v62, %v4113_v42  ;;  %v4354_v28 = vclamps-f32 %v3748_v61, 0.999999 }
 0x738   : > { %v5245_v53 = vpop.eup %5244  ;;  %v4161_v58 = vmul.f32 %v4145_v17, %v8459_v39  ;;  %v3916_v30 = vadd.f32 1.0, %v4354_v28  ;;  %v3940_v56 = vsub.f32 0.0, %v4354_v28  ;;  %v3919_v4 = vmul.f32 -0.5, %v4354_v28 }
 0x739   : > { %v3909_v37 = vmul.f32 0.6931472, %v5245_v53  ;;  %v3922_v50 = vand.u32 2147483647, %v4354_v28 }
 0x73a   : > { %4177 = vst.msk [vmem:[%s8564_s26 + $0x60] sm:$0xff] %vm1930_vm4, %v4161_v58  ;;  %v5247_v40 = vpop.eup %5246  ;;  %5250 = vlog2.f32 %v3916_v30  ;;  %v4076_v25 = vadd.f32 1.0, %v3940_v56  ;;  %v4079_v11 = vmul.f32 -0.5, %v3940_v56  ;;  %v3920_v13 = vadd.f32 1.0, %v3919_v4 }
 0x73b   : > { %v4069_v7 = vmul.f32 0.6931472, %v5247_v40  ;;  %v3915_v39 = vsel %vm3914_vm8, %v3912_v8, %v3909_v37  ;;  %v5249_v47 = vpop.eup %5248  ;;  %v4082_v18 = vand.u32 2147483647, %v3940_v56  ;;  %vm3923_vm10 = vcmp.lt.f32.partialorder %v3922_v50, 0.0004427343 }
 0x73c   : > { %5252 = vlog2.f32 %v4076_v25  ;;  %v4080_v38 = vadd.f32 1.0, %v4079_v11  ;;  %v3921_v57 = vmul.f32 %v4354_v28, %v3920_v13 }
 0x73d   : > { %v4075_v45 = vsel %vm4074_vm5, %v4072_v31, %v4069_v7  ;;  %5254 = vrcp.f32 %v3748_v61  ;;  %vm4083_vm12 = vcmp.lt.f32.partialorder %v4082_v18, 0.0004427343 }
 0x73e   : > { %v4099_v48 = vsub.f32 %v3915_v39, %v4075_v45  ;;  %v4081_v49 = vmul.f32 %v4080_v38, %v3940_v56 }
 0x740   : > { %v4115_v59 = vmul.f32 0.5, %v4099_v48 }
 0x742   : > { %v4147_v15 = vmul.f32 %v5249_v47, %v4115_v59 }
 0x744   : > { %v4163_v52 = vmul.f32 %v4147_v15, %v8468_v41  ;;  %v5251_v51 = vpop.eup %5250 }
 0x745   : > { %v3918_v14 = vmul.f32 0.6931472, %v5251_v51 }
 0x746   : > { %4179 = vst.msk [vmem:[%s8564_s26 + $0x70] sm:$0xff] %vm1930_vm4, %v4163_v52  ;;  %v5253_v12 = vpop.eup %5252 }
 0x747   : > { %v4078_v43 = vmul.f32 0.6931472, %v5253_v12  ;;  %v3924_v2 = vsel %vm3923_vm10, %v3921_v57, %v3918_v14  ;;  %v5255_v35 = vpop.eup %5254 }
 0x749   : > { %v4084_v22 = vsel %vm4083_vm12, %v4081_v49, %v4078_v43 }
 0x74a   : > { %v4100_v34 = vsub.f32 %v3924_v2, %v4084_v22 }
 0x74c   : > { %v4116_v41 = vmul.f32 0.5, %v4100_v34 }
 0x74e   : > { %v4148_v44 = vmul.f32 %v5255_v35, %v4116_v41 }
 0x750   : > { %v4164_v6 = vmul.f32 %v4148_v44, %v8475_v26 }
 0x752   : > { %4180 = vst.msk [vmem:[%s8564_s26 + $0x78] sm:$0xff] %vm1930_vm4, %v4164_v6 }
 0x753 PF: > { %s19_s27 = sadd.s32 1, %s5281_s27  }
 0x754   : > { %p16_p1 = scmp.ge.s32.totalorder %s19_s27, 4  }
 0x756   :  { %18 = sbr.rel (!%p16_p1) target bundleno = 1 (0x1), region = 90 }
 0x75d   :  { %4203 = vsyncpa [#allocation3], 1 }
 0x75e   :  { %4205 = vsyncpa [#allocation3 + $0x1], 1 }

</bundles_post_ra>
